<compile_context>
chip_gen: v6e
topology: v6e:2x2x1
jax: 0.10.0
libtpu: 0.0.40
codegen_flags: <defaults>
</compile_context>

<pallas_src>
import functools

import jax
import jax.numpy as jnp
from jax import lax
from jax.experimental import pallas as pl
from jax.experimental.pallas import tpu as pltpu


def _round_up(a, b):
    return (a + b - 1) // b * b


def _fold_bn_scale_shift(bias, bn, bn_params, eps, cout):
    """Per-channel (scale, shift) folding conv-bias + eval-mode BatchNorm."""
    b = (bias if bias is not None else jnp.zeros((cout,), jnp.float32)).astype(jnp.float32)
    if bn:
        gamma = bn_params["gamma"].astype(jnp.float32)
        beta = bn_params["beta"].astype(jnp.float32)
        mean = bn_params["running_mean"].astype(jnp.float32)
        var = bn_params["running_var"].astype(jnp.float32)
        scale = gamma / jnp.sqrt(var + eps)
        shift = (b - mean) * scale + beta
    else:
        scale = jnp.ones((cout,), jnp.float32)
        shift = b
    return scale, shift


def _choose_row_tile(ho, wo, target_rows):
    """Pick the output-row tile TH.

    Prefer TH that divides Ho (no padded output rows -> no wrapper slice) and makes
    TH*Wo a multiple of 8 (fully (8,128)-aligned flat output block), close to
    `target_rows` flat output rows per grid step (amortizes per-step overhead).
    Returns (TH, Ho_padded).
    """
    th0 = max(1, min(ho, -(-target_rows // wo)))
    best = None
    for d in range(1, ho + 1):
        if ho % d == 0 and (d * wo) % 8 == 0:
            if best is None or abs(d - th0) <= abs(best - th0):
                best = d
    if best is not None:
        return best, ho
    # Fall back to padded output rows; keep TH*Wo a multiple of 8 if possible.
    th = th0
    while th < ho and (th * wo) % 8 != 0:
        th += 1
    if (th * wo) % 8 != 0:
        th = ho                      # single block == full flat dim (always legal)
    n_j = -(-ho // th)
    return th, n_j * th


# ---------------------------------------------------------------------------
# Pallas kernel: in-VMEM im2col (single big-K matmul) + fused shift/ReLU epilogue
# ---------------------------------------------------------------------------
def _conv_kernel(x_ref, w_ref, shift_ref, o_ref, *scratch,
                 kh, kw, sh, sw, th, wo, cin, relu, use_im2col):
    # x_ref:     (Hp, Wp, Cin)       zero-padded NHWC image (VMEM-resident per batch elem)
    # w_ref:     (kh*kw*Cin, TC)     BN-folded weights, K ordered (dh, dw, c)
    # shift_ref: (1, TC)             folded conv-bias / BN shift (f32)
    # o_ref:     (TH*Wo, TC)         flat, lane-dense output row block
    # scratch:   [(TH*Wo, kh*kw*Cin)] im2col LHS scratch (only when use_im2col)
    j = pl.program_id(2)
    row0 = pl.multiple_of(j * (th * sh), th * sh)
    m = th * wo

    def tap_rows(dh):
        # Per-tap rows read directly from the ref (no materialized span_h slab value).
        if sh == 1:
            return x_ref[pl.ds(row0 + dh, th), :, :]
        return x_ref[pl.ds(row0 + dh, th, stride=sh), :, :]

    def tap_piece(rows, dw):
        # TODO(synk): for sw > 1, compact the strided width columns once per row block
        #             (strided copy into scratch) instead of striding inside each tap.
        if sw == 1:
            piece = rows[:, dw:dw + wo, :]
        else:
            piece = rows[:, dw:dw + (wo - 1) * sw + 1:sw, :]
        return piece.reshape(m, cin)

    if use_im2col:
        # Small Cin: build the (m, kh*kw*Cin) im2col LHS in VMEM and issue a single
        # MXU matmul with K = kh*kw*Cin (accumulation stays inside the MXU).
        lhs_ref, = scratch
        tap = 0
        for dh in range(kh):                       # static taps -> fully unrolled
            rows = tap_rows(dh)
            for dw in range(kw):
                lhs_ref[:, tap * cin:(tap + 1) * cin] = tap_piece(rows, dw)
                tap += 1
        acc = jnp.dot(lhs_ref[...], w_ref[...], preferred_element_type=jnp.float32)
    else:
        # Large Cin: per-tap K = Cin already fills the MXU contraction; accumulate f32.
        acc = None
        tap = 0
        for dh in range(kh):
            rows = tap_rows(dh)
            for dw in range(kw):
                part = jnp.dot(tap_piece(rows, dw),
                               w_ref[tap * cin:(tap + 1) * cin, :],
                               preferred_element_type=jnp.float32)
                acc = part if acc is None else acc + part
                tap += 1

    y = acc + shift_ref[...]                       # f32 epilogue
    if relu:
        y = jnp.maximum(y, 0.0)
    o_ref[...] = y.astype(o_ref.dtype)


# ---------------------------------------------------------------------------
# Wrapper
# ---------------------------------------------------------------------------
def conv2d_block(x, weight, bias=None, *, stride=1, padding=1,
                 relu=False, bn=False, bn_params=None, eps=1e-5,
                 compute_dtype=jnp.bfloat16, out_dtype=None, target_rows=512):
    """Forward pass of the Conv2d module: conv + BN(eval) + dropout(eval=identity) + ReLU.

    x:      (N, Cin, H, W) float32 (NCHW, PyTorch convention)
    weight: (Cout, Cin, kh, kw); bias: (Cout,) or None
    bn_params: dict(gamma, beta, running_mean, running_var) when bn=True (eval-mode fold).
    out_dtype: kernel output dtype (default: x.dtype).  Pass bf16 (the network's
               activation dtype) to halve output HBM writeback.
    """
    # TODO(synk): training-mode BatchNorm (batch statistics), train-mode Dropout masking
    #             and PReLU (relu='learn') are not implemented (eval-mode semantics only).
    if relu == 'learn':
        raise NotImplementedError("PReLU (relu='learn') has no Pallas path here")

    n, cin, h, w = x.shape
    cout, _, kh, kw = weight.shape
    sh, sw = (stride, stride) if isinstance(stride, int) else tuple(stride)
    ph, pw = (padding, padding) if isinstance(padding, int) else tuple(padding)
    out_dtype = x.dtype if out_dtype is None else out_dtype

    ho = (h - kh + 2 * ph) // sh + 1
    wo = (w - kw + 2 * pw) // sw + 1

    # Fold conv-bias + eval-mode BN: scale goes into the weights, shift stays f32.
    scale, shift = _fold_bn_scale_shift(bias, bn, bn_params, eps, cout)
    cout_pad = _round_up(cout, 128)                    # lane-dense output channels
    k_dim = kh * kw * cin

    # Weights restacked as (kh*kw*Cin, Cout_pad); K ordered (dh, dw, c) to match the
    # in-kernel im2col ordering.
    w_folded = weight.astype(jnp.float32) * scale[:, None, None, None]
    w_flat = jnp.transpose(w_folded, (2, 3, 1, 0)).reshape(k_dim, cout)
    w_flat = jnp.pad(w_flat, ((0, 0), (0, cout_pad - cout))).astype(compute_dtype)
    shift_pad = jnp.pad(shift, (0, cout_pad - cout)).reshape(1, cout_pad).astype(jnp.float32)

    # Output-row tiling: TH*Wo flat output rows per grid step, multiple of 8 and
    # (preferably) TH | Ho so the flat output block is fully aligned and unpadded.
    th, ho_pad = _choose_row_tile(ho, wo, target_rows)
    n_j = ho_pad // th
    m = th * wo

    # Cout tiling (parallel grid axis) bounds the weight slab / accumulator / output
    # tile when Cout is large.
    tc = 256 if cout_pad >= 512 else cout_pad
    n_c = cout_pad // tc

    # Zero-pad spatially (conv padding + extra bottom rows for the last row block),
    # convert to NHWC and cast to the compute dtype (fused into one XLA op).
    needed_h = (ho_pad - 1) * sh + kh
    pb = max(ph, needed_h - h - ph)
    x_nhwc = jnp.pad(jnp.transpose(x, (0, 2, 3, 1)),
                     ((0, 0), (ph, pb), (pw, pw), (0, 0))).astype(compute_dtype)
    hp, wp = x_nhwc.shape[1], x_nhwc.shape[2]

    # MXU feeding strategy: single im2col matmul (K = kh*kw*Cin) for small Cin,
    # per-tap K = Cin matmuls once Cin alone fills the contraction.
    use_im2col = cin < 128

    kernel = functools.partial(_conv_kernel, kh=kh, kw=kw, sh=sh, sw=sw, th=th, wo=wo,
                               cin=cin, relu=bool(relu), use_im2col=use_im2col)
    scratch_shapes = [pltpu.VMEM((m, k_dim), compute_dtype)] if use_im2col else []

    # Advisory cost estimate for the XLA scheduler around the custom call.
    item = jnp.dtype(compute_dtype).itemsize
    out_item = jnp.dtype(out_dtype).itemsize
    cost = pl.CostEstimate(
        flops=int(2 * n * ho_pad * wo * k_dim * cout_pad),
        transcendentals=0,
        bytes_accessed=int(x_nhwc.size * item + n * w_flat.size * item
                           + n * ho_pad * wo * cout_pad * out_item))

    # Generation-aware VMEM budget: ~75% of physical capacity (~48 MiB on v7x,
    # ~96 MiB on v5e/v6e); estimate includes in-kernel scratch / value temporaries.
    try:
        phys_vmem = int(getattr(pltpu.get_tpu_info(), "vmem_capacity_bytes",
                                64 * 1024 * 1024))
    except Exception:
        phys_vmem = 64 * 1024 * 1024
    vmem_cap = max(32 * 1024 * 1024, phys_vmem * 3 // 4)

    def _sub(it):
        return 8 * (4 // it)

    def _tile_bytes(r, c, it):
        return _round_up(r, _sub(it)) * _round_up(c, 128) * it

    x_blk = hp * _round_up(wp, _sub(item)) * _round_up(cin, 128) * item
    w_blk = _tile_bytes(k_dim, tc, item)
    s_blk = _tile_bytes(1, tc, 4)
    o_blk = _tile_bytes(m, tc, out_item)
    lhs_blk = _tile_bytes(m, k_dim, item) if use_im2col else 0
    rows_blk = th * _round_up(wp, _sub(item)) * _round_up(cin, 128) * item
    acc_blk = _tile_bytes(m, tc, 4)
    est = (2 * (x_blk + w_blk + s_blk + o_blk)      # double-buffered pipeline buffers
           + lhs_blk                                # im2col scratch (single-buffered)
           + lhs_blk + rows_blk + 2 * acc_blk)      # in-kernel value temporaries
    vmem_limit = int(min(max(est + est // 4, 32 * 1024 * 1024), vmem_cap))
    # TODO(synk): when x_blk alone exceeds the budget (large images; Cin lane-padded to
    #             128 in VMEM), switch x to memory_space=pl.ANY and manually
    #             double-buffer the (TH*sh+kh-1, Wp, Cin) halo row slab per grid step
    #             with pltpu.make_async_copy (overlapping blocks are not expressible
    #             with a blocked index_map).

    out_flat = pl.pallas_call(
        kernel,
        out_shape=jax.ShapeDtypeStruct((n, ho_pad * wo, cout_pad), out_dtype),
        grid_spec=pltpu.PrefetchScalarGridSpec(
            num_scalar_prefetch=0,
            grid=(n, n_c, n_j),
            in_specs=[
                # Whole padded image per batch element; block index is constant across
                # (c, j), so it is DMA'd once per image and stays VMEM-resident.
                pl.BlockSpec((None, hp, wp, cin), lambda b, c, j: (b, 0, 0, 0)),
                # Weight / shift block indices depend only on c (constant across b, j).
                # NOTE: pl.Buffered(1) could reclaim their second pipeline buffer; left
                # at the default depth since the slabs are small after Cout tiling.
                pl.BlockSpec((k_dim, tc), lambda b, c, j: (0, c)),
                pl.BlockSpec((1, tc), lambda b, c, j: (0, c)),
            ],
            out_specs=pl.BlockSpec((None, m, tc), lambda b, c, j: (b, j, c)),
            scratch_shapes=scratch_shapes,
        ),
        compiler_params=pltpu.CompilerParams(
            dimension_semantics=("parallel", "parallel", "parallel"),
            vmem_limit_bytes=vmem_limit),
        cost_estimate=cost,
    )(x_nhwc, w_flat, shift_pad)

    # Back to the module interface (NCHW); the row/channel slices are no-ops when
    # TH | Ho and Cout is already a multiple of 128.
    # TODO(synk): keep the whole network NHWC end-to-end to avoid this boundary
    #             transpose (it is an un-hidden whole-tensor HBM round trip).
    out = out_flat.reshape(n, ho_pad, wo, cout_pad)
    if ho_pad != ho:
        out = out[:, :ho]
    if cout_pad != cout:
        out = out[..., :cout]
    return jnp.transpose(out, (0, 3, 1, 2))


# ---------------------------------------------------------------------------
# Demo / correctness check
# ---------------------------------------------------------------------------
if __name__ == "__main__":
    key = jax.random.PRNGKey(0)
    k_x, k_w = jax.random.split(key)

    # Module config: Conv2d(in=4, out=8, kernel=3, stride=1, padding=1, bias=True,
    #                       relu=True, dropout=0.0, bn=True) -- eval mode.
    n, cin, h, w = 2, 4, 16, 16
    cout, ksz, stride, padding = 8, 3, 1, 1
    eps = 1e-5

    x = jax.random.normal(k_x, (n, cin, h, w), dtype=jnp.float32)

    # xavier_normal_ conv weight, zero bias (as in the module's __init__).
    fan_in = cin * ksz * ksz
    fan_out = cout * ksz * ksz
    std = (2.0 / (fan_in + fan_out)) ** 0.5
    weight = std * jax.random.normal(k_w, (cout, cin, ksz, ksz), dtype=jnp.float32)
    bias = jnp.zeros((cout,), jnp.float32)

    # BatchNorm2d default (eval) params: gamma=1, beta=0, running_mean=0, running_var=1.
    bn_params = dict(
        gamma=jnp.ones((cout,), jnp.float32),
        beta=jnp.zeros((cout,), jnp.float32),
        running_mean=jnp.zeros((cout,), jnp.float32),
        running_var=jnp.ones((cout,), jnp.float32),
    )

    out = conv2d_block(x, weight, bias, stride=stride, padding=padding,
                       relu=True, bn=True, bn_params=bn_params, eps=eps)
    out = jax.block_until_ready(out)
    assert out.shape == (n, cout, h, w), out.shape

    # Reference using the SAME bf16-rounded, BN-folded operands the kernel consumes
    # (f32 accumulation on both sides) so the comparison is tight and deterministic.
    scale, shift = _fold_bn_scale_shift(bias, True, bn_params, eps, cout)
    w_ref = (weight * scale[:, None, None, None]).astype(jnp.bfloat16).astype(jnp.float32)
    x_ref = x.astype(jnp.bfloat16).astype(jnp.float32)
    ref = lax.conv_general_dilated(
        x_ref, w_ref, window_strides=(stride, stride),
        padding=[(padding, padding), (padding, padding)],
        dimension_numbers=("NCHW", "OIHW", "NCHW"),
        precision=lax.Precision.HIGHEST)
    ref = ref + shift.reshape(1, -1, 1, 1)
    ref = jnp.maximum(ref, 0.0)

    err = float(jnp.max(jnp.abs(out - ref)))
    assert err < 1e-3, err

    print("KERNEL_OK")
</pallas_src>

<mosaic_0001>
module attributes {stable_mosaic.version = 11 : i64} {
  func.func @_conv_kernel(%arg0: i32, %arg1: i32, %arg2: i32, %arg3: memref<1x18x18x4xbf16, #tpu.memory_space<vmem>>, %arg4: memref<36x128xbf16, #tpu.memory_space<vmem>>, %arg5: memref<1x128xf32, #tpu.memory_space<vmem>>, %arg6: memref<1x256x128xf32, #tpu.memory_space<vmem>>, %arg7: memref<256x36xbf16, #tpu.memory_space<vmem>>) attributes {dimension_semantics = [#tpu.dimension_semantics<parallel>, #tpu.dimension_semantics<parallel>, #tpu.dimension_semantics<parallel>], iteration_bounds = array<i64: 2, 1, 1>, scalar_prefetch = 0 : i64, scratch_operands = 1 : i64, tpu.core_type = #tpu.core_type<tc>, window_params = [{transform_indices = @transform_0, window_bounds = array<i64: 1, 18, 18, 4>}, {transform_indices = @transform_1, window_bounds = array<i64: 36, 128>}, {transform_indices = @transform_2, window_bounds = array<i64: 1, 128>}, {transform_indices = @transform_3, window_bounds = array<i64: 1, 256, 128>}]} {
    %c16_i32 = arith.constant 16 : i32
    %0 = arith.muli %arg2, %c16_i32 : i32
    %1 = tpu.assume_multiple %0, 16 : i32
    %c0_i32 = arith.constant 0 : i32
    %2 = arith.addi %1, %c0_i32 : i32
    %c0 = arith.constant 0 : index
    %3 = arith.index_cast %2 : i32 to index
    %c0_0 = arith.constant 0 : index
    %c0_1 = arith.constant 0 : index
    %4 = vector.load %arg3[%c0, %3, %c0_0, %c0_1] : memref<1x18x18x4xbf16, #tpu.memory_space<vmem>>, vector<1x16x18x4xbf16>
    %5 = vector.shape_cast %4 : vector<1x16x18x4xbf16> to vector<16x18x4xbf16>
    %6 = vector.extract_strided_slice %5 {offsets = [0, 0, 0], sizes = [16, 16, 4], strides = [1, 1, 1]} : vector<16x18x4xbf16> to vector<16x16x4xbf16>
    %7 = vector.shape_cast %6 : vector<16x16x4xbf16> to vector<256x4xbf16>
    %c0_2 = arith.constant 0 : index
    %c0_3 = arith.constant 0 : index
    %8 = vector.load %arg7[%c0_2, %c0_3] : memref<256x36xbf16, #tpu.memory_space<vmem>>, vector<256x4xbf16>
    tpu.vector_store %arg7[%c0_2, %c0_3], %7 {strides = array<i32>} : memref<256x36xbf16, #tpu.memory_space<vmem>>, vector<256x4xbf16>,
    %9 = vector.extract_strided_slice %5 {offsets = [0, 1, 0], sizes = [16, 16, 4], strides = [1, 1, 1]} : vector<16x18x4xbf16> to vector<16x16x4xbf16>
    %10 = vector.shape_cast %9 : vector<16x16x4xbf16> to vector<256x4xbf16>
    %c0_4 = arith.constant 0 : index
    %c4 = arith.constant 4 : index
    %11 = vector.load %arg7[%c0_4, %c4] : memref<256x36xbf16, #tpu.memory_space<vmem>>, vector<256x4xbf16>
    tpu.vector_store %arg7[%c0_4, %c4], %10 {strides = array<i32>} : memref<256x36xbf16, #tpu.memory_space<vmem>>, vector<256x4xbf16>,
    %12 = vector.extract_strided_slice %5 {offsets = [0, 2, 0], sizes = [16, 16, 4], strides = [1, 1, 1]} : vector<16x18x4xbf16> to vector<16x16x4xbf16>
    %13 = vector.shape_cast %12 : vector<16x16x4xbf16> to vector<256x4xbf16>
    %c0_5 = arith.constant 0 : index
    %c8 = arith.constant 8 : index
    %14 = vector.load %arg7[%c0_5, %c8] : memref<256x36xbf16, #tpu.memory_space<vmem>>, vector<256x4xbf16>
    tpu.vector_store %arg7[%c0_5, %c8], %13 {strides = array<i32>} : memref<256x36xbf16, #tpu.memory_space<vmem>>, vector<256x4xbf16>,
    %c1_i32 = arith.constant 1 : i32
    %15 = arith.addi %1, %c1_i32 : i32
    %c0_6 = arith.constant 0 : index
    %16 = arith.index_cast %15 : i32 to index
    %c0_7 = arith.constant 0 : index
    %c0_8 = arith.constant 0 : index
    %17 = vector.load %arg3[%c0_6, %16, %c0_7, %c0_8] : memref<1x18x18x4xbf16, #tpu.memory_space<vmem>>, vector<1x16x18x4xbf16>
    %18 = vector.shape_cast %17 : vector<1x16x18x4xbf16> to vector<16x18x4xbf16>
    %19 = vector.extract_strided_slice %18 {offsets = [0, 0, 0], sizes = [16, 16, 4], strides = [1, 1, 1]} : vector<16x18x4xbf16> to vector<16x16x4xbf16>
    %20 = vector.shape_cast %19 : vector<16x16x4xbf16> to vector<256x4xbf16>
    %c0_9 = arith.constant 0 : index
    %c12 = arith.constant 12 : index
    %21 = vector.load %arg7[%c0_9, %c12] : memref<256x36xbf16, #tpu.memory_space<vmem>>, vector<256x4xbf16>
    tpu.vector_store %arg7[%c0_9, %c12], %20 {strides = array<i32>} : memref<256x36xbf16, #tpu.memory_space<vmem>>, vector<256x4xbf16>,
    %22 = vector.extract_strided_slice %18 {offsets = [0, 1, 0], sizes = [16, 16, 4], strides = [1, 1, 1]} : vector<16x18x4xbf16> to vector<16x16x4xbf16>
    %23 = vector.shape_cast %22 : vector<16x16x4xbf16> to vector<256x4xbf16>
    %c0_10 = arith.constant 0 : index
    %c16 = arith.constant 16 : index
    %24 = vector.load %arg7[%c0_10, %c16] : memref<256x36xbf16, #tpu.memory_space<vmem>>, vector<256x4xbf16>
    tpu.vector_store %arg7[%c0_10, %c16], %23 {strides = array<i32>} : memref<256x36xbf16, #tpu.memory_space<vmem>>, vector<256x4xbf16>,
    %25 = vector.extract_strided_slice %18 {offsets = [0, 2, 0], sizes = [16, 16, 4], strides = [1, 1, 1]} : vector<16x18x4xbf16> to vector<16x16x4xbf16>
    %26 = vector.shape_cast %25 : vector<16x16x4xbf16> to vector<256x4xbf16>
    %c0_11 = arith.constant 0 : index
    %c20 = arith.constant 20 : index
    %27 = vector.load %arg7[%c0_11, %c20] : memref<256x36xbf16, #tpu.memory_space<vmem>>, vector<256x4xbf16>
    tpu.vector_store %arg7[%c0_11, %c20], %26 {strides = array<i32>} : memref<256x36xbf16, #tpu.memory_space<vmem>>, vector<256x4xbf16>,
    %c2_i32 = arith.constant 2 : i32
    %28 = arith.addi %1, %c2_i32 : i32
    %c0_12 = arith.constant 0 : index
    %29 = arith.index_cast %28 : i32 to index
    %c0_13 = arith.constant 0 : index
    %c0_14 = arith.constant 0 : index
    %30 = vector.load %arg3[%c0_12, %29, %c0_13, %c0_14] : memref<1x18x18x4xbf16, #tpu.memory_space<vmem>>, vector<1x16x18x4xbf16>
    %31 = vector.shape_cast %30 : vector<1x16x18x4xbf16> to vector<16x18x4xbf16>
    %32 = vector.extract_strided_slice %31 {offsets = [0, 0, 0], sizes = [16, 16, 4], strides = [1, 1, 1]} : vector<16x18x4xbf16> to vector<16x16x4xbf16>
    %33 = vector.shape_cast %32 : vector<16x16x4xbf16> to vector<256x4xbf16>
    %c0_15 = arith.constant 0 : index
    %c24 = arith.constant 24 : index
    %34 = vector.load %arg7[%c0_15, %c24] : memref<256x36xbf16, #tpu.memory_space<vmem>>, vector<256x4xbf16>
    tpu.vector_store %arg7[%c0_15, %c24], %33 {strides = array<i32>} : memref<256x36xbf16, #tpu.memory_space<vmem>>, vector<256x4xbf16>,
    %35 = vector.extract_strided_slice %31 {offsets = [0, 1, 0], sizes = [16, 16, 4], strides = [1, 1, 1]} : vector<16x18x4xbf16> to vector<16x16x4xbf16>
    %36 = vector.shape_cast %35 : vector<16x16x4xbf16> to vector<256x4xbf16>
    %c0_16 = arith.constant 0 : index
    %c28 = arith.constant 28 : index
    %37 = vector.load %arg7[%c0_16, %c28] : memref<256x36xbf16, #tpu.memory_space<vmem>>, vector<256x4xbf16>
    tpu.vector_store %arg7[%c0_16, %c28], %36 {strides = array<i32>} : memref<256x36xbf16, #tpu.memory_space<vmem>>, vector<256x4xbf16>,
    %38 = vector.extract_strided_slice %31 {offsets = [0, 2, 0], sizes = [16, 16, 4], strides = [1, 1, 1]} : vector<16x18x4xbf16> to vector<16x16x4xbf16>
    %39 = vector.shape_cast %38 : vector<16x16x4xbf16> to vector<256x4xbf16>
    %c0_17 = arith.constant 0 : index
    %c32 = arith.constant 32 : index
    %40 = vector.load %arg7[%c0_17, %c32] : memref<256x36xbf16, #tpu.memory_space<vmem>>, vector<256x4xbf16>
    tpu.vector_store %arg7[%c0_17, %c32], %39 {strides = array<i32>} : memref<256x36xbf16, #tpu.memory_space<vmem>>, vector<256x4xbf16>,
    %c0_18 = arith.constant 0 : index
    %c0_19 = arith.constant 0 : index
    %41 = vector.load %arg7[%c0_18, %c0_19] : memref<256x36xbf16, #tpu.memory_space<vmem>>, vector<256x36xbf16>
    %c0_20 = arith.constant 0 : index
    %c0_21 = arith.constant 0 : index
    %42 = vector.load %arg4[%c0_20, %c0_21] : memref<36x128xbf16, #tpu.memory_space<vmem>>, vector<36x128xbf16>
    %cst = arith.constant dense<0.000000e+00> : vector<256x128xf32>
    %43 = tpu.matmul %41, %42, %cst {dimension_numbers = #tpu.dot_dimension_numbers<[1], [0], [0], [1], [0, 0, 1, 1], [], []>} : vector<256x36xbf16>, vector<36x128xbf16>, vector<256x128xf32> -> vector<256x128xf32>
    %c0_22 = arith.constant 0 : index
    %c0_23 = arith.constant 0 : index
    %44 = vector.load %arg5[%c0_22, %c0_23] : memref<1x128xf32, #tpu.memory_space<vmem>>, vector<1x128xf32>
    %45 = vector.broadcast %44 : vector<1x128xf32> to vector<256x128xf32>
    %46 = arith.addf %43, %45 : vector<256x128xf32>
    %cst_24 = arith.constant 0.000000e+00 : f32
    %47 = vector.broadcast %cst_24 : f32 to vector<256x128xf32>
    %48 = arith.maximumf %46, %47 : vector<256x128xf32>
    %c0_25 = arith.constant 0 : index
    %c0_26 = arith.constant 0 : index
    %c0_27 = arith.constant 0 : index
    %49 = vector.load %arg6[%c0_25, %c0_26, %c0_27] : memref<1x256x128xf32, #tpu.memory_space<vmem>>, vector<1x256x128xf32>
    %50 = vector.shape_cast %49 : vector<1x256x128xf32> to vector<256x128xf32>
    %51 = vector.shape_cast %48 : vector<256x128xf32> to vector<1x256x128xf32>
    tpu.vector_store %arg6[%c0_25, %c0_26, %c0_27], %51 {strides = array<i32>} : memref<1x256x128xf32, #tpu.memory_space<vmem>>, vector<1x256x128xf32>,
    return
  }
  func.func @transform_0(%arg0: i32, %arg1: i32, %arg2: i32) -> (i32, i32, i32, i32) {
    %c0_i32 = arith.constant 0 : i32
    %c0_i32_0 = arith.constant 0 : i32
    %c0_i32_1 = arith.constant 0 : i32
    %c0_i32_2 = arith.constant 0 : i32
    return %arg0, %c0_i32, %c0_i32_0, %c0_i32_1 : i32, i32, i32, i32
  }
  func.func @transform_1(%arg0: i32, %arg1: i32, %arg2: i32) -> (i32, i32) {
    %c0_i32 = arith.constant 0 : i32
    %c0_i32_0 = arith.constant 0 : i32
    return %c0_i32, %arg1 : i32, i32
  }
  func.func @transform_2(%arg0: i32, %arg1: i32, %arg2: i32) -> (i32, i32) {
    %c0_i32 = arith.constant 0 : i32
    %c0_i32_0 = arith.constant 0 : i32
    return %c0_i32, %arg1 : i32, i32
  }
  func.func @transform_3(%arg0: i32, %arg1: i32, %arg2: i32) -> (i32, i32, i32) {
    %c0_i32 = arith.constant 0 : i32
    return %arg0, %arg2, %arg1 : i32, i32, i32
  }
}

</mosaic_0001>

<bundles_post_ra>
// kernel: tpu_custom_call.1
= control target key start
LH: loop header
LB: loop body
LE: loop exit
PB: predicated region body
PF: predicated region fallthrough
CT: control target
= control target key end

     0   :  { %8 = vsyncpa [#allocation4], 0  ;;  %s6389_s0 = inlined_call_operand.vmem [shape: bf16[2,18,18,4], index: 0, kind: input, shape index: {}]   ;;  %s6390_s1 = inlined_call_operand.vmem [shape: bf16[36,128], index: 1, kind: input, shape index: {}]   ;;  %s6391_s2 = inlined_call_operand.vmem [shape: f32[1,128], index: 2, kind: input, shape index: {}]   ;;  %s6392_s3 = inlined_call_operand.hbm [shape: f32[2,256,128], index: 3, kind: output, shape index: {}]  }
   0x1   :  { %10 = vsyncpa [#allocation4 + $0x1], 0  ;;  %s4101_s12 = smov 0   ;;  %s4103_s13 = smov 0  }
   0x2   :  { %s4105_s14 = smov 0   ;;  %s4107_s15 = smov 0  }
   0x3   :  { %s4109_s16 = smov 0   ;;  %s4111_s17 = smov 0  }
   0x4 LB: > { %s3632_s18 = sadd.s32 4294967295, %s4069_s17   ;;  %s3633_s19 = sadd.s32 4294967294, %s4069_s17   ;;  %s4069_s17 = sphi %s4111_s17, %s16_s17   ;;  %s4065_s16 = sphi %s4109_s16, %s6430_s16   ;;  %s4061_s15 = sphi %s4107_s15, %s6429_s15   ;;  %s4057_s14 = sphi %s4105_s14, %s6428_s14   ;;  %s4053_s13 = sphi %s4103_s13, %s6427_s13   ;;  %s4049_s12 = sphi %s4101_s12, %s6426_s12  }
   0x5   : > { %s35_s20 = sadd.s32 1, %s4065_s16  ;;  %s124_s21 = sadd.s32 1, %s4057_s14 }
   0x6   : > { %p37_p0 = scmp.ge.s32.totalorder %s35_s20, 2  ;;  %p134_p1 = scmp.ne.s32.totalorder %s4057_s14, %s4053_s13 }
   0x7   : > { %p135_p2 = scmp.eq.s32.totalorder %s3632_s18, 1  ;;  %p140_p3 = scmp.ne.s32.totalorder %s4053_s13, %s4049_s12 }
   0x8   : > { %s6432_s20 = smov (%p37_p0, %s35_s20), 0  ;;  %p141_p5 = scmp.eq.s32.totalorder %s3633_s19, 1 }
   0x9   : > { %p4141_p4 = por %p135_p2, %p134_p1  ;;  %s117_s23 = ssub.s32 %s4065_s16, %s6432_s20 }
   0xa   : > { %p3638_p6 = scmp.ge.s32.totalorder %s4069_s17, 1  ;;  %p122_p7 = scmp.eq.s32.totalorder %s117_s23, 0 }
   0xb   : > { %p4148_p8 = por %p141_p5, %p140_p3  ;;  %p180_p9 = scmp.lt.s32.totalorder %s4069_s17, 3 }
   0xc   : > { %s4154_s25 = scalar_select %p122_p7, %s4057_s14, %s124_s21  }
   0xd   : > { %p181_p10 = pnand %p3638_p6, %p180_p9 }
   0xf   : > { %184 = sbr.rel (%p181_p10) target bundleno = 893 (0x37d), region = 32 }
  0x14   : > { %p211_p11 = scmp.lt.s32.totalorder %s4061_s15, 1  ;;  %vm277_vm0 = vcmask 27648   ;;  %vm310_vm1 = vsmask.f32 3328  ;;  %vm311_vm2 = vsmask.f32 7440 }
  0x15   : > { %vm4210_vm3 = vmor %vm310_vm1, %vm311_vm2  ;;  %s4071_s4 = smov 4   ;;  %vm874_vm4 = vcmask 1042432   ;;  %vm875_vm5 = vcmask 1046532   ;;  %s4072_s5 = smov 8   ;;  %vm793_vm7 = vcmask 60448   ;;  %vm1085_vm8 = vcmask 93248  }
  0x16   : > { %s212_s26 = scalar_select %p211_p11, %s4061_s15, 1  ;;  %vm4566_vm6 = vmor %vm874_vm4, %vm875_vm5  ;;  %vm1298_vm9 = vcmask 126048   ;;  %vm3272_vm10 = vcmask 1041408   ;;  %vm1811_vm11 = vcmask 158848   ;;  %vm2068_vm12 = vcmask 191648  }
  0x17   : > { %s4073_s6 = smov 12   ;;  %s4074_s7 = smov 16   ;;  %vm2281_vm13 = vcmask 224448   ;;  %vm2794_vm14 = vcmask 257248   ;;  %vm3051_vm15 = vcmask 290048  }
  0x18   : > { %s3892_s27 = smul.u32 216, %s212_s26  ;;  %s4075_s8 = smov 20  }
  0x19   : > { %s4076_s9 = smov 24   ;;  %s4077_s10 = smov 28  }
  0x1a   : > { %s4161_s30 = scalar_lea.vmem %s6389_s0, %s3892_s27  ;;  %s4078_s27 = smov 32  }
  0x1b   : > { %v4164_v0 = vld [vmem:[%s4161_s30 + $0xc] sm:$0xf]  ;;  %v4167_v1 = vld [vmem:[%s4161_s30 + $0x10] sm:$0xf]  ;;  %v4170_v2 = vld [vmem:[%s4161_s30] sm:$0xf] }
  0x1c   : > { %v338_v3 = vshrl.u32 %v4164_v0, 16  ;;  %v341_v4 = vshll.u32 %v4164_v0, 16  ;;  %v347_v5 = vshll.u32 %v4167_v1, 16  ;;  %v4176_v6 = vld [vmem:[%s4161_s30 + $0x4] sm:$0xf]  ;;  %v314_v7 = vshrl.u32 %v4170_v2, 16 }
  0x1d   : > { %280 = vst.msk [vmem:[#allocation2 + $0x8] sm:$0xf] %vm277_vm0, %v4164_v0  ;;  %278 = vst.msk [vmem:[#allocation2] sm:$0xf] %vm277_vm0, %v4170_v2  ;;  %v317_v8 = vshll.u32 %v4170_v2, 16  ;;  %v323_v9 = vshll.u32 %v4176_v6, 16 }
  0x1e   : > { %281 = vst.msk [vmem:[#allocation2 + $0xc] sm:$0xf] %vm277_vm0, %v4167_v1  ;;  %v4188_v10 = vld [vmem:[%s4161_s30 + $0x14] sm:$0x1]  ;;  %v351_v11 = vshrl.u32 %v4167_v1, 16  ;;  %v327_v12 = vshrl.u32 %v4176_v6, 16 }
  0x1f   : > { %279 = vst.msk [vmem:[#allocation2 + $0x4] sm:$0xf] %vm277_vm0, %v4176_v6  ;;  %v340_v13 = vrot.slane %v338_v3, 4  ;;  %v343_v14 = vrot.slane %v341_v4, 5  ;;  %v349_v15 = vrot.slane %v347_v5, 5  ;;  %v316_v16 = vrot.slane %v314_v7, 4 }
  0x20   : > { %v4195_v17 = vld [vmem:[%s4161_s30 + $0x8] sm:$0x1]  ;;  %v319_v18 = vrot.slane %v317_v8, 5  ;;  %v325_v19 = vrot.slane %v323_v9, 5  ;;  %v353_v20 = vrot.slane %v351_v11, 4  ;;  %v357_v21 = vshll.u32 %v4188_v10, 16 }
  0x21   : > { %v4199_v22 = vld [vmem:[%s4161_s30 + $0x1c] sm:$0xf]  ;;  %v344_v23 = vor.u32 %v343_v14, %v340_v13  ;;  %v329_v24 = vrot.slane %v327_v12, 4  ;;  %v333_v25 = vshll.u32 %v4195_v17, 16  ;;  %v4203_v26 = vld [vmem:[%s4161_s30 + $0x20] sm:$0x1] }
  0x22   : > { %v371_v27 = vshll.u32 %v4199_v22, 16  ;;  %283 = vst.msk [vmem:[#allocation2 + $0x14] sm:$0xf] %vm277_vm0, %v4199_v22  ;;  %v320_v29 = vor.u32 %v319_v18, %v316_v16  ;;  %v354_v30 = vor.u32 %v353_v20, %v349_v15  ;;  %v359_v31 = vrot.slane %v357_v21, 5  ;;  %v4216_v33 = vld [vmem:[%s4161_s30 + $0x18] sm:$0xf] }
  0x23   : > { %v375_v32 = vshrl.u32 %v4199_v22, 16  ;;  %v4219_v34 = vld [vmem:[%s4161_s30 + $0x28] sm:$0xf]  ;;  %v345_v35 = vrot.slane %v344_v23, 4  ;;  %v330_v36 = vor.u32 %v329_v24, %v325_v19  ;;  %v335_v37 = vrot.slane %v333_v25, 5  ;;  %s208_s28 = sand.u32 1, %s4053_s13  }
  0x24   : > { %v4221_v38 = vrot.slane %v371_v27, 5  ;;  %v4224_v39 = vld [vmem:[%s4161_s30 + $0x2c] sm:$0x1]  ;;  %282 = vst.msk [vmem:[#allocation2 + $0x10] sm:$0xf] %vm277_vm0, %v4216_v33  ;;  %v321_v40 = vrot.slane %v320_v29, 4 }
  0x25   : > { %285 = vst.msk [vmem:[#allocation2 + $0x1c] sm:$0xf] %vm277_vm0, %v4219_v34  ;;  %v355_v41 = vrot.slane %v354_v30, 4  ;;  %v377_v42 = vrot.slane %v375_v32, 4  ;;  %v381_v43 = vshll.u32 %v4203_v26, 16  ;;  %v350_v45 = vsel %vm4210_vm3, %v345_v35, %v349_v15  ;;  %s4079_s19 = smov [#allocation3]  }
  0x26   : > { %v4232_v44 = vld [vmem:[%s4161_s30 + $0x24] sm:$0xf]  ;;  %v331_v46 = vrot.slane %v330_v36, 4  ;;  %v362_v47 = vshrl.u32 %v4216_v33, 16  ;;  %v365_v48 = vshll.u32 %v4216_v33, 16  ;;  %701 = vrot.lane.b32.xlu1 %v350_v45, %s4071_s4  ;;  %v326_v50 = vsel %vm4210_vm3, %v321_v40, %v325_v19  ;;  %s3997_s21 = sshll.u32 %s4079_s19, 4  ;;  %s3998_s21 = int_to_ptr.vmem [resolvable:$false] %s3997_s21 }
  0x27   : > { %v4239_v49 = vld [vmem:[%s4161_s30 + $0x34] sm:$0xf]  ;;  %284 = vst.msk [vmem:[#allocation2 + $0x18] sm:$0xf] %vm277_vm0, %v4232_v44  ;;  %v360_v51 = vsel %vm4210_vm3, %v355_v41, %v359_v31  ;;  %v378_v52 = vor.u32 %v377_v42, %v4221_v38  ;;  %v383_v53 = vrot.slane %v381_v43, 5  ;;  %697 = vrot.lane.b32.xlu0 %v326_v50, %s4071_s4  ;;  %v395_v58 = vshll.u32 %v4219_v34, 16 }
  0x28   : > { %v4250_v54 = vld [vmem:[%s4161_s30 + $0x30] sm:$0xf]  ;;  %287 = vst.msk [vmem:[#allocation2 + $0x24] sm:$0xf] %vm277_vm0, %v4239_v49  ;;  %v336_v55 = vsel %vm4210_vm3, %v331_v46, %v335_v37  ;;  %v364_v56 = vrot.slane %v362_v47, 4  ;;  %v367_v57 = vrot.slane %v365_v48, 5 }
  0x29   : > { %v4259_v59 = vld [vmem:[%s4161_s30 + $0x40] sm:$0xf]  ;;  %286 = vst.msk [vmem:[#allocation2 + $0x20] sm:$0xf] %vm277_vm0, %v4250_v54  ;;  %v379_v60 = vrot.slane %v378_v52, 4  ;;  %v399_v61 = vshrl.u32 %v4219_v34, 16 }
  0x2a   : > { %v405_v62 = vshll.u32 %v4224_v39, 16  ;;  %v386_v63 = vshrl.u32 %v4232_v44, 16  ;;  %v4267_v3 = vld [vmem:[%s4161_s30 + $0x38] sm:$0x1]  ;;  %289 = vst.msk [vmem:[#allocation2 + $0x2c] sm:$0xf] %vm277_vm0, %v4259_v59  ;;  %v368_v4 = vor.u32 %v367_v57, %v364_v56  ;;  %703 = vrot.lane.b32.xlu1 %v360_v51, %s4071_s4 }
  0x2b   : > { %v397_v5 = vrot.slane %v395_v58, 5  ;;  %v389_v7 = vshll.u32 %v4232_v44, 16  ;;  %v419_v8 = vshll.u32 %v4239_v49, 16  ;;  %v4274_v9 = vld [vmem:[%s4161_s30 + $0x3c] sm:$0xf]  ;;  %v384_v11 = vsel %vm4210_vm3, %v379_v60, %v383_v53  ;;  %699 = vrot.lane.b32.xlu0 %v336_v55, %s4071_s4  ;;  %s3999_s23 = scalar_lea.vmem %s3998_s21, 8192 }
  0x2c   : > { %v401_v12 = vrot.slane %v399_v61, 4  ;;  %v407_v13 = vrot.slane %v405_v62, 5  ;;  %v388_v14 = vrot.slane %v386_v63, 4  ;;  %v4280_v15 = vld [vmem:[%s4161_s30 + $0x4c] sm:$0xf]  ;;  %v369_v16 = vrot.slane %v368_v4, 4 }
  0x2d   : > { %288 = vst.msk [vmem:[#allocation2 + $0x28] sm:$0xf] %vm277_vm0, %v4274_v9  ;;  %v391_v18 = vrot.slane %v389_v7, 5  ;;  %v4285_v19 = vrot.slane %v419_v8, 5  ;;  %v423_v20 = vshrl.u32 %v4239_v49, 16  ;;  %v429_v23 = vshll.u32 %v4267_v3, 16 }
  0x2e   : > { %291 = vst.msk [vmem:[#allocation2 + $0x34] sm:$0xf] %vm277_vm0, %v4280_v15  ;;  %v402_v21 = vor.u32 %v401_v12, %v397_v5  ;;  %v410_v24 = vshrl.u32 %v4250_v54, 16  ;;  %v413_v25 = vshll.u32 %v4250_v54, 16  ;;  %v4294_v27 = vld [vmem:[%s4161_s30 + $0x48] sm:$0xf]  ;;  %v374_v29 = vsel %vm4210_vm3, %v369_v16, %v4221_v38  ;;  %707 = vrot.lane.b32.xlu1 %v384_v11, %s4071_s4 }
  0x2f   : > { %v392_v30 = vor.u32 %v391_v18, %v388_v14  ;;  %v425_v31 = vrot.slane %v423_v20, 4  ;;  %v4300_v32 = vld [vmem:[%s4161_s30 + $0x44] sm:$0x1]  ;;  %v443_v35 = vshll.u32 %v4259_v59, 16  ;;  %v4304_v36 = vld [vmem:[%s4161_s30 + $0x58] sm:$0xf]  ;;  %705 = vrot.lane.b32.xlu0 %v374_v29, %s4071_s4 }
  0x30   : > { %290 = vst.msk [vmem:[#allocation2 + $0x30] sm:$0xf] %vm277_vm0, %v4294_v27  ;;  %v403_v37 = vrot.slane %v402_v21, 4  ;;  %v431_v40 = vrot.slane %v429_v23, 5  ;;  %v412_v41 = vrot.slane %v410_v24, 4  ;;  %v415_v38 = vrot.slane %v413_v25, 5 }
  0x31   : > { %v4310_v42 = vld [vmem:[%s4161_s30 + $0x54] sm:$0xf]  ;;  %293 = vst.msk [vmem:[#allocation2 + $0x3c] sm:$0xf] %vm277_vm0, %v4304_v36  ;;  %v393_v43 = vrot.slane %v392_v30, 4  ;;  %v426_v45 = vor.u32 %v425_v31, %v4285_v19  ;;  %v4316_v46 = vrot.slane %v443_v35, 5 }
  0x32   : > { %v447_v47 = vshrl.u32 %v4259_v59, 16  ;;  %v4320_v48 = vld [vmem:[%s4161_s30 + $0x64] sm:$0xf]  ;;  %292 = vst.msk [vmem:[#allocation2 + $0x38] sm:$0xf] %vm277_vm0, %v4310_v42  ;;  %v408_v50 = vsel %vm4210_vm3, %v403_v37, %v407_v13  ;;  %v416_v51 = vor.u32 %v415_v38, %v412_v41  ;;  %v453_v52 = vshll.u32 %v4300_v32, 16 }
  0x33   : > { %v434_v53 = vshrl.u32 %v4274_v9, 16  ;;  %v4329_v55 = vld [vmem:[%s4161_s30 + $0x50] sm:$0x1]  ;;  %v4332_v56 = vld [vmem:[%s4161_s30 + $0x60] sm:$0xf]  ;;  %v398_v57 = vsel %vm4210_vm3, %v393_v43, %v397_v5  ;;  %v427_v58 = vrot.slane %v426_v45, 4  ;;  %711 = vrot.lane.b32.xlu1 %v408_v50, %s4071_s4 }
  0x34   : > { %295 = vst.msk [vmem:[#allocation2 + $0x44] sm:$0xf] %vm277_vm0, %v4320_v48  ;;  %v449_v60 = vrot.slane %v447_v47, 4  ;;  %v437_v61 = vshll.u32 %v4274_v9, 16  ;;  %v4340_v62 = vld [vmem:[%s4161_s30 + $0x70] sm:$0xf]  ;;  %709 = vrot.lane.b32.xlu0 %v398_v57, %s4071_s4 }
  0x35   : > { %6406 = vst [vmem:[#allocation6_spill] sm:$0xff] %v4340_v62  ;;  %294 = vst.msk [vmem:[#allocation2 + $0x40] sm:$0xf] %vm277_vm0, %v4332_v56  ;;  %v417_v63 = vrot.slane %v416_v51, 4  ;;  %v455_v4 = vrot.slane %v453_v52, 5  ;;  %v436_v7 = vrot.slane %v434_v53, 4  ;;  %v432_v5 = vsel %vm4210_vm3, %v427_v58, %v431_v40 }
  0x36   : > { %v467_v8 = vshll.u32 %v4280_v15, 16  ;;  %297 = vst.msk [vmem:[#allocation2 + $0x4c] sm:$0xf] %vm277_vm0, %v4340_v62  ;;  %v450_v11 = vor.u32 %v449_v60, %v4316_v46  ;;  %v439_v12 = vrot.slane %v437_v61, 5  ;;  %v471_v13 = vshrl.u32 %v4280_v15, 16 }
  0x37   : > { %v4354_v14 = vld [vmem:[%s4161_s30 + $0x6c] sm:$0xf]  ;;  %v4357_v16 = vld [vmem:[%s4161_s30 + $0x7c] sm:$0xf]  ;;  %v422_v18 = vsel %vm4210_vm3, %v417_v63, %v4285_v19  ;;  %v477_v21 = vshll.u32 %v4329_v55, 16  ;;  %v458_v23 = vshrl.u32 %v4294_v27, 16  ;;  %715 = vrot.lane.b32.xlu1 %v432_v5, %s4071_s4 }
  0x38   : > { %6407 = vst [vmem:[#allocation7_spill] sm:$0xff] %v4354_v14  ;;  %v4362_v20 = vrot.slane %v467_v8, 5  ;;  %v4367_v24 = vld [vmem:[%s4161_s30 + $0x5c] sm:$0x1]  ;;  %296 = vst.msk [vmem:[#allocation2 + $0x48] sm:$0xf] %vm277_vm0, %v4354_v14  ;;  %v440_v29 = vor.u32 %v439_v12, %v436_v7  ;;  %713 = vrot.lane.b32.xlu0 %v422_v18, %s4071_s4 }
  0x39   : > { %299 = vst.msk [vmem:[#allocation2 + $0x54] sm:$0xf] %vm277_vm0, %v4357_v16  ;;  %v451_v25 = vrot.slane %v450_v11, 4  ;;  %v473_v30 = vrot.slane %v471_v13, 4  ;;  %v461_v19 = vshll.u32 %v4294_v27, 16  ;;  %v479_v35 = vrot.slane %v477_v21, 5 }
  0x3a   : > { %v4375_v31 = vld [vmem:[%s4161_s30 + $0x78] sm:$0xf]  ;;  %v460_v37 = vrot.slane %v458_v23, 4  ;;  %v491_v40 = vshll.u32 %v4304_v36, 16  ;;  %v495_v41 = vshrl.u32 %v4304_v36, 16  ;;  %v441_v45 = vrot.slane %v440_v29, 4 }
  0x3b   : > { %6408 = vst [vmem:[#allocation8_spill] sm:$0xff] %v4375_v31  ;;  %v4381_v38 = vld [vmem:[%s4161_s30 + $0x88] sm:$0xf]  ;;  %298 = vst.msk [vmem:[#allocation2 + $0x50] sm:$0xf] %vm277_vm0, %v4375_v31  ;;  %v456_v43 = vsel %vm4210_vm3, %v451_v25, %v455_v4  ;;  %v474_v47 = vor.u32 %v473_v30, %v4362_v20  ;;  %v463_v50 = vrot.slane %v461_v19, 5 }
  0x3c   : > { %v4390_v51 = vld [vmem:[%s4161_s30 + $0x84] sm:$0xf]  ;;  %301 = vst.msk [vmem:[#allocation2 + $0x5c] sm:$0xf] %vm277_vm0, %v4381_v38  ;;  %v4394_v52 = vrot.slane %v491_v40, 5  ;;  %v497_v53 = vrot.slane %v495_v41, 4  ;;  %v446_v61 = vsel %vm4210_vm3, %v441_v45, %v4316_v46  ;;  %719 = vrot.lane.b32.xlu1 %v456_v43, %s4071_s4 }
  0x3d   : > { %6409 = vst [vmem:[#allocation9_spill] sm:$0xff] %v4390_v51  ;;  %v501_v57 = vshll.u32 %v4367_v24, 16  ;;  %v482_v58 = vshrl.u32 %v4310_v42, 16  ;;  %v4399_v60 = vld [vmem:[%s4161_s30 + $0x94] sm:$0xf]  ;;  %v475_v63 = vrot.slane %v474_v47, 4  ;;  %v464_v4 = vor.u32 %v463_v50, %v460_v37  ;;  %717 = vrot.lane.b32.xlu0 %v446_v61, %s4071_s4 }
  0x3e   : > { %6410 = vst [vmem:[#allocation10_spill] sm:$0xff] %v4399_v60  ;;  %300 = vst.msk [vmem:[#allocation2 + $0x58] sm:$0xf] %vm277_vm0, %v4390_v51  ;;  %v485_v7 = vshll.u32 %v4310_v42, 16  ;;  %v4408_v8 = vld [vmem:[%s4161_s30 + $0x68] sm:$0x1]  ;;  %v498_v11 = vor.u32 %v497_v53, %v4394_v52 }
  0x3f   : > { %v4411_v5 = vld [vmem:[%s4161_s30 + $0x90] sm:$0xf]  ;;  %303 = vst.msk [vmem:[#allocation2 + $0x64] sm:$0xf] %vm277_vm0, %v4399_v60  ;;  %v503_v12 = vrot.slane %v501_v57, 5  ;;  %v484_v13 = vrot.slane %v482_v58, 4  ;;  %v480_v21 = vsel %vm4210_vm3, %v475_v63, %v479_v35 }
  0x40   : > { %v515_v46 = vshll.u32 %v4320_v48, 16  ;;  %v4419_v18 = vld [vmem:[%s4161_s30 + $0xa0] sm:$0xf]  ;;  %302 = vst.msk [vmem:[#allocation2 + $0x60] sm:$0xf] %vm277_vm0, %v4411_v5  ;;  %v465_v23 = vrot.slane %v464_v4, 4  ;;  %723 = vrot.lane.b32.xlu1 %v480_v21, %s4071_s4 }
  0x41   : > { %v487_v25 = vrot.slane %v485_v7, 5  ;;  %v519_v29 = vshrl.u32 %v4320_v48, 16  ;;  %305 = vst.msk [vmem:[#allocation2 + $0x6c] sm:$0xf] %vm277_vm0, %v4419_v18  ;;  %v499_v30 = vrot.slane %v498_v11, 4  ;;  %v525_v37 = vshll.u32 %v4408_v8, 16 }
  0x42   : > { %v517_v19 = vrot.slane %v515_v46, 5  ;;  %v506_v40 = vshrl.u32 %v4332_v56, 16  ;;  %v4432_v41 = vld [vmem:[%s4161_s30 + $0x9c] sm:$0xf]  ;;  %v470_v35 = vsel %vm4210_vm3, %v465_v23, %v4362_v20  ;;  %v509_v47 = vshll.u32 %v4332_v56, 16 }
  0x43   : > { %6411 = vst [vmem:[#allocation11_spill] sm:$0xff] %v4432_v41  ;;  %v488_v43 = vor.u32 %v487_v25, %v484_v13  ;;  %v521_v45 = vrot.slane %v519_v29, 4  ;;  %v4439_v50 = vld [vmem:[%s4161_s30 + $0x74] sm:$0x1]  ;;  %v4442_v53 = vld [vmem:[%s4161_s30 + $0xac] sm:$0xf]  ;;  %v504_v57 = vsel %vm4210_vm3, %v499_v30, %v503_v12  ;;  %721 = vrot.lane.b32.xlu0 %v470_v35, %s4071_s4 }
  0x44   : > { %6412 = vst [vmem:[#allocation12_spill] sm:$0xff] %v4439_v50  ;;  %304 = vst.msk [vmem:[#allocation2 + $0x68] sm:$0xf] %vm277_vm0, %v4432_v41  ;;  %v527_v58 = vrot.slane %v525_v37, 5  ;;  %v508_v61 = vrot.slane %v506_v40, 4  ;;  %v539_v20 = vshll.u32 %v4340_v62, 16  ;;  %727 = vrot.lane.b32.xlu1 %v504_v57, %s4071_s4 }
  0x45   : > { %v4451_v63 = vld [vmem:[%s4161_s30 + $0xa8] sm:$0xf]  ;;  %307 = vst.msk [vmem:[#allocation2 + $0x74] sm:$0xf] %vm277_vm0, %v4442_v53  ;;  %v489_v4 = vrot.slane %v488_v43, 4  ;;  %v522_v7 = vor.u32 %v521_v45, %v517_v19  ;;  %v511_v11 = vrot.slane %v509_v47, 5 }
  0x46   : > { %6413 = vst [vmem:[#allocation13_spill] sm:$0xff] %v4451_v63  ;;  %v543_v13 = vshrl.u32 %v4340_v62, 16  ;;  %v4458_v46 = vld [vmem:[%s4161_s30 + $0xb8] sm:$0xf]  ;;  %306 = vst.msk [vmem:[#allocation2 + $0x70] sm:$0xf] %vm277_vm0, %v4451_v63 }
  0x47   : > { %v541_v12 = vrot.slane %v539_v20, 5  ;;  %v549_v21 = vshll.u32 %v4439_v50, 16  ;;  %v530_v23 = vshrl.u32 %v4354_v14, 16  ;;  %v533_v25 = vshll.u32 %v4354_v14, 16  ;;  %309 = vst.msk [vmem:[#allocation2 + $0x7c] sm:$0xf] %vm277_vm0, %v4458_v46 }
  0x48   : > { %v494_v29 = vsel %vm4210_vm3, %v489_v4, %v4394_v52  ;;  %v523_v30 = vrot.slane %v522_v7, 4  ;;  %v512_v37 = vor.u32 %v511_v11, %v508_v61  ;;  %v545_v40 = vrot.slane %v543_v13, 4  ;;  %v4471_v35 = vld [vmem:[%s4161_s30 + $0x80] sm:$0x1]  ;;  %v4474_v43 = vld [vmem:[%s4161_s30 + $0xb4] sm:$0xf] }
  0x49   : > { %v551_v45 = vrot.slane %v549_v21, 5  ;;  %v532_v47 = vrot.slane %v530_v23, 4  ;;  %v535_v20 = vrot.slane %v533_v25, 5  ;;  %v563_v14 = vshll.u32 %v4357_v16, 16  ;;  %308 = vst.msk [vmem:[#allocation2 + $0x78] sm:$0xf] %vm277_vm0, %v4474_v43  ;;  %725 = vrot.lane.b32.xlu0 %v494_v29, %s4071_s4 }
  0x4a   : > { %v528_v52 = vsel %vm4210_vm3, %v523_v30, %v527_v58  ;;  %v513_v61 = vrot.slane %v512_v37, 4  ;;  %v546_v4 = vor.u32 %v545_v40, %v541_v12  ;;  %v567_v7 = vshrl.u32 %v4357_v16, 16  ;;  %v4490_v62 = vld [vmem:[%s4161_s30 + $0x8c] sm:$0x1] }
  0x4b   : > { %v536_v11 = vor.u32 %v535_v20, %v532_v47  ;;  %v565_v57 = vrot.slane %v563_v14, 5  ;;  %v573_v13 = vshll.u32 %v4471_v35, 16  ;;  %v554_v21 = vshrl.u32 %v4375_v31, 16  ;;  %731 = vrot.lane.b32.xlu1 %v528_v52, %s4071_s4 }
  0x4c   : > { %v518_v23 = vsel %vm4210_vm3, %v513_v61, %v517_v19  ;;  %v547_v25 = vrot.slane %v546_v4, 4  ;;  %v569_v50 = vrot.slane %v567_v7, 4  ;;  %v557_v29 = vshll.u32 %v4375_v31, 16  ;;  %v4504_v31 = vld [vmem:[%s4161_s30 + $0x98] sm:$0x1] }
  0x4d   : > { %v537_v58 = vrot.slane %v536_v11, 4  ;;  %v575_v30 = vrot.slane %v573_v13, 5  ;;  %v556_v37 = vrot.slane %v554_v21, 4  ;;  %v587_v14 = vshll.u32 %v4381_v38, 16  ;;  %729 = vrot.lane.b32.xlu0 %v518_v23, %s4071_s4 }
  0x4e   : > { %v552_v40 = vsel %vm4210_vm3, %v547_v25, %v551_v45  ;;  %v570_v19 = vor.u32 %v569_v50, %v565_v57  ;;  %v559_v47 = vrot.slane %v557_v29, 5  ;;  %v591_v20 = vshrl.u32 %v4381_v38, 16 }
  0x4f   : > { %v542_v61 = vsel %vm4210_vm3, %v537_v58, %v541_v12  ;;  %v589_v4 = vrot.slane %v587_v14, 5  ;;  %v597_v52 = vshll.u32 %v4490_v62, 16  ;;  %v578_v7 = vshrl.u32 %v4390_v51, 16  ;;  %735 = vrot.lane.b32.xlu1 %v552_v40, %s4071_s4 }
  0x50   : > { %v571_v11 = vrot.slane %v570_v19, 4  ;;  %v560_v13 = vor.u32 %v559_v47, %v556_v37  ;;  %v593_v21 = vrot.slane %v591_v20, 4  ;;  %v581_v23 = vshll.u32 %v4390_v51, 16 }
  0x51   : > { %v599_v50 = vrot.slane %v597_v52, 5  ;;  %v580_v45 = vrot.slane %v578_v7, 4  ;;  %v611_v25 = vshll.u32 %v4399_v60, 16  ;;  %v615_v12 = vshrl.u32 %v4399_v60, 16  ;;  %733 = vrot.lane.b32.xlu0 %v542_v61, %s4071_s4  ;;  %v4518_v61 = vld [vmem:[%s4161_s30 + $0xa4] sm:$0x1] }
  0x52   : > { %v576_v29 = vsel %vm4210_vm3, %v571_v11, %v575_v30  ;;  %v561_v58 = vrot.slane %v560_v13, 4  ;;  %v594_v37 = vor.u32 %v593_v21, %v589_v4  ;;  %v583_v14 = vrot.slane %v581_v23, 5 }
  0x53   : > { %v613_v19 = vrot.slane %v611_v25, 5  ;;  %v617_v47 = vrot.slane %v615_v12, 4  ;;  %v621_v20 = vshll.u32 %v4504_v31, 16  ;;  %v602_v40 = vshrl.u32 %v4411_v5, 16  ;;  %739 = vrot.lane.b32.xlu1 %v576_v29, %s4071_s4 }
  0x54   : > { %v566_v52 = vsel %vm4210_vm3, %v561_v58, %v565_v57  ;;  %v595_v7 = vrot.slane %v594_v37, 4  ;;  %v584_v51 = vor.u32 %v583_v14, %v580_v45  ;;  %v605_v60 = vshll.u32 %v4411_v5, 16 }
  0x55   : > { %v618_v30 = vor.u32 %v617_v47, %v613_v19  ;;  %v623_v11 = vrot.slane %v621_v20, 5  ;;  %v604_v13 = vrot.slane %v602_v40, 4  ;;  %v635_v21 = vshll.u32 %v4419_v18, 16  ;;  %737 = vrot.lane.b32.xlu0 %v566_v52, %s4071_s4 }
  0x56   : > { %v600_v23 = vsel %vm4210_vm3, %v595_v7, %v599_v50  ;;  %v585_v57 = vrot.slane %v584_v51, 4  ;;  %v607_v25 = vrot.slane %v605_v60, 5  ;;  %v639_v45 = vshrl.u32 %v4419_v18, 16  ;;  %v4532_v50 = vld [vmem:[%s4161_s30 + $0xb0] sm:$0x1] }
  0x57   : > { %v619_v12 = vrot.slane %v618_v30, 4  ;;  %v637_v58 = vrot.slane %v635_v21, 5  ;;  %v645_v37 = vshll.u32 %v4518_v61, 16  ;;  %v626_v29 = vshrl.u32 %v4432_v41, 16  ;;  %6414 = vst [vmem:[#allocation14_spill] sm:$0xff] %v4532_v50  ;;  %743 = vrot.lane.b32.xlu1 %v600_v23, %s4071_s4 }
  0x58   : > { %v590_v14 = vsel %vm4210_vm3, %v585_v57, %v589_v4  ;;  %v608_v47 = vor.u32 %v607_v25, %v604_v13  ;;  %v641_v20 = vrot.slane %v639_v45, 4  ;;  %v629_v40 = vshll.u32 %v4432_v41, 16  ;;  %v4546_v41 = vld [vmem:[%s4161_s30 + $0xbc] sm:$0x1] }
  0x59   : > { %v624_v51 = vsel %vm4210_vm3, %v619_v12, %v623_v11  ;;  %v647_v60 = vrot.slane %v645_v37, 5  ;;  %v628_v52 = vrot.slane %v626_v29, 4  ;;  %v659_v7 = vshll.u32 %v4442_v53, 16  ;;  %741 = vrot.lane.b32.xlu0 %v590_v14, %s4071_s4 }
  0x5a   : > { %v609_v30 = vrot.slane %v608_v47, 4  ;;  %v642_v4 = vor.u32 %v641_v20, %v637_v58  ;;  %v631_v13 = vrot.slane %v629_v40, 5  ;;  %v663_v21 = vshrl.u32 %v4442_v53, 16 }
  0x5b   : > { %v661_v57 = vrot.slane %v659_v7, 5  ;;  %v669_v25 = vshll.u32 %v4532_v50, 16  ;;  %v650_v23 = vshrl.u32 %v4451_v63, 16  ;;  %v653_v45 = vshll.u32 %v4451_v63, 16  ;;  %747 = vrot.lane.b32.xlu1 %v624_v51, %s4071_s4 }
  0x5c   : > { %v614_v11 = vsel %vm4210_vm3, %v609_v30, %v613_v19  ;;  %v643_v12 = vrot.slane %v642_v4, 4  ;;  %v632_v37 = vor.u32 %v631_v13, %v628_v52  ;;  %v665_v29 = vrot.slane %v663_v21, 4 }
  0x5d   : > { %v671_v14 = vrot.slane %v669_v25, 5  ;;  %v652_v47 = vrot.slane %v650_v23, 4  ;;  %v655_v20 = vrot.slane %v653_v45, 5  ;;  %v683_v40 = vshll.u32 %v4458_v46, 16  ;;  %745 = vrot.lane.b32.xlu0 %v614_v11, %s4071_s4 }
  0x5e   : > { %v648_v7 = vsel %vm4210_vm3, %v643_v12, %v647_v60  ;;  %v633_v63 = vrot.slane %v632_v37, 4  ;;  %v666_v50 = vor.u32 %v665_v29, %v661_v57  ;;  %v687_v19 = vshrl.u32 %v4458_v46, 16 }
  0x5f   : > { %v656_v52 = vor.u32 %v655_v20, %v652_v47  ;;  %v685_v30 = vrot.slane %v683_v40, 5  ;;  %v693_v4 = vshll.u32 %v4546_v41, 16  ;;  %v674_v51 = vshrl.u32 %v4474_v43, 16  ;;  %751 = vrot.lane.b32.xlu1 %v648_v7, %s4071_s4 }
  0x60   : > { %v638_v13 = vsel %vm4210_vm3, %v633_v63, %v637_v58  ;;  %v667_v21 = vrot.slane %v666_v50, 4  ;;  %v689_v25 = vrot.slane %v687_v19, 4  ;;  %v677_v23 = vshll.u32 %v4474_v43, 16 }
  0x61   : > { %v657_v60 = vrot.slane %v656_v52, 4  ;;  %v695_v45 = vrot.slane %v693_v4, 5  ;;  %v676_v11 = vrot.slane %v674_v51, 4  ;;  %v879_v12 = vrot.slane %v4176_v6, 5  ;;  %749 = vrot.lane.b32.xlu0 %v638_v13, %s4071_s4 }
  0x62   : > { %v672_v37 = vsel %vm4210_vm3, %v667_v21, %v671_v14  ;;  %v690_v29 = vor.u32 %v689_v25, %v685_v30  ;;  %v679_v47 = vrot.slane %v677_v23, 5  ;;  %v882_v58 = vrot.slane %v4195_v17, 5 }
  0x63   : > { %v662_v50 = vsel %vm4210_vm3, %v657_v60, %v661_v57  ;;  %v881_v20 = vrot.slane %v879_v12, 4  ;;  %v3641_v6 = vrot.slane %v4170_v2, 9  ;;  %v886_v40 = vrot.slane %v4167_v1, 5  ;;  %755 = vrot.lane.b32.xlu1 %v672_v37, %s4071_s4 }
  0x64   : > { %v691_v7 = vrot.slane %v690_v29, 4  ;;  %v680_v14 = vor.u32 %v679_v47, %v676_v11  ;;  %v889_v19 = vrot.slane %v4188_v10, 5  ;;  %v3642_v52 = vrot.slane %v4164_v0, 9 }
  0x65   : > { %v883_v4 = vsel %vm4566_vm6, %v881_v20, %v882_v58  ;;  %v880_v17 = vsel %vm4566_vm6, %v3641_v6, %v879_v12  ;;  %v888_v57 = vrot.slane %v886_v40, 4  ;;  %v893_v51 = vrot.slane %v4199_v22, 5  ;;  %753 = vrot.lane.b32.xlu0 %v662_v50, %s4071_s4 }
  0x66   : > { %v696_v1 = vsel %vm4210_vm3, %v691_v7, %v695_v45  ;;  %v681_v2 = vrot.slane %v680_v14, 4  ;;  %v887_v0 = vsel %vm4566_vm6, %v3642_v52, %v886_v40  ;;  %v896_v10 = vrot.slane %v4203_v26, 5 }
  0x67   : > { %v890_v13 = vsel %vm4566_vm6, %v888_v57, %v889_v19  ;;  %v895_v21 = vrot.slane %v893_v51, 4  ;;  %v3643_v25 = vrot.slane %v4216_v33, 9  ;;  %v900_v23 = vrot.slane %v4219_v34, 5  ;;  %759 = vrot.lane.b32.xlu1 %v696_v1, %s4071_s4  ;;  %v6419_v1 = vld [vmem:[#allocation7_spill] sm:$0xff] }
  0x68   : > { %v686_v22 = vsel %vm4210_vm3, %v681_v2, %v685_v30  ;;  %v903_v60 = vrot.slane %v4224_v39, 5  ;;  %v3644_v45 = vrot.slane %v4232_v44, 9  ;;  %v907_v11 = vrot.slane %v4239_v49, 5 }
  0x69   : > { %v897_v26 = vsel %vm4566_vm6, %v895_v21, %v896_v10  ;;  %v894_v12 = vsel %vm4566_vm6, %v3643_v25, %v893_v51  ;;  %v902_v33 = vrot.slane %v900_v23, 4  ;;  %v910_v34 = vrot.slane %v4267_v3, 5  ;;  %757 = vrot.lane.b32.xlu0 %v686_v22, %s4071_s4  ;;  %v6420_v22 = vld [vmem:[#allocation8_spill] sm:$0xff]  ;;  %s3639_s4 = sshll.u32 %s208_s28, 8 }
  0x6a   : > { %v4607_v39 = vsel %vm4566_vm6, %v3644_v45, %v900_v23  ;;  %v909_v44 = vrot.slane %v907_v11, 4  ;;  %v3645_v49 = vrot.slane %v4250_v54, 9  ;;  %v914_v30 = vrot.slane %v4259_v59, 5 }
  0x6b   : > { %v904_v37 = vsel %vm4566_vm6, %v902_v33, %v903_v60  ;;  %v917_v29 = vrot.slane %v4300_v32, 5  ;;  %v3646_v47 = vrot.slane %v4274_v9, 9  ;;  %v921_v3 = vrot.slane %v4280_v15, 5  ;;  %991 = vrot.lane.b32.xlu1 %v883_v4, %s4072_s5 }
  0x6c   : > { %v4618_v58 = vsel %vm4566_vm6, %v909_v44, %v910_v34  ;;  %v4622_v50 = vsel %vm4566_vm6, %v3645_v49, %v907_v11  ;;  %v916_v54 = vrot.slane %v914_v30, 4  ;;  %v924_v59 = vrot.slane %v4329_v55, 5  ;;  %v6421_v11 = vld [vmem:[#allocation9_spill] sm:$0xff]  ;;  %v6422_v34 = vld [vmem:[#allocation10_spill] sm:$0xff] }
  0x6d   : > { %v4628_v32 = vsel %vm4566_vm6, %v3646_v47, %v914_v30  ;;  %v923_v9 = vrot.slane %v921_v3, 4  ;;  %v3647_v15 = vrot.slane %v4294_v27, 9  ;;  %v928_v20 = vrot.slane %v4304_v36, 5  ;;  %989 = vrot.lane.b32.xlu0 %v880_v17, %s4072_s5 }
  0x6e   : > { %v4635_v6 = vsel %vm4566_vm6, %v916_v54, %v917_v29  ;;  %v931_v55 = vrot.slane %v4367_v24, 5  ;;  %v3648_v40 = vrot.slane %v4310_v42, 9  ;;  %v935_v7 = vrot.slane %v4320_v48, 5  ;;  %v6417_v24 = vld [vmem:[#allocation6_spill] sm:$0xff]  ;;  %v6418_v48 = vld [vmem:[#allocation12_spill] sm:$0xff] }
  0x6f   : > { %v925_v14 = vsel %vm4566_vm6, %v923_v9, %v924_v59  ;;  %v922_v27 = vsel %vm4566_vm6, %v3647_v15, %v921_v3  ;;  %v930_v19 = vrot.slane %v928_v20, 4  ;;  %v938_v36 = vrot.slane %v4408_v8, 5  ;;  %995 = vrot.lane.b32.xlu1 %v890_v13, %s4072_s5  ;;  %v6423_v59 = vld [vmem:[#allocation11_spill] sm:$0xff] }
  0x70   : > { %v929_v52 = vsel %vm4566_vm6, %v3648_v40, %v928_v20  ;;  %v937_v4 = vrot.slane %v935_v7, 4  ;;  %v3649_v17 = vrot.slane %v4332_v56, 9  ;;  %v942_v57 = vrot.slane %v6417_v24, 5 }
  0x71   : > { %v932_v42 = vsel %vm4566_vm6, %v930_v19, %v931_v55  ;;  %v945_v51 = vrot.slane %v6418_v48, 5  ;;  %v3650_v2 = vrot.slane %v6419_v1, 9  ;;  %v949_v10 = vrot.slane %v4357_v16, 5  ;;  %993 = vrot.lane.b32.xlu0 %v887_v0, %s4072_s5  ;;  %v6424_v55 = vld [vmem:[#allocation14_spill] sm:$0xff]  ;;  %v4758_v48 = vld [vmem:[%s4161_s30 + $0x1c] sm:$0xf] }
  0x72   : > { %v939_v8 = vsel %vm4566_vm6, %v937_v4, %v938_v36  ;;  %v936_v56 = vsel %vm4566_vm6, %v3649_v17, %v935_v7  ;;  %v944_v21 = vrot.slane %v942_v57, 4  ;;  %v952_v13 = vrot.slane %v4471_v35, 5 }
  0x73   : > { %v943_v25 = vsel %vm4566_vm6, %v3650_v2, %v942_v57  ;;  %v951_v23 = vrot.slane %v949_v10, 4  ;;  %v3651_v60 = vrot.slane %v6420_v22, 9  ;;  %v956_v45 = vrot.slane %v4381_v38, 5  ;;  %999 = vrot.lane.b32.xlu1 %v897_v26, %s4072_s5  ;;  %v4762_v2 = vld [vmem:[%s4161_s30 + $0x18] sm:$0xf] }
  0x74   : > { %v946_v16 = vsel %vm4566_vm6, %v944_v21, %v945_v51  ;;  %v959_v0 = vrot.slane %v4490_v62, 5  ;;  %v3652_v33 = vrot.slane %v6421_v11, 9  ;;  %v963_v44 = vrot.slane %v6422_v34, 5 }
  0x75   : > { %v953_v35 = vsel %vm4566_vm6, %v951_v23, %v952_v13  ;;  %v950_v49 = vsel %vm4566_vm6, %v3651_v60, %v949_v10  ;;  %v958_v30 = vrot.slane %v956_v45, 4  ;;  %v966_v38 = vrot.slane %v4504_v31, 5  ;;  %997 = vrot.lane.b32.xlu0 %v894_v12, %s4072_s5  ;;  %v4779_v13 = vld [vmem:[%s4161_s30 + $0x28] sm:$0xf]  ;;  %v4782_v23 = vld [vmem:[%s4161_s30 + $0x24] sm:$0xf] }
  0x76   : > { %v957_v62 = vsel %vm4566_vm6, %v3652_v33, %v956_v45  ;;  %v965_v29 = vrot.slane %v963_v44, 4  ;;  %v3653_v47 = vrot.slane %v4411_v5, 9  ;;  %v970_v3 = vrot.slane %v4419_v18, 5  ;;  %v4797_v45 = vld [vmem:[%s4161_s30 + $0x34] sm:$0xf] }
  0x77   : > { %v960_v26 = vsel %vm4566_vm6, %v958_v30, %v959_v0  ;;  %v973_v54 = vrot.slane %v4518_v61, 5  ;;  %v3654_v9 = vrot.slane %v6423_v59, 9  ;;  %v977_v15 = vrot.slane %v4442_v53, 5  ;;  %1003 = vrot.lane.b32.xlu1 %v904_v37, %s4072_s5  ;;  %v6425_v61 = vld [vmem:[#allocation13_spill] sm:$0xff]  ;;  %v4800_v0 = vld [vmem:[%s4161_s30 + $0x30] sm:$0xf] }
  0x78   : > { %v967_v31 = vsel %vm4566_vm6, %v965_v29, %v966_v38  ;;  %v964_v12 = vsel %vm4566_vm6, %v3653_v47, %v963_v44  ;;  %v972_v20 = vrot.slane %v970_v3, 4  ;;  %v980_v5 = vrot.slane %v6424_v55, 5  ;;  %v4809_v33 = vld [vmem:[%s4161_s30 + $0x40] sm:$0xf]  ;;  %v4812_v44 = vld [vmem:[%s4161_s30 + $0x3c] sm:$0xf] }
  0x79   : > { %v971_v18 = vsel %vm4566_vm6, %v3654_v9, %v970_v3  ;;  %v979_v40 = vrot.slane %v977_v15, 4  ;;  %v3655_v7 = vrot.slane %v6425_v61, 9  ;;  %v984_v19 = vrot.slane %v4458_v46, 5  ;;  %1001 = vrot.lane.b32.xlu0 %v4607_v39, %s4072_s5  ;;  %v4824_v38 = vld [vmem:[%s4161_s30 + $0x48] sm:$0xf] }
  0x7a   : > { %v974_v53 = vsel %vm4566_vm6, %v972_v20, %v973_v54  ;;  %v987_v36 = vrot.slane %v4546_v41, 5  ;;  %v3656_v4 = vrot.slane %v4474_v43, 9  ;;  %v1869_v21 = vrot.slane %v4758_v48, 5  ;;  %v3676_v29 = vld [vmem:[%s4161_s30 + $0x58] sm:$0xf] }
  0x7b   : > { %v981_v37 = vsel %vm4566_vm6, %v979_v40, %v980_v5  ;;  %v978_v17 = vsel %vm4566_vm6, %v3655_v7, %v977_v15  ;;  %v986_v24 = vrot.slane %v984_v19, 4  ;;  %1007 = vrot.lane.b32.xlu1 %v4618_v58, %s4072_s5  ;;  %v3675_v3 = vld [vmem:[%s4161_s30 + $0x54] sm:$0xf]  ;;  %v3679_v54 = vld [vmem:[%s4161_s30 + $0x64] sm:$0xf]  ;;  %vm3223_vm0 = vcmask 293888  }
  0x7c   : > { %v985_v46 = vsel %vm4566_vm6, %v3656_v4, %v984_v19  ;;  %v3678_v9 = vld [vmem:[%s4161_s30 + $0x60] sm:$0xf]  ;;  %v4849_v55 = vld [vmem:[%s4161_s30 + $0x6c] sm:$0xf]  ;;  %v4859_v40 = vld [vmem:[%s4161_s30 + $0x7c] sm:$0xf] }
  0x7d   : > { %v988_v39 = vsel %vm4566_vm6, %v986_v24, %v987_v36  ;;  %1005 = vrot.lane.b32.xlu0 %v4622_v50, %s4072_s5  ;;  %v4862_v7 = vld [vmem:[%s4161_s30 + $0x78] sm:$0xf]  ;;  %v4865_v19 = vld [vmem:[%s4161_s30 + $0x2c] sm:$0x1] }
  0x7e   : > { %v1879_v4 = vrot.slane %v4865_v19, 5 }
  0x7f   : > { %1011 = vrot.lane.b32.xlu1 %v4635_v6, %s4072_s5 }
  0x81   : > { %1009 = vrot.lane.b32.xlu0 %v4628_v32, %s4072_s5 }
  0x83   : > { %1015 = vrot.lane.b32.xlu1 %v925_v14, %s4072_s5  ;;  %v4745_v14 = vld [vmem:[%s4161_s30 + $0x10] sm:$0xf] }
  0x84   : > { %v1862_v51 = vrot.slane %v4745_v14, 5 }
  0x85   : > { %1013 = vrot.lane.b32.xlu0 %v922_v27, %s4072_s5 }
  0x87   : > { %1019 = vrot.lane.b32.xlu1 %v932_v42, %s4072_s5 }
  0x89   : > { %1017 = vrot.lane.b32.xlu0 %v929_v52, %s4072_s5  ;;  %v4748_v52 = vld [vmem:[%s4161_s30 + $0xc] sm:$0xf] }
  0x8a   : > { %v3705_v42 = vrot.slane %v4748_v52, 9 }
  0x8b   : > { %1023 = vrot.lane.b32.xlu1 %v939_v8, %s4072_s5  ;;  %v3706_v8 = vrot.slane %v4762_v2, 9 }
  0x8d   : > { %1021 = vrot.lane.b32.xlu0 %v936_v56, %s4072_s5  ;;  %v4773_v56 = vsel %vm4566_vm6, %v3705_v42, %v1862_v51  ;;  %v4789_v60 = vsel %vm4566_vm6, %v3706_v8, %v1869_v21 }
  0x8f   : > { %1027 = vrot.lane.b32.xlu1 %v946_v16, %s4072_s5 }
  0x91   : > { %1025 = vrot.lane.b32.xlu0 %v943_v25, %s4072_s5 }
  0x93   : > { %1031 = vrot.lane.b32.xlu1 %v953_v35, %s4072_s5 }
  0x95   : > { %1029 = vrot.lane.b32.xlu0 %v950_v49, %s4072_s5  ;;  %v4821_v49 = vld [vmem:[%s4161_s30 + $0x4c] sm:$0xf] }
  0x97   : > { %1035 = vrot.lane.b32.xlu1 %v960_v26, %s4072_s5 }
  0x98   : > { %v702_v41 = vpop.permute.xlu1 %701 }
  0x99   : > { %1033 = vrot.lane.b32.xlu0 %v957_v62, %s4072_s5  ;;  %796 = vst.msk [vmem:[#allocation2 + $0x8] sm:$0xf] %vm793_vm7, %v702_v41  ;;  %v698_v43 = vpop.permute.xlu0 %697  ;;  %v4887_v41 = vld [vmem:[%s4161_s30 + $0x84] sm:$0xf] }
  0x9a   : > { %794 = vst.msk [vmem:[#allocation2] sm:$0xf] %vm793_vm7, %v698_v43 }
  0x9b   : > { %1039 = vrot.lane.b32.xlu1 %v967_v31, %s4072_s5  ;;  %v4845_v31 = vld [vmem:[%s4161_s30 + $0x70] sm:$0xf] }
  0x9c   : > { %v704_v58 = vpop.permute.xlu1 %703 }
  0x9d   : > { %1037 = vrot.lane.b32.xlu0 %v964_v12, %s4072_s5  ;;  %797 = vst.msk [vmem:[#allocation2 + $0xc] sm:$0xf] %vm793_vm7, %v704_v58  ;;  %v700_v50 = vpop.permute.xlu0 %699  ;;  %v1876_v12 = vrot.slane %v4779_v13, 5  ;;  %v3708_v58 = vrot.slane %v4800_v0, 9 }
  0x9e   : > { %795 = vst.msk [vmem:[#allocation2 + $0x4] sm:$0xf] %vm793_vm7, %v700_v50  ;;  %v4897_v50 = vld [vmem:[%s4161_s30 + $0x94] sm:$0xf] }
  0x9f   : > { %1043 = vrot.lane.b32.xlu1 %v974_v53, %s4072_s5  ;;  %v1878_v53 = vrot.slane %v1876_v12, 4 }
  0xa0   : > { %v708_v32 = vpop.permute.xlu1 %707 }
  0xa1   : > { %1041 = vrot.lane.b32.xlu0 %v971_v18, %s4072_s5  ;;  %799 = vst.msk [vmem:[#allocation2 + $0x14] sm:$0xf] %vm793_vm7, %v708_v32  ;;  %v706_v6 = vpop.permute.xlu0 %705  ;;  %v3707_v18 = vrot.slane %v4782_v23, 9  ;;  %v4883_v24 = vsel %vm4566_vm6, %v1878_v53, %v1879_v4  ;;  %v4900_v32 = vld [vmem:[%s4161_s30 + $0x38] sm:$0x1]  ;;  %v1389_v53 = vshll.u32 %v4779_v13, 16 }
  0xa2   : > { %798 = vst.msk [vmem:[#allocation2 + $0x10] sm:$0xf] %vm793_vm7, %v706_v6  ;;  %v1886_v42 = vrot.slane %v4900_v32, 5  ;;  %v3700_v4 = vld [vmem:[%s4161_s30 + $0xb8] sm:$0xf] }
  0xa3   : > { %1047 = vrot.lane.b32.xlu1 %v981_v37, %s4072_s5  ;;  %v4874_v37 = vsel %vm4566_vm6, %v3707_v18, %v1876_v12  ;;  %v1359_v12 = vshll.u32 %v4762_v2, 16 }
  0xa5   : > { %1045 = vrot.lane.b32.xlu0 %v978_v17, %s4072_s5  ;;  %v712_v27 = vpop.permute.xlu1 %711  ;;  %v4879_v17 = vld [vmem:[%s4161_s30 + $0x88] sm:$0xf] }
  0xa6   : > { %801 = vst.msk [vmem:[#allocation2 + $0x1c] sm:$0xf] %vm793_vm7, %v712_v27  ;;  %v710_v57 = vpop.permute.xlu0 %709  ;;  %v4903_v27 = vld [vmem:[%s4161_s30 + $0x90] sm:$0xf] }
  0xa7   : > { %1051 = vrot.lane.b32.xlu1 %v988_v39, %s4072_s5  ;;  %800 = vst.msk [vmem:[#allocation2 + $0x18] sm:$0xf] %vm793_vm7, %v710_v57 }
  0xa9   : > { %1049 = vrot.lane.b32.xlu0 %v985_v46, %s4072_s5  ;;  %v716_v1 = vpop.permute.xlu1 %715  ;;  %v1883_v46 = vrot.slane %v4797_v45, 5 }
  0xaa   : > { %803 = vst.msk [vmem:[#allocation2 + $0x24] sm:$0xf] %vm793_vm7, %v716_v1  ;;  %v714_v10 = vpop.permute.xlu0 %713 }
  0xab   : > { %1204 = vrot.lane.b32.xlu1 %v4745_v14, %s4073_s6  ;;  %802 = vst.msk [vmem:[#allocation2 + $0x20] sm:$0xf] %vm793_vm7, %v714_v10  ;;  %v1885_v57 = vrot.slane %v1883_v46, 4  ;;  %v4916_v8 = vsel %vm4566_vm6, %v3708_v58, %v1883_v46 }
  0xad   : > { %1202 = vrot.lane.b32.xlu0 %v4748_v52, %s4073_s6  ;;  %v4912_v10 = vsel %vm4566_vm6, %v1885_v57, %v1886_v42  ;;  %v1380_v57 = vshrl.u32 %v4782_v23, 16 }
  0xae   : > { %v720_v25 = vpop.permute.xlu1 %719 }
  0xaf   : > { %1208 = vrot.lane.b32.xlu1 %v4758_v48, %s4073_s6  ;;  %805 = vst.msk [vmem:[#allocation2 + $0x2c] sm:$0xf] %vm793_vm7, %v720_v25  ;;  %v718_v22 = vpop.permute.xlu0 %717  ;;  %v1341_v25 = vshll.u32 %v4745_v14, 16 }
  0xb0   : > { %804 = vst.msk [vmem:[#allocation2 + $0x28] sm:$0xf] %vm793_vm7, %v718_v22  ;;  %v1345_v22 = vshrl.u32 %v4745_v14, 16 }
  0xb1   : > { %1206 = vrot.lane.b32.xlu0 %v4762_v2, %s4073_s6 }
  0xb2   : > { %v724_v16 = vpop.permute.xlu1 %723 }
  0xb3   : > { %1212 = vrot.lane.b32.xlu1 %v4779_v13, %s4073_s6  ;;  %807 = vst.msk [vmem:[#allocation2 + $0x34] sm:$0xf] %vm793_vm7, %v724_v16  ;;  %v3694_v16 = vld [vmem:[%s4161_s30 + $0xa0] sm:$0xf] }
  0xb5   : > { %1210 = vrot.lane.b32.xlu0 %v4782_v23, %s4073_s6  ;;  %v722_v11 = vpop.permute.xlu0 %721 }
  0xb6   : > { %806 = vst.msk [vmem:[#allocation2 + $0x30] sm:$0xf] %vm793_vm7, %v722_v11  ;;  %v728_v34 = vpop.permute.xlu1 %727  ;;  %v1332_v11 = vshrl.u32 %v4748_v52, 16 }
  0xb7   : > { %1216 = vrot.lane.b32.xlu1 %v4797_v45, %s4073_s6  ;;  %809 = vst.msk [vmem:[#allocation2 + $0x3c] sm:$0xf] %vm793_vm7, %v728_v34  ;;  %v1335_v34 = vshll.u32 %v4748_v52, 16  ;;  %v1356_v52 = vshrl.u32 %v4762_v2, 16 }
  0xb9   : > { %1214 = vrot.lane.b32.xlu0 %v4800_v0, %s4073_s6  ;;  %v1358_v2 = vrot.slane %v1356_v52, 4 }
  0xbb   : > { %v726_v35 = vpop.permute.xlu0 %725  ;;  %1220 = vrot.lane.b32.xlu1 %v4809_v33, %s4073_s6 }
  0xbc   : > { %808 = vst.msk [vmem:[#allocation2 + $0x38] sm:$0xf] %vm793_vm7, %v726_v35 }
  0xbd   : > { %1218 = vrot.lane.b32.xlu0 %v4812_v44, %s4073_s6  ;;  %v732_v30 = vpop.permute.xlu1 %731 }
  0xbe   : > { %811 = vst.msk [vmem:[#allocation2 + $0x44] sm:$0xf] %vm793_vm7, %v732_v30  ;;  %v3693_v30 = vld [vmem:[%s4161_s30 + $0x9c] sm:$0xf] }
  0xbf   : > { %v730_v62 = vpop.permute.xlu0 %729  ;;  %1224 = vrot.lane.b32.xlu1 %v4821_v49, %s4073_s6 }
  0xc0   : > { %810 = vst.msk [vmem:[#allocation2 + $0x40] sm:$0xf] %vm793_vm7, %v730_v62 }
  0xc1   : > { %1222 = vrot.lane.b32.xlu0 %v4824_v38, %s4073_s6  ;;  %v736_v47 = vpop.permute.xlu1 %735 }
  0xc2   : > { %813 = vst.msk [vmem:[#allocation2 + $0x4c] sm:$0xf] %vm793_vm7, %v736_v47  ;;  %v3697_v47 = vld [vmem:[%s4161_s30 + $0xac] sm:$0xf] }
  0xc3   : > { %v734_v26 = vpop.permute.xlu0 %733  ;;  %1228 = vrot.lane.b32.xlu1 %v3676_v29, %s4073_s6  ;;  %v1365_v29 = vshll.u32 %v4758_v48, 16 }
  0xc4   : > { %812 = vst.msk [vmem:[#allocation2 + $0x48] sm:$0xf] %vm793_vm7, %v734_v26  ;;  %v1347_v26 = vrot.slane %v1345_v22, 4  ;;  %v1413_v22 = vshll.u32 %v4797_v45, 16 }
  0xc5   : > { %1226 = vrot.lane.b32.xlu0 %v3675_v3, %s4073_s6  ;;  %v740_v59 = vpop.permute.xlu1 %739  ;;  %v4931_v3 = vrot.slane %v1341_v25, 5  ;;  %v4956_v25 = vld [vmem:[%s4161_s30 + $0x20] sm:$0x1] }
  0xc6   : > { %815 = vst.msk [vmem:[#allocation2 + $0x54] sm:$0xf] %vm793_vm7, %v740_v59  ;;  %v3696_v59 = vld [vmem:[%s4161_s30 + $0xa8] sm:$0xf] }
  0xc7   : > { %v738_v15 = vpop.permute.xlu0 %737  ;;  %1232 = vrot.lane.b32.xlu1 %v3679_v54, %s4073_s6  ;;  %v1369_v54 = vshrl.u32 %v4758_v48, 16 }
  0xc8   : > { %814 = vst.msk [vmem:[#allocation2 + $0x50] sm:$0xf] %vm793_vm7, %v738_v15  ;;  %v1337_v15 = vrot.slane %v1335_v34, 5  ;;  %v4961_v34 = vrot.slane %v1389_v53, 5  ;;  %v1441_v53 = vshrl.u32 %v4809_v33, 16 }
  0xc9   : > { %1230 = vrot.lane.b32.xlu0 %v3678_v9, %s4073_s6  ;;  %v744_v20 = vpop.permute.xlu1 %743  ;;  %v1334_v9 = vrot.slane %v1332_v11, 4  ;;  %v1371_v46 = vrot.slane %v1369_v54, 4  ;;  %v1382_v54 = vrot.slane %v1380_v57, 4 }
  0xca   : > { %817 = vst.msk [vmem:[#allocation2 + $0x5c] sm:$0xf] %vm793_vm7, %v744_v20 }
  0xcb   : > { %v742_v5 = vpop.permute.xlu0 %741  ;;  %1236 = vrot.lane.b32.xlu1 %v4845_v31, %s4073_s6 }
  0xcc   : > { %816 = vst.msk [vmem:[#allocation2 + $0x58] sm:$0xf] %vm793_vm7, %v742_v5  ;;  %v4939_v5 = vld [vmem:[%s4161_s30 + $0x14] sm:$0x1] }
  0xcd   : > { %1234 = vrot.lane.b32.xlu0 %v4849_v55, %s4073_s6  ;;  %v748_v61 = vpop.permute.xlu1 %747  ;;  %v1351_v58 = vshll.u32 %v4939_v5, 16 }
  0xce   : > { %819 = vst.msk [vmem:[#allocation2 + $0x64] sm:$0xf] %vm793_vm7, %v748_v61  ;;  %v4942_v61 = vrot.slane %v1365_v29, 5 }
  0xcf   : > { %v746_v36 = vpop.permute.xlu0 %745  ;;  %1240 = vrot.lane.b32.xlu1 %v4859_v40, %s4073_s6 }
  0xd0   : > { %818 = vst.msk [vmem:[#allocation2 + $0x60] sm:$0xf] %vm793_vm7, %v746_v36  ;;  %v1393_v36 = vshrl.u32 %v4779_v13, 16  ;;  %v1383_v13 = vshll.u32 %v4782_v23, 16  ;;  %v3703_v23 = vld [vmem:[%s4161_s30 + $0xc4] sm:$0xf] }
  0xd1   : > { %1238 = vrot.lane.b32.xlu0 %v4862_v7, %s4073_s6  ;;  %v752_v39 = vpop.permute.xlu1 %751 }
  0xd2   : > { %821 = vst.msk [vmem:[#allocation2 + $0x6c] sm:$0xf] %vm793_vm7, %v752_v39  ;;  %v3699_v39 = vld [vmem:[%s4161_s30 + $0xb4] sm:$0xf]  ;;  %v1385_v52 = vrot.slane %v1383_v13, 5  ;;  %v1431_v13 = vshll.u32 %v4812_v44, 16 }
  0xd3   : > { %v750_v43 = vpop.permute.xlu0 %749  ;;  %1244 = vrot.lane.b32.xlu1 %v4879_v17, %s4073_s6 }
  0xd4   : > { %820 = vst.msk [vmem:[#allocation2 + $0x68] sm:$0xf] %vm793_vm7, %v750_v43  ;;  %v1348_v43 = vor.u32 %v1347_v26, %v4931_v3  ;;  %v1375_v26 = vshll.u32 %v4956_v25, 16 }
  0xd5   : > { %1242 = vrot.lane.b32.xlu0 %v4887_v41, %s4073_s6  ;;  %v756_v6 = vpop.permute.xlu1 %755 }
  0xd6   : > { %823 = vst.msk [vmem:[#allocation2 + $0x74] sm:$0xf] %vm793_vm7, %v756_v6  ;;  %v1361_v6 = vrot.slane %v1359_v12, 5  ;;  %v1349_v29 = vrot.slane %v1348_v43, 4  ;;  %v1428_v43 = vshrl.u32 %v4812_v44, 16  ;;  %v1377_v57 = vrot.slane %v1375_v26, 5 }
  0xd7   : > { %v754_v1 = vpop.permute.xlu0 %753  ;;  %1248 = vrot.lane.b32.xlu1 %v4897_v50, %s4073_s6 }
  0xd8   : > { %822 = vst.msk [vmem:[#allocation2 + $0x70] sm:$0xf] %vm793_vm7, %v754_v1  ;;  %v1338_v1 = vor.u32 %v1337_v15, %v1334_v9  ;;  %v3702_v9 = vld [vmem:[%s4161_s30 + $0xc0] sm:$0xf]  ;;  %v1362_v12 = vor.u32 %v1361_v6, %v1358_v2  ;;  %v1399_v2 = vshll.u32 %v4865_v19, 16  ;;  %v1533_v19 = vshll.u32 %v4845_v31, 16 }
  0xd9   : > { %1246 = vrot.lane.b32.xlu0 %v4903_v27, %s4073_s6  ;;  %v760_v35 = vpop.permute.xlu1 %759 }
  0xda   : > { %825 = vst.msk [vmem:[#allocation2 + $0x7c] sm:$0xf] %vm793_vm7, %v760_v35  ;;  %v1395_v35 = vrot.slane %v1393_v36, 4  ;;  %v1339_v15 = vrot.slane %v1338_v1, 4 }
  0xdb   : > { %v758_v62 = vpop.permute.xlu0 %757  ;;  %1252 = vrot.lane.b32.xlu1 %v3694_v16, %s4073_s6  ;;  %v1417_v16 = vshrl.u32 %v4797_v45, 16  ;;  %v1353_v45 = vrot.slane %v1351_v58, 5 }
  0xdc   : > { %824 = vst.msk [vmem:[#allocation2 + $0x78] sm:$0xf] %vm793_vm7, %v758_v62  ;;  %v1407_v62 = vshll.u32 %v4800_v0, 16  ;;  %v1344_v1 = vsel %vm4210_vm3, %v1339_v15, %v4931_v3 }
  0xdd   : > { %1250 = vrot.lane.b32.xlu0 %v3693_v30, %s4073_s6  ;;  %v992_v20 = vpop.permute.xlu1 %991  ;;  %v1404_v30 = vshrl.u32 %v4800_v0, 16  ;;  %v4972_v0 = vrot.slane %v1413_v22, 5  ;;  %v1354_v58 = vsel %vm4210_vm3, %v1349_v29, %v1353_v45  ;;  %v1363_v22 = vrot.slane %v1362_v12, 4 }
  0xde   : > { %1087 = vst.msk [vmem:[#allocation2 + $0x4] sm:$0xf] %vm1085_vm8, %v992_v20  ;;  %v1419_v20 = vrot.slane %v1417_v16, 4  ;;  %v1386_v16 = vor.u32 %v1385_v52, %v1382_v54  ;;  %v1527_v29 = vshll.u32 %v4849_v55, 16  ;;  %v1401_v45 = vrot.slane %v1399_v2, 5 }
  0xdf   : > { %v990_v18 = vpop.permute.xlu0 %989  ;;  %1256 = vrot.lane.b32.xlu1 %v3697_v47, %s4073_s6  ;;  %v1372_v47 = vor.u32 %v1371_v46, %v4942_v61  ;;  %v1409_v46 = vrot.slane %v1407_v62, 5  ;;  %v1423_v52 = vshll.u32 %v4900_v32, 16  ;;  %v1368_v15 = vsel %vm4210_vm3, %v1363_v22, %v4942_v61 }
  0xe0   : > { %1086 = vst.msk [vmem:[#allocation2] sm:$0xf] %vm1085_vm8, %v990_v18  ;;  %v1437_v18 = vshll.u32 %v4809_v33, 16  ;;  %v1420_v54 = vor.u32 %v1419_v20, %v4972_v0  ;;  %v1387_v12 = vrot.slane %v1386_v16, 4  ;;  %v1561_v32 = vshrl.u32 %v4859_v40, 16 }
  0xe1   : > { %1254 = vrot.lane.b32.xlu0 %v3696_v59, %s4073_s6  ;;  %v996_v42 = vpop.permute.xlu1 %995  ;;  %v1373_v6 = vrot.slane %v1372_v47, 4  ;;  %v1430_v47 = vrot.slane %v1428_v43, 4  ;;  %v1557_v43 = vshll.u32 %v4859_v40, 16 }
  0xe2   : > { %1089 = vst.msk [vmem:[#allocation2 + $0xc] sm:$0xf] %vm1085_vm8, %v996_v42  ;;  %v1392_v22 = vsel %vm4210_vm3, %v1387_v12, %v4961_v34  ;;  %v5038_v12 = vld [vmem:[%s4161_s30 + $0x80] sm:$0x1] }
  0xe3   : > { %v994_v11 = vpop.permute.xlu0 %993  ;;  %1260 = vrot.lane.b32.xlu1 %v3700_v4, %s4073_s6  ;;  %v1406_v4 = vrot.slane %v1404_v30, 4  ;;  %v1524_v30 = vshrl.u32 %v4849_v55, 16  ;;  %v1378_v26 = vsel %vm4210_vm3, %v1373_v6, %v1377_v57  ;;  %v1548_v6 = vshrl.u32 %v4862_v7, 16 }
  0xe4   : > { %1088 = vst.msk [vmem:[#allocation2 + $0x8] sm:$0xf] %vm1085_vm8, %v994_v11  ;;  %v4989_v11 = vrot.slane %v1437_v18, 5 }
  0xe5   : > { %1258 = vrot.lane.b32.xlu0 %v3699_v39, %s4073_s6  ;;  %v1000_v59 = vpop.permute.xlu1 %999  ;;  %v1396_v39 = vor.u32 %v1395_v35, %v4961_v34  ;;  %v1537_v35 = vshrl.u32 %v4845_v31, 16  ;;  %v1410_v18 = vor.u32 %v1409_v46, %v1406_v4  ;;  %v1526_v2 = vrot.slane %v1524_v30, 4 }
  0xe6   : > { %1091 = vst.msk [vmem:[#allocation2 + $0x14] sm:$0xf] %vm1085_vm8, %v1000_v59  ;;  %v1433_v59 = vrot.slane %v1431_v13, 5  ;;  %v1421_v4 = vrot.slane %v1420_v54, 4  ;;  %v1425_v46 = vrot.slane %v1423_v52, 5 }
  0xe7   : > { %v998_v36 = vpop.permute.xlu0 %997  ;;  %1264 = vrot.lane.b32.xlu1 %v3703_v23, %s4073_s6  ;;  %v1443_v23 = vrot.slane %v1441_v53, 4  ;;  %v1397_v3 = vrot.slane %v1396_v39, 4  ;;  %v3671_v53 = vld [vmem:[%s4161_s30 + $0x44] sm:$0x1]  ;;  %v1539_v39 = vrot.slane %v1537_v35, 4  ;;  %v1411_v16 = vrot.slane %v1410_v18, 4 }
  0xe8   : > { %1090 = vst.msk [vmem:[#allocation2 + $0x10] sm:$0xf] %vm1085_vm8, %v998_v36  ;;  %v5007_v36 = vrot.slane %v1533_v19, 5  ;;  %v1447_v13 = vshll.u32 %v3671_v53, 16  ;;  %v1434_v19 = vor.u32 %v1433_v59, %v1430_v47  ;;  %v5024_v35 = vld [vmem:[%s4161_s30 + $0x74] sm:$0x1]  ;;  %v1426_v34 = vsel %vm4210_vm3, %v1421_v4, %v1425_v46 }
  0xe9   : > { %1262 = vrot.lane.b32.xlu0 %v3702_v9, %s4073_s6  ;;  %v1004_v42 = vpop.permute.xlu1 %1003  ;;  %v1402_v61 = vsel %vm4210_vm3, %v1397_v3, %v1401_v45  ;;  %v1444_v57 = vor.u32 %v1443_v23, %v4989_v11  ;;  %v1550_v3 = vrot.slane %v1548_v6, 4  ;;  %v1416_v59 = vsel %vm4210_vm3, %v1411_v16, %v4972_v0  ;;  %s6250_s6 = scalar_lea.vmem [#allocation3], %s3639_s4 }
  0xea   : > { %1093 = vst.msk [vmem:[#allocation2 + $0x1c] sm:$0xf] %vm1085_vm8, %v1004_v42  ;;  %v1551_v42 = vshll.u32 %v4862_v7, 16  ;;  %v1540_v23 = vor.u32 %v1539_v39, %v5007_v36  ;;  %v1449_v47 = vrot.slane %v1447_v13, 5  ;;  %v1567_v0 = vshll.u32 %v5038_v12, 16 }
  0xeb   : > { %v1002_v62 = vpop.permute.xlu0 %1001  ;;  %1717 = vrot.lane.b32.xlu1 %v1354_v58, %s4074_s7  ;;  %v1529_v58 = vrot.slane %v1527_v29, 5  ;;  %v1563_v29 = vrot.slane %v1561_v32, 4  ;;  %v1445_v45 = vrot.slane %v1444_v57, 4 }
  0xec   : > { %1092 = vst.msk [vmem:[#allocation2 + $0x18] sm:$0xf] %vm1085_vm8, %v1002_v62  ;;  %v1559_v62 = vrot.slane %v1557_v43, 5  ;;  %v1553_v54 = vrot.slane %v1551_v42, 5  ;;  %v1541_v53 = vrot.slane %v1540_v23, 4  ;;  %v1569_v57 = vrot.slane %v1567_v0, 5 }
  0xed   : > { %1715 = vrot.lane.b32.xlu0 %v1344_v1, %s4074_s7  ;;  %v1008_v9 = vpop.permute.xlu1 %1007  ;;  %v1450_v39 = vsel %vm4210_vm3, %v1445_v45, %v1449_v47  ;;  %v1455_v45 = vshll.u32 %v4824_v38, 16  ;;  %v1925_v47 = vrot.slane %v4859_v40, 5 }
  0xee   : > { %1095 = vst.msk [vmem:[#allocation2 + $0x24] sm:$0xf] %vm1085_vm8, %v1008_v9  ;;  %v1435_v9 = vrot.slane %v1434_v19, 4  ;;  %v1554_v6 = vor.u32 %v1553_v54, %v1550_v3  ;;  %v1864_v19 = vrot.slane %v1862_v51, 4  ;;  %v1921_v51 = vrot.slane %v5024_v35, 5 }
  0xef   : > { %v1006_v20 = vpop.permute.xlu0 %1005  ;;  %1721 = vrot.lane.b32.xlu1 %v1378_v26, %s4074_s7  ;;  %v1543_v26 = vshll.u32 %v5024_v35, 16  ;;  %v1871_v35 = vrot.slane %v1869_v21, 4  ;;  %v1457_v40 = vrot.slane %v1455_v45, 5  ;;  %v1928_v21 = vrot.slane %v5038_v12, 5 }
  0xf0   : > { %1094 = vst.msk [vmem:[#allocation2 + $0x20] sm:$0xf] %vm1085_vm8, %v1006_v20  ;;  %v1564_v20 = vor.u32 %v1563_v29, %v1559_v62  ;;  %v1555_v42 = vrot.slane %v1554_v6, 4 }
  0xf1   : > { %1719 = vrot.lane.b32.xlu0 %v1368_v15, %s4074_s7  ;;  %v1012_v1 = vpop.permute.xlu1 %1011  ;;  %v1530_v15 = vor.u32 %v1529_v58, %v1526_v2  ;;  %v1545_v43 = vrot.slane %v1543_v26, 5  ;;  %v1440_v58 = vsel %vm4210_vm3, %v1435_v9, %v4989_v11  ;;  %v1872_v26 = vrot.slane %v4956_v25, 5 }
  0xf2   : > { %1097 = vst.msk [vmem:[#allocation2 + $0x2c] sm:$0xf] %vm1085_vm8, %v1012_v1  ;;  %v1565_v46 = vrot.slane %v1564_v20, 4  ;;  %v1560_v29 = vsel %vm4210_vm3, %v1555_v42, %v1559_v62  ;;  %v1461_v25 = vshll.u32 %v4821_v49, 16  ;;  %v3709_v42 = vrot.slane %v4812_v44, 9 }
  0xf3   : > { %v1010_v30 = vpop.permute.xlu0 %1009  ;;  %1725 = vrot.lane.b32.xlu1 %v1402_v61, %s4074_s7  ;;  %v1531_v32 = vrot.slane %v1530_v15, 4  ;;  %v1546_v4 = vsel %vm4210_vm3, %v1541_v53, %v1545_v43  ;;  %v1873_v48 = vsel %vm4566_vm6, %v1871_v35, %v1872_v26  ;;  %v3714_v15 = vrot.slane %v4862_v7, 9 }
  0xf4   : > { %1096 = vst.msk [vmem:[#allocation2 + $0x28] sm:$0xf] %vm1085_vm8, %v1010_v30  ;;  %v1570_v16 = vsel %vm4210_vm3, %v1565_v46, %v1569_v57  ;;  %v5110_v43 = vrot.slane %v1461_v25, 5  ;;  %v5187_v25 = vld [vmem:[%s4161_s30 + $0x80] sm:$0x1] }
  0xf5   : > { %1723 = vrot.lane.b32.xlu0 %v1392_v22, %s4074_s7  ;;  %v1016_v52 = vpop.permute.xlu1 %1015  ;;  %v1536_v11 = vsel %vm4210_vm3, %v1531_v32, %v5007_v36  ;;  %v1918_v22 = vrot.slane %v4845_v31, 5  ;;  %v1865_v36 = vrot.slane %v4939_v5, 5  ;;  %v3713_v5 = vrot.slane %v4849_v55, 9 }
  0xf6   : > { %1099 = vst.msk [vmem:[#allocation2 + $0x34] sm:$0xf] %vm1085_vm8, %v1016_v52  ;;  %v1926_v20 = vsel %vm4566_vm6, %v3714_v15, %v1925_v47  ;;  %v1897_v15 = vrot.slane %v4821_v49, 5 }
  0xf7   : > { %v1014_v18 = vpop.permute.xlu0 %1013  ;;  %1729 = vrot.lane.b32.xlu1 %v1426_v34, %s4074_s7  ;;  %v1866_v31 = vsel %vm4566_vm6, %v1864_v19, %v1865_v36  ;;  %v1920_v14 = vrot.slane %v1918_v22, 4  ;;  %v1452_v34 = vshrl.u32 %v4824_v38, 16  ;;  %v1919_v52 = vsel %vm4566_vm6, %v3713_v5, %v1918_v22  ;;  %v5144_v22 = vld [vmem:[%s4161_s30 + $0x78] sm:$0xf]  ;;  %v5158_v5 = vld [vmem:[%s4161_s30 + $0x20] sm:$0x1] }
  0xf8   : > { %1098 = vst.msk [vmem:[#allocation2 + $0x30] sm:$0xf] %vm1085_vm8, %v1014_v18 }
  0xf9   : > { %1727 = vrot.lane.b32.xlu0 %v1416_v59, %s4074_s7  ;;  %v1020_v2 = vpop.permute.xlu1 %1019  ;;  %v1922_v55 = vsel %vm4566_vm6, %v1920_v14, %v1921_v51  ;;  %v1454_v9 = vrot.slane %v1452_v34, 4  ;;  %v2507_v14 = vshrl.u32 %v5144_v22, 16  ;;  %v2510_v51 = vshll.u32 %v5144_v22, 16  ;;  %v5163_v34 = vld [vmem:[%s4161_s30 + $0x24] sm:$0xf] }
  0xfa   : > { %1101 = vst.msk [vmem:[#allocation2 + $0x3c] sm:$0xf] %vm1085_vm8, %v1020_v2 }
  0xfb   : > { %v1018_v61 = vpop.permute.xlu0 %1017  ;;  %1733 = vrot.lane.b32.xlu1 %v1450_v39, %s4074_s7  ;;  %v1458_v39 = vor.u32 %v1457_v40, %v1454_v9  ;;  %v2509_v9 = vrot.slane %v2507_v14, 4  ;;  %v2512_v40 = vrot.slane %v2510_v51, 5 }
  0xfc   : > { %1100 = vst.msk [vmem:[#allocation2 + $0x38] sm:$0xf] %vm1085_vm8, %v1018_v61  ;;  %v5130_v61 = vld [vmem:[%s4161_s30 + $0x18] sm:$0xf] }
  0xfd   : > { %1731 = vrot.lane.b32.xlu0 %v1440_v58, %s4074_s7  ;;  %v1024_v13 = vpop.permute.xlu1 %1023  ;;  %v5114_v0 = vrot.slane %v1458_v39, 4  ;;  %v5120_v58 = vld [vmem:[%s4161_s30 + $0x1c] sm:$0xf]  ;;  %v2315_v46 = vshrl.u32 %v5130_v61, 16  ;;  %v2318_v57 = vshll.u32 %v5130_v61, 16 }
  0xfe   : > { %1103 = vst.msk [vmem:[#allocation2 + $0x44] sm:$0xf] %vm1085_vm8, %v1024_v13  ;;  %v2324_v32 = vshll.u32 %v5120_v58, 16  ;;  %v2328_v6 = vshrl.u32 %v5120_v58, 16 }
  0xff   : > { %v1022_v1 = vpop.permute.xlu0 %1021  ;;  %1749 = vrot.lane.b32.xlu1 %v1546_v4, %s4074_s7 }
 0x100   : > { %1102 = vst.msk [vmem:[#allocation2 + $0x40] sm:$0xf] %vm1085_vm8, %v1022_v1  ;;  %v5141_v1 = vld [vmem:[%s4161_s30 + $0x7c] sm:$0xf]  ;;  %v2330_v19 = vrot.slane %v2328_v6, 4 }
 0x101   : > { %1747 = vrot.lane.b32.xlu0 %v1536_v11, %s4074_s7  ;;  %v1028_v30 = vpop.permute.xlu1 %1027  ;;  %v1890_v11 = vrot.slane %v4809_v33, 5  ;;  %v2516_v44 = vshll.u32 %v5141_v1, 16  ;;  %v2520_v36 = vshrl.u32 %v5141_v1, 16 }
 0x102   : > { %1105 = vst.msk [vmem:[#allocation2 + $0x4c] sm:$0xf] %vm1085_vm8, %v1028_v30  ;;  %v5153_v30 = vld [vmem:[%s4161_s30 + $0x28] sm:$0xf] }
 0x103   : > { %v1026_v3 = vpop.permute.xlu0 %1025  ;;  %1753 = vrot.lane.b32.xlu1 %v1570_v16, %s4074_s7  ;;  %v5146_v16 = vrot.slane %v2324_v32, 5  ;;  %v2352_v45 = vshrl.u32 %v5153_v30, 16  ;;  %v5176_v35 = vrot.slane %v2516_v44, 5  ;;  %v2522_v26 = vrot.slane %v2520_v36, 4 }
 0x104   : > { %1104 = vst.msk [vmem:[#allocation2 + $0x48] sm:$0xf] %vm1085_vm8, %v1026_v3  ;;  %v2320_v3 = vrot.slane %v2318_v57, 5  ;;  %v2526_v57 = vshll.u32 %v5187_v25, 16  ;;  %v2513_v36 = vor.u32 %v2512_v40, %v2509_v9 }
 0x105   : > { %1751 = vrot.lane.b32.xlu0 %v1560_v29, %s4074_s7  ;;  %v1032_v23 = vpop.permute.xlu1 %1031  ;;  %v2317_v29 = vrot.slane %v2315_v46, 4  ;;  %v2523_v46 = vor.u32 %v2522_v26, %v5176_v35 }
 0x106   : > { %1107 = vst.msk [vmem:[#allocation2 + $0x54] sm:$0xf] %vm1085_vm8, %v1032_v23  ;;  %v2528_v26 = vrot.slane %v2526_v57, 5  ;;  %v2845_v57 = vrot.slane %v5120_v58, 5 }
 0x107   : > { %v1030_v62 = vpop.permute.xlu0 %1029  ;;  %1974 = vrot.lane.b32.xlu1 %v1866_v31, %s4075_s8 }
 0x108   : > { %1106 = vst.msk [vmem:[#allocation2 + $0x50] sm:$0xf] %vm1085_vm8, %v1030_v62  ;;  %v2348_v62 = vshll.u32 %v5153_v30, 16 }
 0x109   : > { %1972 = vrot.lane.b32.xlu0 %v4773_v56, %s4075_s8  ;;  %v1036_v54 = vpop.permute.xlu1 %1035  ;;  %v1927_v56 = vrot.slane %v1925_v47, 4  ;;  %v2339_v47 = vshrl.u32 %v5163_v34, 16 }
 0x10a   : > { %1109 = vst.msk [vmem:[#allocation2 + $0x5c] sm:$0xf] %vm1085_vm8, %v1036_v54  ;;  %v5181_v54 = vld [vmem:[%s4161_s30 + $0x88] sm:$0xf]  ;;  %v5192_v39 = vrot.slane %v2348_v62, 5 }
 0x10b   : > { %v1034_v59 = vpop.permute.xlu0 %1033  ;;  %2006 = vrot.lane.b32.xlu1 %v1922_v55, %s4075_s8  ;;  %v1929_v12 = vsel %vm4566_vm6, %v1927_v56, %v1928_v21  ;;  %v5174_v55 = vsel %vm4566_vm6, %v3709_v42, %v1890_v11  ;;  %v2342_v56 = vshll.u32 %v5163_v34, 16  ;;  %v2321_v21 = vor.u32 %v2320_v3, %v2317_v29  ;;  %v5209_v29 = vld [vmem:[%s4161_s30 + $0x2c] sm:$0x1] }
 0x10c   : > { %1108 = vst.msk [vmem:[#allocation2 + $0x58] sm:$0xf] %vm1085_vm8, %v1034_v59  ;;  %v2334_v59 = vshll.u32 %v5158_v5, 16  ;;  %v2544_v32 = vshrl.u32 %v5181_v54, 16 }
 0x10d   : > { %2004 = vrot.lane.b32.xlu0 %v1919_v52, %s4075_s8  ;;  %v1040_v18 = vpop.permute.xlu1 %1039  ;;  %v2331_v52 = vor.u32 %v2330_v19, %v5146_v16  ;;  %v2322_v44 = vrot.slane %v2321_v21, 4  ;;  %v5233_v21 = vld [vmem:[%s4161_s30 + $0x8c] sm:$0x1] }
 0x10e   : > { %1111 = vst.msk [vmem:[#allocation2 + $0x64] sm:$0xf] %vm1085_vm8, %v1040_v18  ;;  %v3710_v18 = vrot.slane %v4824_v38, 9  ;;  %v2546_v14 = vrot.slane %v2544_v32, 4 }
 0x10f   : > { %v1038_v53 = vpop.permute.xlu0 %1037  ;;  %1978 = vrot.lane.b32.xlu1 %v1873_v48, %s4075_s8  ;;  %v2332_v6 = vrot.slane %v2331_v52, 4  ;;  %v2358_v52 = vshll.u32 %v5209_v29, 16  ;;  %v2327_v40 = vsel %vm4210_vm3, %v2322_v44, %v5146_v16 }
 0x110   : > { %1110 = vst.msk [vmem:[#allocation2 + $0x60] sm:$0xf] %vm1085_vm8, %v1038_v53  ;;  %v5222_v62 = vsel %vm4566_vm6, %v3710_v18, %v1897_v15 }
 0x111   : > { %1976 = vrot.lane.b32.xlu0 %v4789_v60, %s4075_s8  ;;  %v1044_v7 = vpop.permute.xlu1 %1043  ;;  %v1464_v60 = vsel %vm4210_vm3, %v5114_v0, %v5110_v43 }
 0x112   : > { %1113 = vst.msk [vmem:[#allocation2 + $0x6c] sm:$0xf] %vm1085_vm8, %v1044_v7  ;;  %v5196_v7 = vld [vmem:[%s4161_s30 + $0x84] sm:$0xf] }
 0x113   : > { %v1042_v2 = vpop.permute.xlu0 %1041  ;;  %2010 = vrot.lane.b32.xlu1 %v1929_v12, %s4075_s8  ;;  %v2540_v12 = vshll.u32 %v5181_v54, 16  ;;  %v2531_v38 = vshrl.u32 %v5196_v7, 16  ;;  %v2534_v19 = vshll.u32 %v5196_v7, 16 }
 0x114   : > { %1112 = vst.msk [vmem:[#allocation2 + $0x68] sm:$0xf] %vm1085_vm8, %v1042_v2  ;;  %v2341_v2 = vrot.slane %v2339_v47, 4  ;;  %v2524_v47 = vrot.slane %v2523_v46, 4 }
 0x115   : > { %2008 = vrot.lane.b32.xlu0 %v1926_v20, %s4075_s8  ;;  %v1048_v4 = vpop.permute.xlu1 %1047  ;;  %v2354_v20 = vrot.slane %v2352_v45, 4  ;;  %v2533_v51 = vrot.slane %v2531_v38, 4 }
 0x116   : > { %1115 = vst.msk [vmem:[#allocation2 + $0x74] sm:$0xf] %vm1085_vm8, %v1048_v4  ;;  %v2336_v4 = vrot.slane %v2334_v59, 5  ;;  %v2536_v59 = vrot.slane %v2534_v19, 5 }
 0x117   : > { %v1046_v13 = vpop.permute.xlu0 %1045  ;;  %2187 = vrot.lane.b32.xlu1 %v5120_v58, %s4076_s9  ;;  %v3957_v58 = vld [vmem:[%s6390_s1 + $0x10] ss:$0 sps:$4 sm:$0x33]  }
 0x118   : > { %1114 = vst.msk [vmem:[#allocation2 + $0x70] sm:$0xf] %vm1085_vm8, %v1046_v13  ;;  %v2344_v13 = vrot.slane %v2342_v56, 5  ;;  %v2337_v45 = vsel %vm4210_vm3, %v2332_v6, %v2336_v4  ;;  %v2537_v4 = vor.u32 %v2536_v59, %v2533_v51  ;;  %v2847_v51 = vrot.slane %v2845_v57, 4  ;;  %3890 = vmatprep.subr.msk.bf16.mxu0 %vm3272_vm10, %v3957_v58  ;;  %3891 = vmatprep.subr.msk.bf16.mxu1 %vm3272_vm10, %v3957_v58 }
 0x119   : > { %2185 = vrot.lane.b32.xlu0 %v5130_v61, %s4076_s9  ;;  %v1052_v31 = vpop.permute.xlu1 %1051  ;;  %v1585_v59 = vshrl.u32 %v4879_v17, 16 }
 0x11a   : > { %1117 = vst.msk [vmem:[#allocation2 + $0x7c] sm:$0xf] %vm1085_vm8, %v1052_v31  ;;  %v5212_v31 = vrot.slane %v2540_v12, 5  ;;  %v2345_v56 = vor.u32 %v2344_v13, %v2341_v2  ;;  %v2529_v12 = vsel %vm4210_vm3, %v2524_v47, %v2528_v26  ;;  %v2550_v2 = vshll.u32 %v5233_v21, 16 }
 0x11b   : > { %v1050_v23 = vpop.permute.xlu0 %1049  ;;  %2219 = vrot.lane.b32.xlu1 %v5141_v1, %s4076_s9 }
 0x11c   : > { %1116 = vst.msk [vmem:[#allocation2 + $0x78] sm:$0xf] %vm1085_vm8, %v1050_v23  ;;  %v2355_v23 = vor.u32 %v2354_v20, %v5192_v39  ;;  %v2360_v20 = vrot.slane %v2358_v52, 5  ;;  %v2547_v16 = vor.u32 %v2546_v14, %v5212_v31  ;;  %v2346_v6 = vrot.slane %v2345_v56, 4 }
 0x11d   : > { %2217 = vrot.lane.b32.xlu0 %v5144_v22, %s4076_s9  ;;  %v1205_v48 = vpop.permute.xlu1 %1204  ;;  %v2552_v19 = vrot.slane %v2550_v2, 5  ;;  %v2901_v14 = vrot.slane %v5141_v1, 5  ;;  %v3274_v52 = vsel %vm3272_vm10, %v3957_v58, 0  ;;  %v1581_v1 = vshll.u32 %v4879_v17, 16 }
 0x11e   : > { %1300 = vst.msk [vmem:[#allocation2 + $0x4] sm:$0xf] %vm1298_vm9, %v1205_v48  ;;  %v2514_v48 = vrot.slane %v2513_v36, 4  ;;  %v2538_v36 = vrot.slane %v2537_v4, 4  ;;  %3847 = vmatpush3.bf16.msra.mxu0 %v3274_v52  ;;  %3887 = vmatpush3.bf16.msra.mxu1 %v3274_v52  ;;  %v2904_v56 = vrot.slane %v5187_v25, 5  ;;  %v3960_v25 = vld [vmem:[%s6390_s1] sm:$0xff]  }
 0x11f   : > { %v1203_v53 = vpop.permute.xlu0 %1202  ;;  %2191 = vrot.lane.b32.xlu1 %v5153_v30, %s4076_s9  ;;  %v5325_v52 = vld [vmem:[%s4161_s30 + $0x98] sm:$0x1] }
 0x120   : > { %1299 = vst.msk [vmem:[#allocation2] sm:$0xf] %vm1298_vm9, %v1203_v53  ;;  %v2356_v53 = vrot.slane %v2355_v23, 4  ;;  %v2519_v38 = vsel %vm4210_vm3, %v2514_v48, %v5176_v35  ;;  %v2351_v35 = vsel %vm4210_vm3, %v2346_v6, %v5192_v39  ;;  %v2848_v23 = vrot.slane %v5158_v5, 5  ;;  %v3958_v5 = vld [vmem:[%s6390_s1 + $0x8] sm:$0xff]  }
 0x121   : > { %2189 = vrot.lane.b32.xlu0 %v5163_v34, %s4076_s9  ;;  %v1209_v42 = vpop.permute.xlu1 %1208  ;;  %v2543_v26 = vsel %vm4210_vm3, %v2538_v36, %v5212_v31  ;;  %v2852_v31 = vrot.slane %v5153_v30, 5  ;;  %v2903_v48 = vrot.slane %v2901_v14, 4  ;;  %3848 = vmatprep.subr.bf16.mxu0 %v3958_v5  ;;  %v1587_v30 = vrot.slane %v1585_v59, 4 }
 0x122   : > { %1302 = vst.msk [vmem:[#allocation2 + $0xc] sm:$0xf] %vm1298_vm9, %v1209_v42  ;;  %v2361_v13 = vsel %vm4210_vm3, %v2356_v53, %v2360_v20  ;;  %v2548_v42 = vrot.slane %v2547_v16, 4  ;;  %v3777_v53 = vrot.slane %v5144_v22, 9  ;;  %3885 = vmatprep.subr.bf16.mxu1 %v3958_v5  ;;  %v5289_v16 = vrot.slane %v1581_v1, 5  ;;  %3849 = vmatpush3.bf16.msra.mxu0 %v3958_v5 }
 0x123   : > { %v1207_v3 = vpop.permute.xlu0 %1206  ;;  %2223 = vrot.lane.b32.xlu1 %v5181_v54, %s4076_s9  ;;  %3888 = vmatpush3.bf16.msra.mxu1 %v3958_v5  ;;  %v1605_v22 = vshll.u32 %v4897_v50, 16  ;;  %v1596_v6 = vshrl.u32 %v4903_v27, 16  ;;  %v2905_v4 = vsel %vm4566_vm6, %v2903_v48, %v2904_v56  ;;  %v1615_v5 = vshll.u32 %v5325_v52, 16 }
 0x124   : > { %1301 = vst.msk [vmem:[#allocation2 + $0x8] sm:$0xf] %vm1298_vm9, %v1207_v3  ;;  %v2553_v39 = vsel %vm4210_vm3, %v2548_v42, %v2552_v19  ;;  %3850 = vmatprep.subr.bf16.mxu0 %v3960_v25  ;;  %v2902_v19 = vsel %vm4566_vm6, %v3777_v53, %v2901_v14  ;;  %3886 = vmatprep.subr.bf16.mxu1 %v3960_v25 }
 0x125   : > { %2221 = vrot.lane.b32.xlu0 %v5196_v7, %s4076_s9  ;;  %v1213_v9 = vpop.permute.xlu1 %1212  ;;  %v1607_v36 = vrot.slane %v1605_v22, 5  ;;  %v1588_v14 = vor.u32 %v1587_v30, %v5289_v16 }
 0x126   : > { %1304 = vst.msk [vmem:[#allocation2 + $0x14] sm:$0xf] %vm1298_vm9, %v1213_v9  ;;  %3851 = vmatpush3.bf16.msra.mxu0 %v3960_v25 }
 0x127   : > { %v1211_v18 = vpop.permute.xlu0 %1210  ;;  %2700 = vrot.lane.b32.xlu1 %v2337_v45, %s4077_s10  ;;  %v3769_v45 = vrot.slane %v5130_v61, 9  ;;  %v1572_v61 = vshrl.u32 %v4887_v41, 16  ;;  %3889 = vmatpush3.bf16.msra.mxu1 %v3960_v25 }
 0x128   : > { %1303 = vst.msk [vmem:[#allocation2 + $0x10] sm:$0xf] %vm1298_vm9, %v1211_v18  ;;  %v1575_v18 = vshll.u32 %v4887_v41, 16 }
 0x129   : > { %2698 = vrot.lane.b32.xlu0 %v2327_v40, %s4077_s10  ;;  %v1217_v32 = vpop.permute.xlu1 %1216  ;;  %v2849_v40 = vsel %vm4566_vm6, %v2847_v51, %v2848_v23  ;;  %v2846_v20 = vsel %vm4566_vm6, %v3769_v45, %v2845_v57  ;;  %v1574_v41 = vrot.slane %v1572_v61, 4  ;;  %v2855_v57 = vrot.slane %v5209_v29, 5 }
 0x12a   : > { %1306 = vst.msk [vmem:[#allocation2 + $0x1c] sm:$0xf] %vm1298_vm9, %v1217_v32  ;;  %v1609_v32 = vshrl.u32 %v4897_v50, 16  ;;  %v1577_v50 = vrot.slane %v1575_v18, 5  ;;  %v3778_v23 = vrot.slane %v5196_v7, 9  ;;  %v1589_v7 = vrot.slane %v1588_v14, 4 }
 0x12b   : > { %v1215_v46 = vpop.permute.xlu0 %1214  ;;  %2732 = vrot.lane.b32.xlu1 %v2529_v12, %s4077_s10 }
 0x12c   : > { %1305 = vst.msk [vmem:[#allocation2 + $0x18] sm:$0xf] %vm1298_vm9, %v1215_v46  ;;  %v2854_v46 = vrot.slane %v2852_v31, 4  ;;  %v1611_v29 = vrot.slane %v1609_v32, 4 }
 0x12d   : > { %2730 = vrot.lane.b32.xlu0 %v2519_v38, %s4077_s10  ;;  %v1221_v44 = vpop.permute.xlu1 %1220  ;;  %v2908_v38 = vrot.slane %v5181_v54, 5  ;;  %v3770_v54 = vrot.slane %v5163_v34, 9  ;;  %v2911_v34 = vrot.slane %v5233_v21, 5 }
 0x12e   : > { %1308 = vst.msk [vmem:[#allocation2 + $0x24] sm:$0xf] %vm1298_vm9, %v1221_v44  ;;  %v5310_v44 = vld [vmem:[%s4161_s30 + $0x8c] sm:$0x1]  ;;  %v2856_v58 = vsel %vm4566_vm6, %v2854_v46, %v2855_v57 }
 0x12f   : > { %v1219_v3 = vpop.permute.xlu0 %1218  ;;  %2704 = vrot.lane.b32.xlu1 %v2361_v13, %s4077_s10  ;;  %v1599_v13 = vshll.u32 %v4903_v27, 16  ;;  %v2910_v27 = vrot.slane %v2908_v38, 4 }
 0x130   : > { %1307 = vst.msk [vmem:[#allocation2 + $0x20] sm:$0xf] %vm1298_vm9, %v1219_v3  ;;  %v1598_v3 = vrot.slane %v1596_v6, 4  ;;  %v1935_v6 = vrot.slane %v5310_v44, 5 }
 0x131   : > { %2702 = vrot.lane.b32.xlu0 %v2351_v35, %s4077_s10  ;;  %v1225_v47 = vpop.permute.xlu1 %1224  ;;  %v1601_v51 = vrot.slane %v1599_v13, 5  ;;  %v2912_v1 = vsel %vm4566_vm6, %v2910_v27, %v2911_v34  ;;  %v5365_v13 = vld [vmem:[%s4161_s30 + $0x54] sm:$0xf] }
 0x132   : > { %1310 = vst.msk [vmem:[#allocation2 + $0x2c] sm:$0xf] %vm1298_vm9, %v1225_v47  ;;  %v2853_v47 = vsel %vm4566_vm6, %v3770_v54, %v2852_v31  ;;  %v2909_v31 = vsel %vm4566_vm6, %v3778_v23, %v2908_v38  ;;  %v1476_v54 = vshrl.u32 %v5365_v13, 16 }
 0x133   : > { %v1223_v9 = vpop.permute.xlu0 %1222  ;;  %2736 = vrot.lane.b32.xlu1 %v2553_v39, %s4077_s10  ;;  %v1591_v39 = vshll.u32 %v5310_v44, 16  ;;  %v1602_v48 = vor.u32 %v1601_v51, %v1598_v3  ;;  %v1942_v3 = vrot.slane %v5325_v52, 5  ;;  %v5383_v51 = vld [vmem:[%s4161_s30 + $0x58] sm:$0xf] }
 0x134   : > { %1309 = vst.msk [vmem:[#allocation2 + $0x28] sm:$0xf] %vm1298_vm9, %v1223_v9  ;;  %v1612_v9 = vor.u32 %v1611_v29, %v1607_v36  ;;  %v1478_v27 = vrot.slane %v1476_v54, 4  ;;  %v1485_v23 = vshll.u32 %v5383_v51, 16 }
 0x135   : > { %2734 = vrot.lane.b32.xlu0 %v2543_v26, %s4077_s10  ;;  %v1229_v12 = vpop.permute.xlu1 %1228  ;;  %v1578_v26 = vor.u32 %v1577_v50, %v1574_v41  ;;  %v1593_v59 = vrot.slane %v1591_v39, 5  ;;  %v1932_v41 = vrot.slane %v4879_v17, 5 }
 0x136   : > { %1312 = vst.msk [vmem:[#allocation2 + $0x34] sm:$0xf] %vm1298_vm9, %v1229_v12  ;;  %v1613_v53 = vrot.slane %v1612_v9, 4  ;;  %v1617_v12 = vrot.slane %v1615_v5, 5  ;;  %v5401_v9 = vrot.slane %v1485_v23, 5 }
 0x137   : > { %v1227_v2 = vpop.permute.xlu0 %1226  ;;  %2957 = vrot.lane.b32.xlu1 %v2849_v40, %s4078_s27  ;;  %v1579_v40 = vrot.slane %v1578_v26, 4  ;;  %v1594_v18 = vsel %vm4210_vm3, %v1589_v7, %v1593_v59  ;;  %v1934_v17 = vrot.slane %v1932_v41, 4 }
 0x138   : > { %1311 = vst.msk [vmem:[#allocation2 + $0x30] sm:$0xf] %vm1298_vm9, %v1227_v2  ;;  %v1603_v2 = vrot.slane %v1602_v48, 4  ;;  %v1618_v22 = vsel %vm4210_vm3, %v1613_v53, %v1617_v12  ;;  %v5413_v48 = vld [vmem:[%s4161_s30 + $0x30] sm:$0xf] }
 0x139   : > { %2955 = vrot.lane.b32.xlu0 %v2846_v20, %s4078_s27  ;;  %v1233_v42 = vpop.permute.xlu1 %1232  ;;  %v1584_v30 = vsel %vm4210_vm3, %v1579_v40, %v5289_v16  ;;  %v2366_v53 = vshll.u32 %v5413_v48, 16 }
 0x13a   : > { %1314 = vst.msk [vmem:[#allocation2 + $0x3c] sm:$0xf] %vm1298_vm9, %v1233_v42  ;;  %v1608_v16 = vsel %vm4210_vm3, %v1603_v2, %v1607_v36  ;;  %v1479_v42 = vshll.u32 %v5365_v13, 16 }
 0x13b   : > { %v1231_v35 = vpop.permute.xlu0 %1230  ;;  %2989 = vrot.lane.b32.xlu1 %v2905_v4, %s4078_s27  ;;  %v3976_v4 = vld [vmem:[%s4161_s30 + $0x84] sm:$0xf] }
 0x13c   : > { %1313 = vst.msk [vmem:[#allocation2 + $0x38] sm:$0xf] %vm1298_vm9, %v1231_v35  ;;  %v3715_v46 = vrot.slane %v3976_v4, 9  ;;  %v1936_v35 = vsel %vm4566_vm6, %v1934_v17, %v1935_v6  ;;  %v1481_v34 = vrot.slane %v1479_v42, 5  ;;  %v2368_v6 = vrot.slane %v2366_v53, 5 }
 0x13d   : > { %2987 = vrot.lane.b32.xlu0 %v2902_v19, %s4078_s27  ;;  %v1237_v45 = vpop.permute.xlu1 %1236  ;;  %v3978_v19 = vld [vmem:[%s4161_s30 + $0x94] sm:$0xf]  ;;  %v5441_v4 = vld [vmem:[%s4161_s30 + $0x90] sm:$0xf]  ;;  %v5446_v42 = vld [vmem:[%s4161_s30 + $0x40] sm:$0xf] }
 0x13e   : > { %1316 = vst.msk [vmem:[#allocation2 + $0x44] sm:$0xf] %vm1298_vm9, %v1237_v45  ;;  %v1939_v44 = vrot.slane %v3978_v19, 5  ;;  %v2558_v54 = vshll.u32 %v5441_v4, 16  ;;  %v5449_v19 = vld [vmem:[%s4161_s30 + $0x38] sm:$0x1] }
 0x13f   : > { %v1235_v21 = vpop.permute.xlu0 %1234  ;;  %2961 = vrot.lane.b32.xlu1 %v2856_v58, %s4078_s27  ;;  %v3979_v58 = vld [vmem:[%s4161_s30 + $0x90] sm:$0xf]  ;;  %v5493_v53 = vld [vmem:[%s4161_s30 + $0x9c] sm:$0xf] }
 0x140   : > { %1315 = vst.msk [vmem:[#allocation2 + $0x40] sm:$0xf] %vm1298_vm9, %v1235_v21  ;;  %v3716_v14 = vrot.slane %v3979_v58, 9 }
 0x141   : > { %2959 = vrot.lane.b32.xlu0 %v2853_v47, %s4078_s27  ;;  %v1241_v61 = vpop.permute.xlu1 %1240  ;;  %v5388_v47 = vld [vmem:[%s4161_s30 + $0x60] sm:$0xf] }
 0x142   : > { %1318 = vst.msk [vmem:[#allocation2 + $0x4c] sm:$0xf] %vm1298_vm9, %v1241_v61  ;;  %v1500_v26 = vshrl.u32 %v5388_v47, 16  ;;  %v1503_v21 = vshll.u32 %v5388_v47, 16  ;;  %v1940_v59 = vsel %vm4566_vm6, %v3716_v14, %v1939_v44  ;;  %v5405_v61 = vld [vmem:[%s4161_s30 + $0x34] sm:$0xf] }
 0x143   : > { %v1239_v56 = vpop.permute.xlu0 %1238  ;;  %2993 = vrot.lane.b32.xlu1 %v2912_v1, %s4078_s27  ;;  %v1482_v1 = vor.u32 %v1481_v34, %v1478_v27  ;;  %v2372_v40 = vshll.u32 %v5405_v61, 16  ;;  %v2400_v34 = vshrl.u32 %v5446_v42, 16  ;;  %v2382_v14 = vshll.u32 %v5449_v19, 16 }
 0x144   : > { %1317 = vst.msk [vmem:[#allocation2 + $0x48] sm:$0xf] %vm1298_vm9, %v1239_v56  ;;  %v2376_v56 = vshrl.u32 %v5405_v61, 16 }
 0x145   : > { %2991 = vrot.lane.b32.xlu0 %v2909_v31, %s4078_s27  ;;  %v1245_v20 = vpop.permute.xlu1 %1244  ;;  %v1505_v31 = vrot.slane %v1503_v21, 5 }
 0x146   : > { %1320 = vst.msk [vmem:[#allocation2 + $0x54] sm:$0xf] %vm1298_vm9, %v1245_v20 }
 0x147   : > { %v1243_v25 = vpop.permute.xlu0 %1242  ;;  %1757 = vrot.lane.b32.xlu1 %v1594_v18, %s4074_s7  ;;  %v2363_v18 = vshrl.u32 %v5413_v48, 16 }
 0x148   : > { %1319 = vst.msk [vmem:[#allocation2 + $0x50] sm:$0xf] %vm1298_vm9, %v1243_v25 }
 0x149   : > { %1755 = vrot.lane.b32.xlu0 %v1584_v30, %s4074_s7  ;;  %v1249_v32 = vpop.permute.xlu1 %1248  ;;  %v5424_v30 = vld [vmem:[%s4161_s30 + $0x64] sm:$0xf]  ;;  %v2365_v17 = vrot.slane %v2363_v18, 4 }
 0x14a   : > { %1322 = vst.msk [vmem:[#allocation2 + $0x5c] sm:$0xf] %vm1298_vm9, %v1249_v32  ;;  %v1509_v2 = vshll.u32 %v5424_v30, 16 }
 0x14b   : > { %v1247_v38 = vpop.permute.xlu0 %1246  ;;  %1761 = vrot.lane.b32.xlu1 %v1618_v22, %s4074_s7  ;;  %v5432_v22 = vrot.slane %v2372_v40, 5 }
 0x14c   : > { %1321 = vst.msk [vmem:[#allocation2 + $0x58] sm:$0xf] %vm1298_vm9, %v1247_v38  ;;  %v2378_v38 = vrot.slane %v2376_v56, 4  ;;  %v2402_v56 = vrot.slane %v2400_v34, 4 }
 0x14d   : > { %1759 = vrot.lane.b32.xlu0 %v1608_v16, %s4074_s7  ;;  %v1253_v57 = vpop.permute.xlu1 %1252 }
 0x14e   : > { %1324 = vst.msk [vmem:[#allocation2 + $0x64] sm:$0xf] %vm1298_vm9, %v1253_v57  ;;  %v2379_v58 = vor.u32 %v2378_v38, %v5432_v22 }
 0x14f   : > { %v1251_v50 = vpop.permute.xlu0 %1250  ;;  %1982 = vrot.lane.b32.xlu1 %v4883_v24, %s4075_s8  ;;  %v1933_v24 = vsel %vm4566_vm6, %v3715_v46, %v1932_v41  ;;  %v5429_v41 = vld [vmem:[%s4161_s30 + $0x94] sm:$0xf] }
 0x150   : > { %1323 = vst.msk [vmem:[#allocation2 + $0x60] sm:$0xf] %vm1298_vm9, %v1251_v50  ;;  %v2564_v32 = vshll.u32 %v5429_v41, 16  ;;  %v2568_v16 = vshrl.u32 %v5429_v41, 16  ;;  %v2555_v50 = vshrl.u32 %v5441_v4, 16 }
 0x151   : > { %1980 = vrot.lane.b32.xlu0 %v4874_v37, %s4075_s8  ;;  %v1257_v36 = vpop.permute.xlu1 %1256  ;;  %v1941_v37 = vrot.slane %v1939_v44, 4  ;;  %v5451_v44 = vrot.slane %v1509_v2, 5 }
 0x152   : > { %1326 = vst.msk [vmem:[#allocation2 + $0x6c] sm:$0xf] %vm1298_vm9, %v1257_v36  ;;  %v2396_v36 = vshll.u32 %v5446_v42, 16  ;;  %v2570_v27 = vrot.slane %v2568_v16, 4  ;;  %v2384_v16 = vrot.slane %v2382_v14, 5 }
 0x153   : > { %v1255_v29 = vpop.permute.xlu0 %1254  ;;  %2014 = vrot.lane.b32.xlu1 %v1936_v35, %s4075_s8  ;;  %v1943_v52 = vsel %vm4566_vm6, %v1941_v37, %v1942_v3  ;;  %v5464_v37 = vld [vmem:[%s4161_s30 + $0x3c] sm:$0xf] }
 0x154   : > { %1325 = vst.msk [vmem:[#allocation2 + $0x68] sm:$0xf] %vm1298_vm9, %v1255_v29  ;;  %v5458_v29 = vrot.slane %v2564_v32, 5  ;;  %v2387_v3 = vshrl.u32 %v5464_v37, 16  ;;  %v2380_v32 = vrot.slane %v2379_v58, 4 }
 0x155   : > { %2012 = vrot.lane.b32.xlu0 %v1933_v24, %s4075_s8  ;;  %v1261_v39 = vpop.permute.xlu1 %1260 }
 0x156   : > { %1328 = vst.msk [vmem:[#allocation2 + $0x74] sm:$0xf] %vm1298_vm9, %v1261_v39  ;;  %v5472_v39 = vld [vmem:[%s4161_s30 + $0x98] sm:$0x1]  ;;  %v2389_v2 = vrot.slane %v2387_v3, 4  ;;  %v2385_v14 = vsel %vm4210_vm3, %v2380_v32, %v2384_v16  ;;  %v1911_v32 = vrot.slane %v5424_v30, 5 }
 0x157   : > { %v1259_v45 = vpop.permute.xlu0 %1258  ;;  %1986 = vrot.lane.b32.xlu1 %v4912_v10, %s4075_s8  ;;  %v5407_v10 = vrot.slane %v1482_v1, 4  ;;  %v5480_v1 = vld [vmem:[%s4161_s30 + $0xa0] sm:$0xf] }
 0x158   : > { %1327 = vst.msk [vmem:[#allocation2 + $0x70] sm:$0xf] %vm1298_vm9, %v1259_v45  ;;  %v2557_v45 = vrot.slane %v2555_v50, 4  ;;  %v2588_v40 = vshll.u32 %v5480_v1, 16  ;;  %v2592_v18 = vshrl.u32 %v5480_v1, 16 }
 0x159   : > { %1984 = vrot.lane.b32.xlu0 %v4916_v8, %s4075_s8  ;;  %v1265_v7 = vpop.permute.xlu1 %1264  ;;  %v1502_v8 = vrot.slane %v1500_v26, 4  ;;  %v1488_v12 = vsel %vm4210_vm3, %v5407_v10, %v5401_v9  ;;  %v2560_v26 = vrot.slane %v2558_v54, 5  ;;  %v5502_v50 = vld [vmem:[%s4161_s30 + $0x44] sm:$0x1] }
 0x15a   : > { %1330 = vst.msk [vmem:[#allocation2 + $0x7c] sm:$0xf] %vm1298_vm9, %v1265_v7  ;;  %v2369_v7 = vor.u32 %v2368_v6, %v2365_v17  ;;  %v2582_v6 = vshll.u32 %v5493_v53, 16 }
 0x15b   : > { %v1263_v5 = vpop.permute.xlu0 %1262  ;;  %2018 = vrot.lane.b32.xlu1 %v1943_v52, %s4075_s8  ;;  %v1506_v46 = vor.u32 %v1505_v31, %v1502_v8  ;;  %v2390_v52 = vshll.u32 %v5464_v37, 16  ;;  %v5485_v31 = vrot.slane %v2396_v36, 5  ;;  %v2594_v36 = vrot.slane %v2592_v18, 4 }
 0x15c   : > { %1329 = vst.msk [vmem:[#allocation2 + $0x78] sm:$0xf] %vm1298_vm9, %v1263_v5  ;;  %v3711_v5 = vrot.slane %v5365_v13, 9  ;;  %v2571_v13 = vor.u32 %v2570_v27, %v5458_v29 }
 0x15d   : > { %2016 = vrot.lane.b32.xlu0 %v1940_v59, %s4075_s8  ;;  %v1718_v20 = vpop.permute.xlu1 %1717  ;;  %v5455_v24 = vrot.slane %v1506_v46, 4  ;;  %v1904_v59 = vrot.slane %v5383_v51, 5  ;;  %v2392_v38 = vrot.slane %v2390_v52, 5  ;;  %v2370_v46 = vrot.slane %v2369_v7, 4 }
 0x15e   : > { %1813 = vst.msk [vmem:[#allocation2 + $0x4] sm:$0xf] %vm1811_vm11, %v1718_v20  ;;  %v2574_v20 = vshll.u32 %v5472_v39, 16  ;;  %v2572_v27 = vrot.slane %v2571_v13, 4  ;;  %v3712_v13 = vrot.slane %v5388_v47, 9 }
 0x15f   : > { %v1716_v25 = vpop.permute.xlu0 %1715  ;;  %2195 = vrot.lane.b32.xlu1 %v5405_v61, %s4076_s9  ;;  %v1512_v23 = vsel %vm4210_vm3, %v5455_v24, %v5451_v44  ;;  %v5514_v3 = vsel %vm4566_vm6, %v3711_v5, %v1904_v59  ;;  %v2375_v7 = vsel %vm4210_vm3, %v2370_v46, %v5432_v22  ;;  %v2393_v5 = vor.u32 %v2392_v38, %v2389_v2 }
 0x160   : > { %1812 = vst.msk [vmem:[#allocation2] sm:$0xf] %vm1811_vm11, %v1716_v25  ;;  %v2579_v25 = vshrl.u32 %v5493_v53, 16  ;;  %v2576_v34 = vrot.slane %v2574_v20, 5  ;;  %v5548_v46 = vsel %vm4566_vm6, %v3712_v13, %v1911_v32  ;;  %v2918_v13 = vrot.slane %v5472_v39, 5 }
 0x161   : > { %2193 = vrot.lane.b32.xlu0 %v5413_v48, %s4076_s9  ;;  %v1722_v57 = vpop.permute.xlu1 %1721  ;;  %v2394_v38 = vrot.slane %v2393_v5, 4 }
 0x162   : > { %1815 = vst.msk [vmem:[#allocation2 + $0xc] sm:$0xf] %vm1811_vm11, %v1722_v57  ;;  %v2561_v57 = vor.u32 %v2560_v26, %v2557_v45  ;;  %v2581_v58 = vrot.slane %v2579_v25, 4  ;;  %v2403_v45 = vor.u32 %v2402_v56, %v5485_v31  ;;  %v2406_v26 = vshll.u32 %v5502_v50, 16 }
 0x163   : > { %v1720_v35 = vpop.permute.xlu0 %1719  ;;  %2227 = vrot.lane.b32.xlu1 %v5429_v41, %s4076_s9  ;;  %v2577_v56 = vsel %vm4210_vm3, %v2572_v27, %v2576_v34  ;;  %v2399_v34 = vsel %vm4210_vm3, %v2394_v38, %v5485_v31  ;;  %v2862_v31 = vrot.slane %v5449_v19, 5 }
 0x164   : > { %1814 = vst.msk [vmem:[#allocation2 + $0x8] sm:$0xf] %vm1811_vm11, %v1720_v35  ;;  %v5505_v35 = vrot.slane %v2588_v40, 5  ;;  %v5526_v40 = vld [vmem:[%s4161_s30 + $0xa4] sm:$0x1]  ;;  %v2404_v20 = vrot.slane %v2403_v45, 4 }
 0x165   : > { %2225 = vrot.lane.b32.xlu0 %v5441_v4, %s4076_s9  ;;  %v1726_v21 = vpop.permute.xlu1 %1725  ;;  %v2408_v22 = vrot.slane %v2406_v26, 5  ;;  %v2598_v25 = vshll.u32 %v5526_v40, 16 }
 0x166   : > { %1817 = vst.msk [vmem:[#allocation2 + $0x14] sm:$0xf] %vm1811_vm11, %v1726_v21  ;;  %v2584_v21 = vrot.slane %v2582_v6, 5  ;;  %v2595_v2 = vor.u32 %v2594_v36, %v5505_v35 }
 0x167   : > { %v1724_v8 = vpop.permute.xlu0 %1723  ;;  %2199 = vrot.lane.b32.xlu1 %v5446_v42, %s4076_s9  ;;  %v2600_v36 = vrot.slane %v2598_v25, 5 }
 0x168   : > { %1816 = vst.msk [vmem:[#allocation2 + $0x10] sm:$0xf] %vm1811_vm11, %v1724_v8  ;;  %v2562_v8 = vrot.slane %v2561_v57, 4  ;;  %v2859_v57 = vrot.slane %v5405_v61, 5  ;;  %v2915_v61 = vrot.slane %v5429_v41, 5 }
 0x169   : > { %2197 = vrot.lane.b32.xlu0 %v5464_v37, %s4076_s9  ;;  %v1730_v17 = vpop.permute.xlu1 %1729  ;;  %v5571_v41 = vld [vmem:[%s4161_s30 + $0xa0] sm:$0xf] }
 0x16a   : > { %1819 = vst.msk [vmem:[#allocation2 + $0x1c] sm:$0xf] %vm1811_vm11, %v1730_v17  ;;  %v2567_v47 = vsel %vm4210_vm3, %v2562_v8, %v5458_v29  ;;  %v2585_v17 = vor.u32 %v2584_v21, %v2581_v58  ;;  %v2409_v29 = vsel %vm4210_vm3, %v2404_v20, %v2408_v22  ;;  %v2861_v26 = vrot.slane %v2859_v57, 4 }
 0x16b   : > { %v1728_v54 = vpop.permute.xlu0 %1727  ;;  %2231 = vrot.lane.b32.xlu1 %v5480_v1, %s4076_s9  ;;  %v3771_v21 = vrot.slane %v5413_v48, 9  ;;  %v1629_v5 = vshll.u32 %v5571_v41, 16  ;;  %v2866_v48 = vrot.slane %v5446_v42, 5 }
 0x16c   : > { %1818 = vst.msk [vmem:[#allocation2 + $0x18] sm:$0xf] %vm1811_vm11, %v1728_v54  ;;  %v2596_v54 = vrot.slane %v2595_v2, 4  ;;  %v2586_v58 = vrot.slane %v2585_v17, 4  ;;  %v2863_v19 = vsel %vm4566_vm6, %v2861_v26, %v2862_v31  ;;  %v3779_v2 = vrot.slane %v5441_v4, 9 }
 0x16d   : > { %2229 = vrot.lane.b32.xlu0 %v5493_v53, %s4076_s9  ;;  %v1734_v52 = vpop.permute.xlu1 %1733  ;;  %v2860_v42 = vsel %vm4566_vm6, %v3771_v21, %v2859_v57  ;;  %v5592_v17 = vrot.slane %v1629_v5, 5  ;;  %v2922_v4 = vrot.slane %v5480_v1, 5  ;;  %v2868_v57 = vrot.slane %v2866_v48, 4  ;;  %v5609_v26 = vld [vmem:[%s4161_s30 + $0xac] sm:$0xf] }
 0x16e   : > { %1821 = vst.msk [vmem:[#allocation2 + $0x24] sm:$0xf] %vm1811_vm11, %v1734_v52  ;;  %v2601_v45 = vsel %vm4210_vm3, %v2596_v54, %v2600_v36  ;;  %v5602_v54 = vld [vmem:[%s4161_s30 + $0xa4] sm:$0x1]  ;;  %v1653_v31 = vshll.u32 %v5609_v26, 16  ;;  %v2925_v5 = vrot.slane %v5526_v40, 5 }
 0x16f   : > { %v1732_v18 = vpop.permute.xlu0 %1731  ;;  %2708 = vrot.lane.b32.xlu1 %v2385_v14, %s4077_s10  ;;  %v1639_v21 = vshll.u32 %v5602_v54, 16  ;;  %v1949_v0 = vrot.slane %v5602_v54, 5  ;;  %v1899_v54 = vrot.slane %v1897_v15, 4 }
 0x170   : > { %1820 = vst.msk [vmem:[#allocation2 + $0x20] sm:$0xf] %vm1811_vm11, %v1732_v18  ;;  %v1633_v18 = vshrl.u32 %v5571_v41, 16 }
 0x171   : > { %2706 = vrot.lane.b32.xlu0 %v2375_v7, %s4077_s10  ;;  %v1750_v16 = vpop.permute.xlu1 %1749  ;;  %v2591_v7 = vsel %vm4210_vm3, %v2586_v58, %v5505_v35  ;;  %v2917_v35 = vrot.slane %v2915_v61, 4 }
 0x172   : > { %1829 = vst.msk [vmem:[#allocation2 + $0x44] sm:$0xf] %vm1811_vm11, %v1750_v16  ;;  %v3985_v16 = vld [vmem:[%s4161_s30 + $0x4c] sm:$0xf]  ;;  %v1635_v39 = vrot.slane %v1633_v18, 4 }
 0x173   : > { %v1748_v6 = vpop.permute.xlu0 %1747  ;;  %2740 = vrot.lane.b32.xlu1 %v2577_v56, %s4077_s10  ;;  %v5583_v56 = vld [vmem:[%s4161_s30 + $0x9c] sm:$0xf] }
 0x174   : > { %1828 = vst.msk [vmem:[#allocation2 + $0x40] sm:$0xf] %vm1811_vm11, %v1748_v6  ;;  %v1620_v20 = vshrl.u32 %v5583_v56, 16  ;;  %v1623_v22 = vshll.u32 %v5583_v56, 16  ;;  %v2919_v6 = vsel %vm4566_vm6, %v2917_v35, %v2918_v13 }
 0x175   : > { %2738 = vrot.lane.b32.xlu0 %v2567_v47, %s4077_s10  ;;  %v1754_v27 = vpop.permute.xlu1 %1753  ;;  %v1465_v47 = vshrl.u32 %v3985_v16, 16 }
 0x176   : > { %1831 = vst.msk [vmem:[#allocation2 + $0x4c] sm:$0xf] %vm1811_vm11, %v1754_v27  ;;  %v1622_v36 = vrot.slane %v1620_v20, 4  ;;  %v1625_v27 = vrot.slane %v1623_v22, 5  ;;  %v5630_v22 = vld [vmem:[%s4161_s30 + $0x50] sm:$0x1] }
 0x177   : > { %v1752_v14 = vpop.permute.xlu0 %1751  ;;  %2712 = vrot.lane.b32.xlu1 %v2409_v29, %s4077_s10  ;;  %v2869_v29 = vrot.slane %v5502_v50, 5  ;;  %v1467_v1 = vrot.slane %v1465_v47, 4  ;;  %v1657_v50 = vshrl.u32 %v5609_v26, 16  ;;  %v1471_v47 = vshll.u32 %v5630_v22, 16 }
 0x178   : > { %1830 = vst.msk [vmem:[#allocation2 + $0x48] sm:$0xf] %vm1811_vm11, %v1752_v14  ;;  %v2916_v14 = vsel %vm4566_vm6, %v3779_v2, %v2915_v61  ;;  %v5618_v61 = vld [vmem:[%s4161_s30 + $0xa8] sm:$0xf]  ;;  %v1626_v20 = vor.u32 %v1625_v27, %v1622_v36  ;;  %v5643_v36 = vld [vmem:[%s4161_s30 + $0xb0] sm:$0x1] }
 0x179   : > { %2710 = vrot.lane.b32.xlu0 %v2399_v34, %s4077_s10  ;;  %v1975_v52 = vpop.permute.xlu1 %1974  ;;  %v3772_v34 = vrot.slane %v5464_v37, 9  ;;  %v1636_v37 = vor.u32 %v1635_v39, %v5592_v17  ;;  %v1647_v18 = vshll.u32 %v5618_v61, 16  ;;  %v1468_v16 = vor.u32 %v1467_v1, %v5110_v43 }
 0x17a   : > { %2070 = vst.msk [vmem:[#allocation2 + $0x4] sm:$0xf] %vm2068_vm12, %v1975_v52  ;;  %v1644_v52 = vshrl.u32 %v5618_v61, 16  ;;  %v1956_v15 = vrot.slane %v5643_v36, 5 }
 0x17b   : > { %v1973_v8 = vpop.permute.xlu0 %1972  ;;  %2744 = vrot.lane.b32.xlu1 %v2601_v45, %s4077_s10  ;;  %v2867_v13 = vsel %vm4566_vm6, %v3772_v34, %v2866_v48  ;;  %v1637_v40 = vrot.slane %v1636_v37, 4  ;;  %v1649_v39 = vrot.slane %v1647_v18, 5  ;;  %v1946_v18 = vrot.slane %v5571_v41, 5 }
 0x17c   : > { %2069 = vst.msk [vmem:[#allocation2] sm:$0xf] %vm2068_vm12, %v1973_v8  ;;  %v2924_v8 = vrot.slane %v2922_v4, 4 }
 0x17d   : > { %2742 = vrot.lane.b32.xlu0 %v2591_v7, %s4077_s10  ;;  %v2007_v25 = vpop.permute.xlu1 %2006  ;;  %v2870_v7 = vsel %vm4566_vm6, %v2868_v57, %v2869_v29  ;;  %v1627_v29 = vrot.slane %v1626_v20, 4  ;;  %v1948_v43 = vrot.slane %v1946_v18, 4 }
 0x17e   : > { %2086 = vst.msk [vmem:[#allocation2 + $0x44] sm:$0xf] %vm2068_vm12, %v2007_v25  ;;  %v1655_v25 = vrot.slane %v1653_v31, 5  ;;  %v2926_v48 = vsel %vm4566_vm6, %v2924_v8, %v2925_v5 }
 0x17f   : > { %v2005_v38 = vpop.permute.xlu0 %2004  ;;  %2965 = vrot.lane.b32.xlu1 %v2863_v19, %s4078_s27  ;;  %v3780_v19 = vrot.slane %v5493_v53, 9  ;;  %v1659_v53 = vrot.slane %v1657_v50, 4  ;;  %v1632_v31 = vsel %vm4210_vm3, %v1627_v29, %v5592_v17  ;;  %v5718_v29 = vld [vmem:[%s4161_s30 + $0x4c] sm:$0xf] }
 0x180   : > { %2085 = vst.msk [vmem:[#allocation2 + $0x40] sm:$0xf] %vm2068_vm12, %v2005_v38  ;;  %v1646_v38 = vrot.slane %v1644_v52, 4 }
 0x181   : > { %2963 = vrot.lane.b32.xlu0 %v2860_v42, %s4078_s27  ;;  %v1979_v58 = vpop.permute.xlu1 %1978  ;;  %v1641_v42 = vrot.slane %v1639_v21, 5  ;;  %v2923_v57 = vsel %vm4566_vm6, %v3780_v19, %v2922_v4  ;;  %v1660_v1 = vor.u32 %v1659_v53, %v1655_v25  ;;  %v1663_v4 = vshll.u32 %v5643_v36, 16  ;;  %v5724_v36 = vld [vmem:[%s4161_s30 + $0x48] sm:$0xf] }
 0x182   : > { %2072 = vst.msk [vmem:[#allocation2 + $0xc] sm:$0xf] %vm2068_vm12, %v1979_v58  ;;  %v1469_v58 = vrot.slane %v1468_v16, 4  ;;  %v1650_v50 = vor.u32 %v1649_v39, %v1646_v38  ;;  %v1950_v53 = vsel %vm4566_vm6, %v1948_v43, %v1949_v0 }
 0x183   : > { %v1977_v45 = vpop.permute.xlu0 %1976  ;;  %2997 = vrot.lane.b32.xlu1 %v2919_v6, %s4078_s27  ;;  %v1642_v34 = vsel %vm4210_vm3, %v1637_v40, %v1641_v42  ;;  %v1661_v52 = vrot.slane %v1660_v1, 4  ;;  %v1953_v42 = vrot.slane %v5609_v26, 5  ;;  %v3718_v26 = vrot.slane %v5618_v61, 9 }
 0x184   : > { %2071 = vst.msk [vmem:[#allocation2 + $0x8] sm:$0xf] %vm2068_vm12, %v1977_v45  ;;  %v1651_v5 = vrot.slane %v1650_v50, 4 }
 0x185   : > { %2995 = vrot.lane.b32.xlu0 %v2916_v14, %s4078_s27  ;;  %v2011_v35 = vpop.permute.xlu1 %2010  ;;  %v1473_v14 = vrot.slane %v1471_v47, 5 }
 0x186   : > { %2088 = vst.msk [vmem:[#allocation2 + $0x4c] sm:$0xf] %vm2068_vm12, %v2011_v35  ;;  %v1892_v35 = vrot.slane %v1890_v11, 4  ;;  %v1656_v40 = vsel %vm4210_vm3, %v1651_v5, %v1655_v25 }
 0x187   : > { %v2009_v2 = vpop.permute.xlu0 %2008  ;;  %2969 = vrot.lane.b32.xlu1 %v2870_v7, %s4078_s27  ;;  %v1474_v21 = vsel %vm4210_vm3, %v1469_v58, %v1473_v14  ;;  %v1665_v7 = vrot.slane %v1663_v4, 5  ;;  %v2414_v58 = vshll.u32 %v5724_v36, 16  ;;  %v5732_v4 = vld [vmem:[%s4161_s30 + $0xac] sm:$0xf] }
 0x188   : > { %2087 = vst.msk [vmem:[#allocation2 + $0x48] sm:$0xf] %vm2068_vm12, %v2009_v2  ;;  %v2612_v50 = vshll.u32 %v5732_v4, 16 }
 0x189   : > { %2967 = vrot.lane.b32.xlu0 %v2867_v13, %s4078_s27  ;;  %v2188_v6 = vpop.permute.xlu1 %2187  ;;  %v1666_v19 = vsel %vm4210_vm3, %v1661_v52, %v1665_v7  ;;  %v3988_v13 = vld [vmem:[%s4161_s30 + $0x44] sm:$0x1] }
 0x18a   : > { %2283 = vst.msk [vmem:[#allocation2 + $0x4] sm:$0xf] %vm2281_vm13, %v2188_v6  ;;  %v1893_v20 = vrot.slane %v3988_v13, 5  ;;  %v5754_v13 = vld [vmem:[%s4161_s30 + $0x54] sm:$0xf] }
 0x18b   : > { %v2186_v27 = vpop.permute.xlu0 %2185  ;;  %3001 = vrot.lane.b32.xlu1 %v2926_v48, %s4078_s27 }
 0x18c   : > { %2282 = vst.msk [vmem:[#allocation2] sm:$0xf] %vm2281_vm13, %v2186_v27  ;;  %v1894_v33 = vsel %vm4566_vm6, %v1892_v35, %v1893_v20  ;;  %v2424_v27 = vshrl.u32 %v5718_v29, 16  ;;  %v5757_v20 = vld [vmem:[%s4161_s30 + $0x50] sm:$0x1] }
 0x18d   : > { %2999 = vrot.lane.b32.xlu0 %v2923_v57, %s4078_s27  ;;  %v2220_v45 = vpop.permute.xlu1 %2219  ;;  %v1954_v57 = vsel %vm4566_vm6, %v3718_v26, %v1953_v42 }
 0x18e   : > { %2299 = vst.msk [vmem:[#allocation2 + $0x44] sm:$0xf] %vm2281_vm13, %v2220_v45  ;;  %v5735_v45 = vld [vmem:[%s4161_s30 + $0xa8] sm:$0xf]  ;;  %v2426_v52 = vrot.slane %v2424_v27, 4 }
 0x18f   : > { %v2218_v37 = vpop.permute.xlu0 %2217  ;;  %1765 = vrot.lane.b32.xlu1 %v1642_v34, %s4074_s7  ;;  %v2411_v34 = vshrl.u32 %v5724_v36, 16  ;;  %v2606_v5 = vshll.u32 %v5735_v45, 16 }
 0x190   : > { %2298 = vst.msk [vmem:[#allocation2 + $0x40] sm:$0xf] %vm2281_vm13, %v2218_v37  ;;  %v2616_v37 = vshrl.u32 %v5732_v4, 16 }
 0x191   : > { %1763 = vrot.lane.b32.xlu0 %v1632_v31, %s4074_s7  ;;  %v2192_v8 = vpop.permute.xlu1 %2191  ;;  %v2413_v7 = vrot.slane %v2411_v34, 4  ;;  %v2608_v0 = vrot.slane %v2606_v5, 5 }
 0x192   : > { %2285 = vst.msk [vmem:[#allocation2 + $0xc] sm:$0xf] %vm2281_vm13, %v2192_v8  ;;  %v2416_v8 = vrot.slane %v2414_v58, 5 }
 0x193   : > { %v2190_v17 = vpop.permute.xlu0 %2189  ;;  %1737 = vrot.lane.b32.xlu1 %v1474_v21, %s4074_s7  ;;  %v2603_v21 = vshrl.u32 %v5735_v45, 16 }
 0x194   : > { %2284 = vst.msk [vmem:[#allocation2 + $0x8] sm:$0xf] %vm2281_vm13, %v2190_v17  ;;  %v5749_v17 = vld [vmem:[%s4161_s30 + $0x58] sm:$0xf] }
 0x195   : > { %1735 = vrot.lane.b32.xlu0 %v1464_v60, %s4074_s7  ;;  %v2224_v2 = vpop.permute.xlu1 %2223  ;;  %v3717_v60 = vrot.slane %v5583_v56, 9  ;;  %v1900_v56 = vrot.slane %v5630_v22, 5  ;;  %v2448_v35 = vshrl.u32 %v5749_v17, 16  ;;  %v2605_v43 = vrot.slane %v2603_v21, 4 }
 0x196   : > { %2301 = vst.msk [vmem:[#allocation2 + $0x4c] sm:$0xf] %vm2281_vm13, %v2224_v2 }
 0x197   : > { %v2222_v41 = vpop.permute.xlu0 %2221  ;;  %1769 = vrot.lane.b32.xlu1 %v1666_v19, %s4074_s7  ;;  %v1947_v16 = vsel %vm4566_vm6, %v3717_v60, %v1946_v18  ;;  %v1901_v49 = vsel %vm4566_vm6, %v1899_v54, %v1900_v56  ;;  %v2444_v19 = vshll.u32 %v5749_v17, 16  ;;  %v2438_v60 = vshll.u32 %v5754_v13, 16 }
 0x198   : > { %2300 = vst.msk [vmem:[#allocation2 + $0x48] sm:$0xf] %vm2281_vm13, %v2222_v41  ;;  %v5762_v41 = vrot.slane %v2612_v50, 5  ;;  %v2450_v56 = vrot.slane %v2448_v35, 4 }
 0x199   : > { %1767 = vrot.lane.b32.xlu0 %v1656_v40, %s4074_s7  ;;  %v2701_v11 = vpop.permute.xlu1 %2700  ;;  %v2435_v40 = vshrl.u32 %v5754_v13, 16  ;;  %v5774_v54 = vrot.slane %v2444_v19, 5 }
 0x19a   : > { %2796 = vst.msk [vmem:[#allocation2 + $0x4] sm:$0xf] %vm2794_vm14, %v2701_v11 }
 0x19b   : > { %v2699_v25 = vpop.permute.xlu0 %2698  ;;  %1990 = vrot.lane.b32.xlu1 %v1894_v33, %s4075_s8  ;;  %v2618_v33 = vrot.slane %v2616_v37, 4  ;;  %v2451_v19 = vor.u32 %v2450_v56, %v5774_v54 }
 0x19c   : > { %2795 = vst.msk [vmem:[#allocation2] sm:$0xf] %vm2794_vm14, %v2699_v25  ;;  %v2430_v25 = vshll.u32 %v5757_v20, 16 }
 0x19d   : > { %1988 = vrot.lane.b32.xlu0 %v5174_v55, %s4075_s8  ;;  %v2733_v48 = vpop.permute.xlu1 %2732  ;;  %v1955_v55 = vrot.slane %v1953_v42, 4  ;;  %v5772_v42 = vld [vmem:[%s4161_s30 + $0xb0] sm:$0x1] }
 0x19e   : > { %2812 = vst.msk [vmem:[#allocation2 + $0x44] sm:$0xf] %vm2794_vm14, %v2733_v48  ;;  %v2417_v48 = vor.u32 %v2416_v8, %v2413_v7 }
 0x19f   : > { %v2731_v47 = vpop.permute.xlu0 %2730  ;;  %2022 = vrot.lane.b32.xlu1 %v1950_v53, %s4075_s8  ;;  %v1957_v39 = vsel %vm4566_vm6, %v1955_v55, %v1956_v15  ;;  %v5778_v55 = vld [vmem:[%s4161_s30 + $0xb8] sm:$0xf] }
 0x1a0   : > { %2811 = vst.msk [vmem:[#allocation2 + $0x40] sm:$0xf] %vm2794_vm14, %v2731_v47  ;;  %v2437_v47 = vrot.slane %v2435_v40, 4  ;;  %v2636_v15 = vshll.u32 %v5778_v55, 16  ;;  %v2640_v26 = vshrl.u32 %v5778_v55, 16  ;;  %v2418_v58 = vrot.slane %v2417_v48, 4 }
 0x1a1   : > { %2020 = vrot.lane.b32.xlu0 %v1947_v16, %s4075_s8  ;;  %v2705_v22 = vpop.permute.xlu1 %2704 }
 0x1a2   : > { %2798 = vst.msk [vmem:[#allocation2 + $0xc] sm:$0xf] %vm2794_vm14, %v2705_v22  ;;  %v5786_v22 = vld [vmem:[%s4161_s30 + $0xb4] sm:$0xf]  ;;  %v5800_v21 = vrot.slane %v2636_v15, 5 }
 0x1a3   : > { %v2703_v38 = vpop.permute.xlu0 %2702  ;;  %1994 = vrot.lane.b32.xlu1 %v1901_v49, %s4075_s8  ;;  %v2630_v34 = vshll.u32 %v5786_v22, 16 }
 0x1a4   : > { %2797 = vst.msk [vmem:[#allocation2 + $0x8] sm:$0xf] %vm2794_vm14, %v2703_v38  ;;  %v2619_v38 = vor.u32 %v2618_v33, %v5762_v41 }
 0x1a5   : > { %1992 = vrot.lane.b32.xlu0 %v5222_v62, %s4075_s8  ;;  %v2737_v6 = vpop.permute.xlu1 %2736  ;;  %v2420_v62 = vshll.u32 %v5718_v29, 16 }
 0x1a6   : > { %2814 = vst.msk [vmem:[#allocation2 + $0x4c] sm:$0xf] %vm2794_vm14, %v2737_v6  ;;  %v2440_v6 = vrot.slane %v2438_v60, 5  ;;  %v2620_v7 = vrot.slane %v2619_v38, 4  ;;  %v5815_v60 = vld [vmem:[%s4161_s30 + $0xbc] sm:$0x1] }
 0x1a7   : > { %v2735_v61 = vpop.permute.xlu0 %2734  ;;  %2026 = vrot.lane.b32.xlu1 %v1957_v39, %s4075_s8  ;;  %v5738_v31 = vrot.slane %v2420_v62, 5  ;;  %v2622_v39 = vshll.u32 %v5772_v42, 16  ;;  %v2432_v62 = vrot.slane %v2430_v25, 5 }
 0x1a8   : > { %2813 = vst.msk [vmem:[#allocation2 + $0x48] sm:$0xf] %vm2794_vm14, %v2735_v61 }
 0x1a9   : > { %2024 = vrot.lane.b32.xlu0 %v1954_v57, %s4075_s8  ;;  %v2958_v14 = vpop.permute.xlu1 %2957  ;;  %v2427_v11 = vor.u32 %v2426_v52, %v5738_v31  ;;  %v2627_v57 = vshrl.u32 %v5786_v22, 16  ;;  %v2642_v52 = vrot.slane %v2640_v26, 4  ;;  %v2624_v8 = vrot.slane %v2622_v39, 5 }
 0x1aa   : > { %3053 = vst.msk [vmem:[#allocation2 + $0x4] sm:$0xf] %vm3051_vm15, %v2958_v14  ;;  %v2609_v14 = vor.u32 %v2608_v0, %v2605_v43  ;;  %v2423_v33 = vsel %vm4210_vm3, %v2418_v58, %v5738_v31  ;;  %v2441_v0 = vor.u32 %v2440_v6, %v2437_v47  ;;  %v2452_v31 = vrot.slane %v2451_v19, 4 }
 0x1ab   : > { %v2956_v1 = vpop.permute.xlu0 %2955  ;;  %2203 = vrot.lane.b32.xlu1 %v5718_v29, %s4076_s9  ;;  %v2428_v61 = vrot.slane %v2427_v11, 4  ;;  %v2629_v5 = vrot.slane %v2627_v57, 4  ;;  %v2643_v48 = vor.u32 %v2642_v52, %v5800_v21  ;;  %v2873_v6 = vrot.slane %v5718_v29, 5 }
 0x1ac   : > { %3052 = vst.msk [vmem:[#allocation2] sm:$0xf] %vm3051_vm15, %v2956_v1  ;;  %v5796_v1 = vld [vmem:[%s4161_s30 + $0x5c] sm:$0x1]  ;;  %v2610_v43 = vrot.slane %v2609_v14, 4  ;;  %v2442_v15 = vrot.slane %v2441_v0, 4 }
 0x1ad   : > { %2201 = vrot.lane.b32.xlu0 %v5724_v36, %s4076_s9  ;;  %v2990_v18 = vpop.permute.xlu1 %2989  ;;  %v2454_v35 = vshll.u32 %v5796_v1, 16  ;;  %v2929_v29 = vrot.slane %v5732_v4, 5  ;;  %v2936_v0 = vrot.slane %v5778_v55, 5 }
 0x1ae   : > { %3069 = vst.msk [vmem:[#allocation2 + $0x44] sm:$0xf] %vm3051_vm15, %v2990_v18  ;;  %v2433_v18 = vsel %vm4210_vm3, %v2428_v61, %v2432_v62 }
 0x1af   : > { %v2988_v2 = vpop.permute.xlu0 %2987  ;;  %2235 = vrot.lane.b32.xlu1 %v5732_v4, %s4076_s9  ;;  %v2456_v56 = vrot.slane %v2454_v35, 5  ;;  %v2880_v4 = vrot.slane %v5749_v17, 5 }
 0x1b0   : > { %3068 = vst.msk [vmem:[#allocation2 + $0x40] sm:$0xf] %vm3051_vm15, %v2988_v2  ;;  %v2632_v2 = vrot.slane %v2630_v34, 5 }
 0x1b1   : > { %2233 = vrot.lane.b32.xlu0 %v5735_v45, %s4076_s9  ;;  %v2962_v53 = vpop.permute.xlu1 %2961  ;;  %v2457_v57 = vsel %vm4210_vm3, %v2452_v31, %v2456_v56  ;;  %v3774_v56 = vrot.slane %v5754_v13, 9 }
 0x1b2   : > { %3055 = vst.msk [vmem:[#allocation2 + $0xc] sm:$0xf] %vm3051_vm15, %v2962_v53  ;;  %v2625_v53 = vsel %vm4210_vm3, %v2620_v7, %v2624_v8  ;;  %v2633_v26 = vor.u32 %v2632_v2, %v2629_v5  ;;  %v1489_v5 = vshrl.u32 %v5383_v51, 16  ;;  %v5866_v2 = vld [vmem:[%s4161_s30 + $0xb8] sm:$0xf] }
 0x1b3   : > { %v2960_v16 = vpop.permute.xlu0 %2959  ;;  %v3959_v49 = vld [vmem:[#allocation2] sm:$0xff]   ;;  %2207 = vrot.lane.b32.xlu1 %v5749_v17, %s4076_s9 }
 0x1b4   : > { %3054 = vst.msk [vmem:[#allocation2 + $0x8] sm:$0xf] %vm3051_vm15, %v2960_v16  ;;  %3852 = vmatprep.mubr.msk.bf16.mxu0 %vm3223_vm0, %v3959_v49  ;;  %v2646_v16 = vshll.u32 %v5815_v60, 16  ;;  %v2615_v49 = vsel %vm4210_vm3, %v2610_v43, %v5762_v41  ;;  %v2644_v41 = vrot.slane %v2643_v48, 4  ;;  %v2634_v34 = vrot.slane %v2633_v26, 4 }
 0x1b5   : > { %2205 = vrot.lane.b32.xlu0 %v5754_v13, %s4076_s9  ;;  %v2994_v27 = vpop.permute.xlu1 %2993  ;;  %v1491_v43 = vrot.slane %v1489_v5, 4  ;;  %v2938_v26 = vrot.slane %v2936_v0, 4 }
 0x1b6   : > { %3071 = vst.msk [vmem:[#allocation2 + $0x4c] sm:$0xf] %vm3051_vm15, %v2994_v27  ;;  %v2648_v61 = vrot.slane %v2646_v16, 5  ;;  %v2447_v27 = vsel %vm4210_vm3, %v2442_v15, %v5774_v54  ;;  %v3773_v54 = vrot.slane %v5724_v36, 9  ;;  %v2639_v7 = vsel %vm4210_vm3, %v2634_v34, %v5800_v21  ;;  %v5886_v16 = vld [vmem:[%s4161_s30 + $0x5c] sm:$0x1] }
 0x1b7   : > { %v2992_v50 = vpop.permute.xlu0 %2991  ;;  %v3961_v37 = vld [vmem:[#allocation2 + $0x40] sm:$0xff]   ;;  %2239 = vrot.lane.b32.xlu1 %v5778_v55, %s4076_s9  ;;  %v2932_v21 = vrot.slane %v5772_v42, 5  ;;  %v2883_v42 = vrot.slane %v5796_v1, 5  ;;  %v2881_v34 = vsel %vm4566_vm6, %v3774_v56, %v2880_v4  ;;  %v5938_v56 = vld [vmem:[%s4161_s30 + $0xc8] sm:$0x1] }
 0x1b8   : > { %3070 = vst.msk [vmem:[#allocation2 + $0x48] sm:$0xf] %vm3051_vm15, %v2992_v50  ;;  %3868 = vmatprep.mubr.msk.bf16.mxu1 %vm3223_vm0, %v3961_v37  ;;  %v2649_v14 = vsel %vm4210_vm3, %v2644_v41, %v2648_v61  ;;  %v2875_v50 = vrot.slane %v2873_v6, 4  ;;  %v2876_v37 = vrot.slane %v5757_v20, 5  ;;  %v2931_v20 = vrot.slane %v2929_v29, 4 }
 0x1b9   : > { %2237 = vrot.lane.b32.xlu0 %v5786_v22, %s4076_s9  ;;  %v1758_v40 = vpop.permute.xlu1 %1757  ;;  %v2874_v17 = vsel %vm4566_vm6, %v3773_v54, %v2873_v6  ;;  %v1495_v6 = vshll.u32 %v5886_v16, 16 }
 0x1ba   : > { %1833 = vst.msk [vmem:[#allocation2 + $0x54] sm:$0xf] %vm1811_vm11, %v1758_v40  ;;  %v2877_v36 = vsel %vm4566_vm6, %v2875_v50, %v2876_v37  ;;  %v1677_v40 = vshll.u32 %v5866_v2, 16 }
 0x1bb   : > { %v1756_v11 = vpop.permute.xlu0 %1755  ;;  %v3962_v25 = vld [vmem:[#allocation2 + $0x8] sm:$0xff]   ;;  %2716 = vrot.lane.b32.xlu1 %v2433_v18, %s4077_s10  ;;  %v3781_v18 = vrot.slane %v5735_v45, 9  ;;  %v2882_v45 = vrot.slane %v2880_v4, 4 }
 0x1bc   : > { %1832 = vst.msk [vmem:[#allocation2 + $0x50] sm:$0xf] %vm1811_vm11, %v1756_v11  ;;  %3853 = vmatmul.mubr.msk.bf16.vlgmr.msra.gmra.mxu0 %vm3223_vm0, %v3962_v25  ;;  %v2933_v11 = vsel %vm4566_vm6, %v2931_v20, %v2932_v21  ;;  %v5878_v25 = vld [vmem:[%s4161_s30 + $0xb4] sm:$0xf] }
 0x1bd   : > { %2714 = vrot.lane.b32.xlu0 %v2423_v33, %s4077_s10  ;;  %v1762_v47 = vpop.permute.xlu1 %1761  ;;  %v1681_v33 = vshrl.u32 %v5866_v2, 16  ;;  %v1671_v31 = vshll.u32 %v5878_v25, 16  ;;  %v2930_v1 = vsel %vm4566_vm6, %v3781_v18, %v2929_v29  ;;  %v2884_v13 = vsel %vm4566_vm6, %v2882_v45, %v2883_v42  ;;  %v5927_v18 = vld [vmem:[%s4161_s30 + $0x68] sm:$0x1] }
 0x1be   : > { %1835 = vst.msk [vmem:[#allocation2 + $0x5c] sm:$0xf] %vm1811_vm11, %v1762_v47  ;;  %v1513_v47 = vshrl.u32 %v5424_v30, 16 }
 0x1bf   : > { %v1760_v38 = vpop.permute.xlu0 %1759  ;;  %v3963_v39 = vld [vmem:[#allocation2 + $0x48] sm:$0xff]   ;;  %2748 = vrot.lane.b32.xlu1 %v2625_v53, %s4077_s10  ;;  %v1668_v53 = vshrl.u32 %v5878_v25, 16  ;;  %v1683_v15 = vrot.slane %v1681_v33, 4  ;;  %v1673_v61 = vrot.slane %v1671_v31, 5 }
 0x1c0   : > { %1834 = vst.msk [vmem:[#allocation2 + $0x58] sm:$0xf] %vm1811_vm11, %v1760_v38  ;;  %3869 = vmatmul.mubr.msk.bf16.vlgmr.msra.gmra.mxu1 %vm3223_vm0, %v3963_v39  ;;  %v2939_v38 = vrot.slane %v5815_v60, 5  ;;  %v1492_v39 = vor.u32 %v1491_v43, %v5401_v9  ;;  %v1515_v29 = vrot.slane %v1513_v47, 4  ;;  %v5908_v60 = vld [vmem:[%s4161_s30 + $0xc4] sm:$0xf] }
 0x1c1   : > { %2746 = vrot.lane.b32.xlu0 %v2615_v49, %s4077_s10  ;;  %v1983_v62 = vpop.permute.xlu1 %1982  ;;  %v5890_v49 = vrot.slane %v1677_v40, 5  ;;  %v1670_v41 = vrot.slane %v1668_v53, 4  ;;  %v1705_v37 = vshrl.u32 %v5908_v60, 16  ;;  %v1519_v43 = vshll.u32 %v5927_v18, 16 }
 0x1c2   : > { %2074 = vst.msk [vmem:[#allocation2 + $0x14] sm:$0xf] %vm2068_vm12, %v1983_v62  ;;  %v3782_v62 = vrot.slane %v5786_v22, 9  ;;  %v2940_v54 = vsel %vm4566_vm6, %v2938_v26, %v2939_v38  ;;  %v1516_v42 = vor.u32 %v1515_v29, %v5451_v44 }
 0x1c3   : > { %v1981_v58 = vpop.permute.xlu0 %1980  ;;  %2720 = vrot.lane.b32.xlu1 %v2457_v57, %s4077_s10  ;;  %v5901_v57 = vld [vmem:[%s4161_s30 + $0xbc] sm:$0x1]  ;;  %v1684_v22 = vor.u32 %v1683_v15, %v5890_v49  ;;  %v1674_v21 = vor.u32 %v1673_v61, %v1670_v41  ;;  %v1707_v33 = vrot.slane %v1705_v37, 4  ;;  %v1521_v47 = vrot.slane %v1519_v43, 5 }
 0x1c4   : > { %2073 = vst.msk [vmem:[#allocation2 + $0x10] sm:$0xf] %vm2068_vm12, %v1981_v58  ;;  %v1687_v50 = vshll.u32 %v5901_v57, 16  ;;  %v2937_v20 = vsel %vm4566_vm6, %v3782_v62, %v2936_v0  ;;  %v1960_v62 = vrot.slane %v5866_v2, 5  ;;  %v1963_v24 = vrot.slane %v5901_v57, 5 }
 0x1c5   : > { %2718 = vrot.lane.b32.xlu0 %v2447_v27, %s4077_s10  ;;  %v2015_v52 = vpop.permute.xlu1 %2014  ;;  %v1675_v31 = vrot.slane %v1674_v21, 4  ;;  %v1913_v57 = vrot.slane %v1911_v32, 4  ;;  %v1970_v32 = vrot.slane %v5938_v56, 5 }
 0x1c6   : > { %2090 = vst.msk [vmem:[#allocation2 + $0x54] sm:$0xf] %vm2068_vm12, %v2015_v52  ;;  %v1493_v52 = vrot.slane %v1492_v39, 4  ;;  %v1689_v40 = vrot.slane %v1687_v50, 5  ;;  %v1962_v51 = vrot.slane %v1960_v62, 4 }
 0x1c7   : > { %v2013_v8 = vpop.permute.xlu0 %2012  ;;  %2752 = vrot.lane.b32.xlu1 %v2649_v14, %s4077_s10  ;;  %v1701_v14 = vshll.u32 %v5908_v60, 16  ;;  %v1680_v38 = vsel %vm4210_vm3, %v1675_v31, %v5890_v49 }
 0x1c8   : > { %2089 = vst.msk [vmem:[#allocation2 + $0x50] sm:$0xf] %vm2068_vm12, %v2013_v8  ;;  %v5920_v8 = vld [vmem:[%s4161_s30 + $0xc0] sm:$0xf]  ;;  %v1964_v50 = vsel %vm4566_vm6, %v1962_v51, %v1963_v24 }
 0x1c9   : > { %2750 = vrot.lane.b32.xlu0 %v2639_v7, %s4077_s10  ;;  %v1987_v19 = vpop.permute.xlu1 %1986  ;;  %v1497_v7 = vrot.slane %v1495_v6, 5  ;;  %v1692_v4 = vshrl.u32 %v5920_v8, 16  ;;  %v1695_v5 = vshll.u32 %v5920_v8, 16 }
 0x1ca   : > { %2076 = vst.msk [vmem:[#allocation2 + $0x1c] sm:$0xf] %vm2068_vm12, %v1987_v19 }
 0x1cb   : > { %v1985_v35 = vpop.permute.xlu0 %1984  ;;  %2973 = vrot.lane.b32.xlu1 %v2877_v36, %s4078_s27  ;;  %v1498_v45 = vsel %vm4210_vm3, %v1493_v52, %v1497_v7  ;;  %v1694_v0 = vrot.slane %v1692_v4, 4 }
 0x1cc   : > { %2075 = vst.msk [vmem:[#allocation2 + $0x18] sm:$0xf] %vm2068_vm12, %v1985_v35  ;;  %v1685_v35 = vrot.slane %v1684_v22, 4  ;;  %v1967_v22 = vrot.slane %v5908_v60, 5  ;;  %v3720_v60 = vrot.slane %v5920_v8, 9 }
 0x1cd   : > { %2971 = vrot.lane.b32.xlu0 %v2874_v17, %s4078_s27  ;;  %v2019_v48 = vpop.permute.xlu1 %2018  ;;  %v1703_v17 = vrot.slane %v1701_v14, 5 }
 0x1ce   : > { %2092 = vst.msk [vmem:[#allocation2 + $0x5c] sm:$0xf] %vm2068_vm12, %v2019_v48  ;;  %v1968_v8 = vsel %vm4566_vm6, %v3720_v60, %v1967_v22 }
 0x1cf   : > { %v2017_v55 = vpop.permute.xlu0 %2016  ;;  %3005 = vrot.lane.b32.xlu1 %v2933_v11, %s4078_s27  ;;  %v1697_v11 = vrot.slane %v1695_v5, 5  ;;  %v1708_v15 = vor.u32 %v1707_v33, %v1703_v17 }
 0x1d0   : > { %2091 = vst.msk [vmem:[#allocation2 + $0x58] sm:$0xf] %vm2068_vm12, %v2017_v55  ;;  %v1517_v55 = vrot.slane %v1516_v42, 4 }
 0x1d1   : > { %3003 = vrot.lane.b32.xlu0 %v2930_v1, %s4078_s27  ;;  %v2196_v27 = vpop.permute.xlu1 %2195  ;;  %v1690_v1 = vsel %vm4210_vm3, %v1685_v35, %v1689_v40  ;;  %v1698_v39 = vor.u32 %v1697_v11, %v1694_v0  ;;  %v1709_v10 = vrot.slane %v1708_v15, 4  ;;  %v6034_v0 = vld [vmem:[%s4161_s30 + $0xc4] sm:$0xf]  ;;  %v6053_v15 = vld [vmem:[%s4161_s30 + $0x6c] sm:$0xf] }
 0x1d2   : > { %2287 = vst.msk [vmem:[#allocation2 + $0x14] sm:$0xf] %vm2281_vm13, %v2196_v27  ;;  %v1522_v9 = vsel %vm4210_vm3, %v1517_v55, %v1521_v47  ;;  %v2660_v31 = vshll.u32 %v6034_v0, 16  ;;  %v6050_v47 = vld [vmem:[%s4161_s30 + $0x70] sm:$0xf] }
 0x1d3   : > { %v2194_v58 = vpop.permute.xlu0 %2193  ;;  %2977 = vrot.lane.b32.xlu1 %v2884_v13, %s4078_s27  ;;  %v1711_v13 = vshll.u32 %v5938_v56, 16  ;;  %v1699_v61 = vrot.slane %v1698_v39, 4  ;;  %v2664_v56 = vshrl.u32 %v6034_v0, 16  ;;  %v6058_v39 = vld [vmem:[%s4161_s30 + $0x68] sm:$0x1] }
 0x1d4   : > { %2286 = vst.msk [vmem:[#allocation2 + $0x10] sm:$0xf] %vm2281_vm13, %v2194_v58  ;;  %v1907_v58 = vrot.slane %v5886_v16, 5 }
 0x1d5   : > { %2975 = vrot.lane.b32.xlu0 %v2881_v34, %s4078_s27  ;;  %v2228_v36 = vpop.permute.xlu1 %2227  ;;  %v1906_v34 = vrot.slane %v1904_v59, 4  ;;  %v1704_v14 = vsel %vm4210_vm3, %v1699_v61, %v1703_v17  ;;  %v6023_v17 = vld [vmem:[%s4161_s30 + $0x60] sm:$0xf] }
 0x1d6   : > { %2303 = vst.msk [vmem:[#allocation2 + $0x54] sm:$0xf] %vm2281_vm13, %v2228_v36  ;;  %v6015_v36 = vld [vmem:[%s4161_s30 + $0x64] sm:$0xf]  ;;  %v2462_v35 = vshll.u32 %v6023_v17, 16 }
 0x1d7   : > { %v2226_v19 = vpop.permute.xlu0 %2225  ;;  %3009 = vrot.lane.b32.xlu1 %v2940_v54, %s4078_s27  ;;  %v1908_v44 = vsel %vm4566_vm6, %v1906_v34, %v1907_v58  ;;  %v2468_v21 = vshll.u32 %v6015_v36, 16  ;;  %v6074_v34 = vld [vmem:[%s4161_s30 + $0xc8] sm:$0x1] }
 0x1d8   : > { %2302 = vst.msk [vmem:[#allocation2 + $0x50] sm:$0xf] %vm2281_vm13, %v2226_v19  ;;  %v2472_v19 = vshrl.u32 %v6015_v36, 16 }
 0x1d9   : > { %3007 = vrot.lane.b32.xlu0 %v2937_v20, %s4078_s27  ;;  %v2200_v53 = vpop.permute.xlu1 %2199  ;;  %v6030_v33 = vrot.slane %v2468_v21, 5 }
 0x1da   : > { %2289 = vst.msk [vmem:[#allocation2 + $0x1c] sm:$0xf] %vm2281_vm13, %v2200_v53  ;;  %v2474_v42 = vrot.slane %v2472_v19, 4  ;;  %v2464_v53 = vrot.slane %v2462_v35, 5 }
 0x1db   : > { %v2198_v48 = vpop.permute.xlu0 %2197  ;;  %1741 = vrot.lane.b32.xlu1 %v1498_v45, %s4074_s7 }
 0x1dc   : > { %2288 = vst.msk [vmem:[#allocation2 + $0x18] sm:$0xf] %vm2281_vm13, %v2198_v48  ;;  %v6042_v48 = vld [vmem:[%s4161_s30 + $0xc0] sm:$0xf] }
 0x1dd   : > { %1739 = vrot.lane.b32.xlu0 %v1488_v12, %s4074_s7  ;;  %v2232_v26 = vpop.permute.xlu1 %2231  ;;  %v1713_v12 = vrot.slane %v1711_v13, 5  ;;  %v2654_v55 = vshll.u32 %v6042_v48, 16  ;;  %v3783_v28 = vrot.slane %v6042_v48, 9 }
 0x1de   : > { %2305 = vst.msk [vmem:[#allocation2 + $0x5c] sm:$0xf] %vm2281_vm13, %v2232_v26  ;;  %v2492_v26 = vshll.u32 %v6050_v47, 16 }
 0x1df   : > { %v2230_v6 = vpop.permute.xlu0 %2229  ;;  %1773 = vrot.lane.b32.xlu1 %v1690_v1, %s4074_s7  ;;  %v1714_v27 = vsel %vm4210_vm3, %v1709_v10, %v1713_v12  ;;  %v2651_v1 = vshrl.u32 %v6042_v48, 16  ;;  %v2483_v10 = vshrl.u32 %v6053_v15, 16  ;;  %v6063_v12 = vrot.slane %v2660_v31, 5 }
 0x1e0   : > { %2304 = vst.msk [vmem:[#allocation2 + $0x58] sm:$0xf] %vm2281_vm13, %v2230_v6  ;;  %v2656_v58 = vrot.slane %v2654_v55, 5 }
 0x1e1   : > { %1771 = vrot.lane.b32.xlu0 %v1680_v38, %s4074_s7  ;;  %v2709_v41 = vpop.permute.xlu1 %2708  ;;  %v2496_v38 = vshrl.u32 %v6050_v47, 16  ;;  %v2653_v61 = vrot.slane %v2651_v1, 4  ;;  %v2485_v24 = vrot.slane %v2483_v10, 4 }
 0x1e2   : > { %2800 = vst.msk [vmem:[#allocation2 + $0x14] sm:$0xf] %vm2794_vm14, %v2709_v41  ;;  %v2666_v41 = vrot.slane %v2664_v56, 4  ;;  %v6115_v56 = vld [vmem:[%s4161_s30 + $0xd4] sm:$0x1] }
 0x1e3   : > { %v2707_v49 = vpop.permute.xlu0 %2706  ;;  %1745 = vrot.lane.b32.xlu1 %v1522_v9, %s4074_s7 }
 0x1e4   : > { %2799 = vst.msk [vmem:[#allocation2 + $0x10] sm:$0xf] %vm2794_vm14, %v2707_v49  ;;  %v2486_v49 = vshll.u32 %v6053_v15, 16 }
 0x1e5   : > { %1743 = vrot.lane.b32.xlu0 %v1512_v23, %s4074_s7  ;;  %v2741_v29 = vpop.permute.xlu1 %2740  ;;  %v3719_v23 = vrot.slane %v5878_v25, 9  ;;  %v1914_v25 = vrot.slane %v5927_v18, 5 }
 0x1e6   : > { %2816 = vst.msk [vmem:[#allocation2 + $0x54] sm:$0xf] %vm2794_vm14, %v2741_v29 }
 0x1e7   : > { %v2739_v2 = vpop.permute.xlu0 %2738  ;;  %1777 = vrot.lane.b32.xlu1 %v1714_v27, %s4074_s7  ;;  %v1961_v54 = vsel %vm4566_vm6, %v3719_v23, %v1960_v62  ;;  %v1915_v30 = vsel %vm4566_vm6, %v1913_v57, %v1914_v25  ;;  %v2475_v62 = vor.u32 %v2474_v42, %v6030_v33  ;;  %v2478_v27 = vshll.u32 %v6058_v39, 16 }
 0x1e8   : > { %2815 = vst.msk [vmem:[#allocation2 + $0x50] sm:$0xf] %vm2794_vm14, %v2739_v2  ;;  %v2498_v2 = vrot.slane %v2496_v38, 4  ;;  %v2667_v57 = vor.u32 %v2666_v41, %v6063_v12  ;;  %v2670_v25 = vshll.u32 %v6074_v34, 16 }
 0x1e9   : > { %1775 = vrot.lane.b32.xlu0 %v1704_v14, %s4074_s7  ;;  %v2713_v59 = vpop.permute.xlu1 %2712  ;;  %v6076_v14 = vrot.slane %v2492_v26, 5  ;;  %s3826_s7 = sshll.u32 %s4061_s15, 12  ;;  %s6343_s15 = scalar_lea.sflag [#allocation4], %s208_s28 }
 0x1ea   : > { %2802 = vst.msk [vmem:[#allocation2 + $0x1c] sm:$0xf] %vm2794_vm14, %v2713_v59  ;;  %v6080_v59 = vld [vmem:[%s4161_s30 + $0xd0] sm:$0xf]  ;;  %v2672_v19 = vrot.slane %v2670_v25, 5  ;;  %s6335_s11 = scalar_lea.hbm %s6392_s3, %s3826_s7 }
 0x1eb   : > { %v2711_v16 = vpop.permute.xlu0 %2710  ;;  %1998 = vrot.lane.b32.xlu1 %v1908_v44, %s4075_s8 }
 0x1ec   : > { %2801 = vst.msk [vmem:[#allocation2 + $0x18] sm:$0xf] %vm2794_vm14, %v2711_v16  ;;  %v2684_v16 = vshll.u32 %v6080_v59, 16 }
 0x1ed   : > { %1996 = vrot.lane.b32.xlu0 %v5514_v3, %s4075_s8  ;;  %v2745_v37 = vpop.permute.xlu1 %2744  ;;  %v1969_v3 = vrot.slane %v1967_v22, 4  ;;  %v2688_v22 = vshrl.u32 %v6080_v59, 16 }
 0x1ee   : > { %2818 = vst.msk [vmem:[#allocation2 + $0x5c] sm:$0xf] %vm2794_vm14, %v2745_v37  ;;  %v2488_v37 = vrot.slane %v2486_v49, 5  ;;  %v2887_v49 = vrot.slane %v6015_v36, 5 }
 0x1ef   : > { %v2743_v52 = vpop.permute.xlu0 %2742  ;;  %2030 = vrot.lane.b32.xlu1 %v1964_v50, %s4075_s8  ;;  %v1971_v5 = vsel %vm4566_vm6, %v1969_v3, %v1970_v32  ;;  %v6088_v50 = vld [vmem:[%s4161_s30 + $0xcc] sm:$0xf]  ;;  %v2690_v21 = vrot.slane %v2688_v22, 4 }
 0x1f0   : > { %2817 = vst.msk [vmem:[#allocation2 + $0x58] sm:$0xf] %vm2794_vm14, %v2743_v52  ;;  %v2476_v52 = vrot.slane %v2475_v62, 4  ;;  %v2678_v32 = vshll.u32 %v6088_v50, 16  ;;  %v2489_v31 = vor.u32 %v2488_v37, %v2485_v24  ;;  %v2889_v24 = vrot.slane %v2887_v49, 4 }
 0x1f1   : > { %2028 = vrot.lane.b32.xlu0 %v1961_v54, %s4075_s8  ;;  %v2966_v7 = vpop.permute.xlu1 %2965  ;;  %v2675_v54 = vshrl.u32 %v6088_v50, 16 }
 0x1f2   : > { %3057 = vst.msk [vmem:[#allocation2 + $0x14] sm:$0xf] %vm3051_vm15, %v2966_v7  ;;  %v2657_v7 = vor.u32 %v2656_v58, %v2653_v61  ;;  %v2680_v42 = vrot.slane %v2678_v32, 5  ;;  %v2490_v10 = vrot.slane %v2489_v31, 4 }
 0x1f3   : > { %v2964_v4 = vpop.permute.xlu0 %2963  ;;  %2002 = vrot.lane.b32.xlu1 %v1915_v30, %s4075_s8  ;;  %v2480_v30 = vrot.slane %v2478_v27, 5 }
 0x1f4   : > { %3056 = vst.msk [vmem:[#allocation2 + $0x10] sm:$0xf] %vm3051_vm15, %v2964_v4  ;;  %v6098_v4 = vld [vmem:[%s4161_s30 + $0x74] sm:$0x1] }
 0x1f5   : > { %2000 = vrot.lane.b32.xlu0 %v5548_v46, %s4075_s8  ;;  %v2998_v20 = vpop.permute.xlu1 %2997  ;;  %v2459_v46 = vshrl.u32 %v6023_v17, 16  ;;  %v2481_v35 = vsel %vm4210_vm3, %v2476_v52, %v2480_v30 }
 0x1f6   : > { %3073 = vst.msk [vmem:[#allocation2 + $0x54] sm:$0xf] %vm3051_vm15, %v2998_v20 }
 0x1f7   : > { %v2996_v18 = vpop.permute.xlu0 %2995  ;;  %2034 = vrot.lane.b32.xlu1 %v1971_v5, %s4075_s8  ;;  %v2461_v11 = vrot.slane %v2459_v46, 4  ;;  %v2677_v46 = vrot.slane %v2675_v54, 4 }
 0x1f8   : > { %3072 = vst.msk [vmem:[#allocation2 + $0x50] sm:$0xf] %vm3051_vm15, %v2996_v18  ;;  %v2668_v18 = vrot.slane %v2667_v57, 4 }
 0x1f9   : > { %2032 = vrot.lane.b32.xlu0 %v1968_v8, %s4075_s8  ;;  %v2970_v40 = vpop.permute.xlu1 %2969  ;;  %v2465_v44 = vor.u32 %v2464_v53, %v2461_v11  ;;  %v2686_v8 = vrot.slane %v2684_v16, 5  ;;  %v2658_v53 = vrot.slane %v2657_v7, 4  ;;  %v2681_v41 = vor.u32 %v2680_v42, %v2677_v46  ;;  %s3518_s8 = sshll.u32 %s6250_s6, 4  ;;  %s6338_s8 = int_to_ptr.vmem [resolvable:$true] %s3518_s8 }
 0x1fa   : > { %3059 = vst.msk [vmem:[#allocation2 + $0x1c] sm:$0xf] %vm3051_vm15, %v2970_v40  ;;  %v2499_v40 = vor.u32 %v2498_v2, %v6076_v14  ;;  %v2673_v55 = vsel %vm4210_vm3, %v2668_v18, %v2672_v19  ;;  %s3993_s18 = scalar_lea.vmem %s6338_s8, 4096  ;;  %p4000_p1 = scmp.lt.s32.totalorder %s6338_s8, %s3998_s21 }
 0x1fb   : > { %v2968_v45 = vpop.permute.xlu0 %2967  ;;  %v3964_v43 = vld [vmem:[#allocation2 + $0x10] sm:$0xff]   ;;  %2211 = vrot.lane.b32.xlu1 %v6015_v36, %s4076_s9  ;;  %v2466_v60 = vrot.slane %v2465_v44, 4  ;;  %v2691_v38 = vor.u32 %v2690_v21, %v2686_v8  ;;  %v2682_v2 = vrot.slane %v2681_v41, 4  ;;  %v2943_v36 = vrot.slane %v6034_v0, 5  ;;  %p3994_p12 = scmp.ne.s32.totalorder %s6338_s8, %s3993_s18  ;;  %p4001_p2 = scmp.lt.s32.totalorder %s3999_s23, %s3993_s18 }
 0x1fc   : > { %3058 = vst.msk [vmem:[#allocation2 + $0x18] sm:$0xf] %vm3051_vm15, %v2968_v45  ;;  %3856 = vmatprep.mubr.msk.bf16.mxu0 %vm3223_vm0, %v3964_v43  ;;  %v2502_v45 = vshll.u32 %v6098_v4, 16 }
 0x1fd   : > { %2209 = vrot.lane.b32.xlu0 %v6023_v17, %s4076_s9  ;;  %v3002_v13 = vpop.permute.xlu1 %3001  ;;  %v2471_v11 = vsel %vm4210_vm3, %v2466_v60, %v6030_v33  ;;  %v2694_v33 = vshll.u32 %v6115_v56, 16  ;;  %v2692_v27 = vrot.slane %v2691_v38, 4  ;;  %v2687_v22 = vsel %vm4210_vm3, %v2682_v2, %v2686_v8  ;;  %p3995_p13 = pnand %p3994_p12, %p4141_p4  ;;  %p4002_p3 = por %p4001_p2, %p4000_p1 }
 0x1fe   : > { %3075 = vst.msk [vmem:[#allocation2 + $0x5c] sm:$0xf] %vm3051_vm15, %v3002_v13  ;;  %v2500_v13 = vrot.slane %v2499_v40, 4  ;;  %v2504_v26 = vrot.slane %v2502_v45, 5  ;;  %v2945_v25 = vrot.slane %v2943_v36, 4  ;;  %v2944_v60 = vsel %vm4566_vm6, %v3783_v28, %v2943_v36 }
 0x1ff   : > { %v3000_v6 = vpop.permute.xlu0 %2999  ;;  %v3965_v9 = vld [vmem:[#allocation2 + $0x50] sm:$0xff]   ;;  %2243 = vrot.lane.b32.xlu1 %v6034_v0, %s4076_s9  ;;  %v2696_v58 = vrot.slane %v2694_v33, 5  ;;  %v2894_v0 = vrot.slane %v6050_v47, 5  ;;  %p3996_p0 = pneg %p3995_p13 }
 0x200   : > { %3074 = vst.msk [vmem:[#allocation2 + $0x58] sm:$0xf] %vm3051_vm15, %v3000_v6  ;;  %3872 = vmatprep.mubr.msk.bf16.mxu1 %vm3223_vm0, %v3965_v9  ;;  %v2663_v9 = vsel %vm4210_vm3, %v2658_v53, %v6063_v12  ;;  %v2505_v62 = vsel %vm4210_vm3, %v2500_v13, %v2504_v26  ;;  %v2495_v12 = vsel %vm4210_vm3, %v2490_v10, %v6076_v14  ;;  %v3775_v14 = vrot.slane %v6023_v17, 9 }
 0x201   : > { %2241 = vrot.lane.b32.xlu0 %v6042_v48, %s4076_s9  ;;  %v1766_v29 = vpop.permute.xlu1 %1765  ;;  %v2946_v17 = vrot.slane %v6074_v34, 5  ;;  %v2896_v30 = vrot.slane %v2894_v0, 4  ;;  %v2897_v48 = vrot.slane %v6098_v4, 5  ;;  %v2953_v4 = vrot.slane %v6115_v56, 5  ;;  %p4003_p5 = pnand %p4002_p3, %p3996_p0 }
 0x202   : > { %1837 = vst.msk [vmem:[#allocation2 + $0x64] sm:$0xf] %vm1811_vm11, %v1766_v29  ;;  %v2888_v54 = vsel %vm4566_vm6, %v3775_v14, %v2887_v49 }
 0x203   : > { %v1764_v51 = vpop.permute.xlu0 %1763  ;;  %v3966_v23 = vld [vmem:[#allocation2 + $0x18] sm:$0xff]   ;;  %2215 = vrot.lane.b32.xlu1 %v6050_v47, %s4076_s9  ;;  %v2950_v47 = vrot.slane %v6080_v59, 5  ;;  %v2947_v34 = vsel %vm4566_vm6, %v2945_v25, %v2946_v17 }
 0x204   : > { %1836 = vst.msk [vmem:[#allocation2 + $0x60] sm:$0xf] %vm1811_vm11, %v1764_v51  ;;  %3857 = vmatmul.mubr.msk.bf16.gmra.mxu0 %vm3223_vm0, %v3966_v23  ;;  %v2697_v51 = vsel %vm4210_vm3, %v2692_v27, %v2696_v58  ;;  %v2890_v23 = vrot.slane %v6058_v39, 5 }
 0x205   : > { %2213 = vrot.lane.b32.xlu0 %v6053_v15, %s4076_s9  ;;  %v1738_v3 = vpop.permute.xlu1 %1737 }
 0x206   : > { %1823 = vst.msk [vmem:[#allocation2 + $0x2c] sm:$0xf] %vm1811_vm11, %v1738_v3  ;;  %v2891_v39 = vsel %vm4566_vm6, %v2889_v24, %v2890_v23  ;;  %v3776_v3 = vrot.slane %v6053_v15, 9  ;;  %v3784_v15 = vrot.slane %v6088_v50, 9 }
 0x207   : > { %v1736_v5 = vpop.permute.xlu0 %1735  ;;  %v3967_v20 = vld [vmem:[#allocation2 + $0x58] sm:$0xff]   ;;  %2247 = vrot.lane.b32.xlu1 %v6080_v59, %s4076_s9  ;;  %v2898_v59 = vsel %vm4566_vm6, %v2896_v30, %v2897_v48 }
 0x208   : > { %1822 = vst.msk [vmem:[#allocation2 + $0x28] sm:$0xf] %vm1811_vm11, %v1736_v5  ;;  %3873 = vmatmul.mubr.msk.bf16.gmra.mxu1 %vm3223_vm0, %v3967_v20  ;;  %v2952_v5 = vrot.slane %v2950_v47, 4  ;;  %v2895_v8 = vsel %vm4566_vm6, %v3776_v3, %v2894_v0 }
 0x209   : > { %2245 = vrot.lane.b32.xlu0 %v6088_v50, %s4076_s9  ;;  %v1770_v43 = vpop.permute.xlu1 %1769  ;;  %v2951_v50 = vsel %vm4566_vm6, %v3784_v15, %v2950_v47 }
 0x20a   : > { %1839 = vst.msk [vmem:[#allocation2 + $0x6c] sm:$0xf] %vm1811_vm11, %v1770_v43  ;;  %v2954_v18 = vsel %vm4566_vm6, %v2952_v5, %v2953_v4 }
 0x20b   : > { %v1768_v1 = vpop.permute.xlu0 %1767  ;;  %2724 = vrot.lane.b32.xlu1 %v2481_v35, %s4077_s10 }
 0x20c   : > { %1838 = vst.msk [vmem:[#allocation2 + $0x68] sm:$0xf] %vm1811_vm11, %v1768_v1 }
 0x20d   : > { %2722 = vrot.lane.b32.xlu0 %v2471_v11, %s4077_s10  ;;  %v1991_v6 = vpop.permute.xlu1 %1990 }
 0x20e   : > { %2078 = vst.msk [vmem:[#allocation2 + $0x24] sm:$0xf] %vm2068_vm12, %v1991_v6 }
 0x20f   : > { %v1989_v61 = vpop.permute.xlu0 %1988  ;;  %2756 = vrot.lane.b32.xlu1 %v2673_v55, %s4077_s10 }
 0x210   : > { %2077 = vst.msk [vmem:[#allocation2 + $0x20] sm:$0xf] %vm2068_vm12, %v1989_v61 }
 0x211   : > { %2754 = vrot.lane.b32.xlu0 %v2663_v9, %s4077_s10  ;;  %v2023_v29 = vpop.permute.xlu1 %2022 }
 0x212   : > { %2094 = vst.msk [vmem:[#allocation2 + $0x64] sm:$0xf] %vm2068_vm12, %v2023_v29 }
 0x213   : > { %v2021_v44 = vpop.permute.xlu0 %2020  ;;  %2728 = vrot.lane.b32.xlu1 %v2505_v62, %s4077_s10 }
 0x214   : > { %2093 = vst.msk [vmem:[#allocation2 + $0x60] sm:$0xf] %vm2068_vm12, %v2021_v44 }
 0x215   : > { %2726 = vrot.lane.b32.xlu0 %v2495_v12, %s4077_s10  ;;  %v1995_v16 = vpop.permute.xlu1 %1994 }
 0x216   : > { %2080 = vst.msk [vmem:[#allocation2 + $0x2c] sm:$0xf] %vm2068_vm12, %v1995_v16 }
 0x217   : > { %v1993_v57 = vpop.permute.xlu0 %1992  ;;  %2760 = vrot.lane.b32.xlu1 %v2697_v51, %s4077_s10 }
 0x218   : > { %2079 = vst.msk [vmem:[#allocation2 + $0x28] sm:$0xf] %vm2068_vm12, %v1993_v57 }
 0x219   : > { %2758 = vrot.lane.b32.xlu0 %v2687_v22, %s4077_s10  ;;  %v2027_v37 = vpop.permute.xlu1 %2026 }
 0x21a   : > { %2096 = vst.msk [vmem:[#allocation2 + $0x6c] sm:$0xf] %vm2068_vm12, %v2027_v37 }
 0x21b   : > { %v2025_v52 = vpop.permute.xlu0 %2024  ;;  %2981 = vrot.lane.b32.xlu1 %v2891_v39, %s4078_s27 }
 0x21c   : > { %2095 = vst.msk [vmem:[#allocation2 + $0x68] sm:$0xf] %vm2068_vm12, %v2025_v52 }
 0x21d   : > { %2979 = vrot.lane.b32.xlu0 %v2888_v54, %s4078_s27  ;;  %v2204_v32 = vpop.permute.xlu1 %2203 }
 0x21e   : > { %2291 = vst.msk [vmem:[#allocation2 + $0x24] sm:$0xf] %vm2281_vm13, %v2204_v32 }
 0x21f   : > { %v2202_v7 = vpop.permute.xlu0 %2201  ;;  %3013 = vrot.lane.b32.xlu1 %v2947_v34, %s4078_s27  ;;  %v6241_v34 = vld [vmem:[%s6391_s2] ss:$0 sm:$0xff] }
 0x220   : > { %2290 = vst.msk [vmem:[#allocation2 + $0x20] sm:$0xf] %vm2281_vm13, %v2202_v7 }
 0x221   : > { %3011 = vrot.lane.b32.xlu0 %v2944_v60, %s4078_s27  ;;  %v2236_v20 = vpop.permute.xlu1 %2235 }
 0x222   : > { %2307 = vst.msk [vmem:[#allocation2 + $0x64] sm:$0xf] %vm2281_vm13, %v2236_v20 }
 0x223   : > { %v2234_v21 = vpop.permute.xlu0 %2233  ;;  %2985 = vrot.lane.b32.xlu1 %v2898_v59, %s4078_s27 }
 0x224   : > { %2306 = vst.msk [vmem:[#allocation2 + $0x60] sm:$0xf] %vm2281_vm13, %v2234_v21 }
 0x225   : > { %2983 = vrot.lane.b32.xlu0 %v2895_v8, %s4078_s27  ;;  %v2208_v19 = vpop.permute.xlu1 %2207 }
 0x226   : > { %2293 = vst.msk [vmem:[#allocation2 + $0x2c] sm:$0xf] %vm2281_vm13, %v2208_v19 }
 0x227   : > { %v2206_v46 = vpop.permute.xlu0 %2205  ;;  %3017 = vrot.lane.b32.xlu1 %v2954_v18, %s4078_s27 }
 0x228   : > { %2292 = vst.msk [vmem:[#allocation2 + $0x28] sm:$0xf] %vm2281_vm13, %v2206_v46 }
 0x229   : > { %3015 = vrot.lane.b32.xlu0 %v2951_v50, %s4078_s27  ;;  %v2240_v35 = vpop.permute.xlu1 %2239 }
 0x22a   : > { %2309 = vst.msk [vmem:[#allocation2 + $0x6c] sm:$0xf] %vm2281_vm13, %v2240_v35 }
 0x22b   : > { %v2238_v40 = vpop.permute.xlu0 %2237 }
 0x22c   : > { %2308 = vst.msk [vmem:[#allocation2 + $0x68] sm:$0xf] %vm2281_vm13, %v2238_v40 }
 0x22d   : > { %v2717_v45 = vpop.permute.xlu1 %2716 }
 0x22e   : > { %2804 = vst.msk [vmem:[#allocation2 + $0x24] sm:$0xf] %vm2794_vm14, %v2717_v45 }
 0x22f   : > { %v2715_v63 = vpop.permute.xlu0 %2714 }
 0x230   : > { %2803 = vst.msk [vmem:[#allocation2 + $0x20] sm:$0xf] %vm2794_vm14, %v2715_v63 }
 0x231   : > { %v2749_v42 = vpop.permute.xlu1 %2748 }
 0x232   : > { %2820 = vst.msk [vmem:[#allocation2 + $0x64] sm:$0xf] %vm2794_vm14, %v2749_v42 }
 0x233   : > { %v2747_v43 = vpop.permute.xlu0 %2746 }
 0x234   : > { %2819 = vst.msk [vmem:[#allocation2 + $0x60] sm:$0xf] %vm2794_vm14, %v2747_v43 }
 0x235   : > { %v2721_v11 = vpop.permute.xlu1 %2720 }
 0x236   : > { %2806 = vst.msk [vmem:[#allocation2 + $0x2c] sm:$0xf] %vm2794_vm14, %v2721_v11 }
 0x237   : > { %v2719_v53 = vpop.permute.xlu0 %2718 }
 0x238   : > { %2805 = vst.msk [vmem:[#allocation2 + $0x28] sm:$0xf] %vm2794_vm14, %v2719_v53 }
 0x239   : > { %v2753_v31 = vpop.permute.xlu1 %2752 }
 0x23a   : > { %2822 = vst.msk [vmem:[#allocation2 + $0x6c] sm:$0xf] %vm2794_vm14, %v2753_v31 }
 0x23b   : > { %v2751_v56 = vpop.permute.xlu0 %2750 }
 0x23c   : > { %2821 = vst.msk [vmem:[#allocation2 + $0x68] sm:$0xf] %vm2794_vm14, %v2751_v56 }
 0x23d   : > { %v2974_v1 = vpop.permute.xlu1 %2973 }
 0x23e   : > { %3061 = vst.msk [vmem:[#allocation2 + $0x24] sm:$0xf] %vm3051_vm15, %v2974_v1 }
 0x23f   : > { %v2972_v55 = vpop.permute.xlu0 %2971 }
 0x240   : > { %3060 = vst.msk [vmem:[#allocation2 + $0x20] sm:$0xf] %vm3051_vm15, %v2972_v55 }
 0x241   : > { %v3006_v13 = vpop.permute.xlu1 %3005 }
 0x242   : > { %3077 = vst.msk [vmem:[#allocation2 + $0x64] sm:$0xf] %vm3051_vm15, %v3006_v13 }
 0x243   : > { %v3004_v26 = vpop.permute.xlu0 %3003 }
 0x244   : > { %3076 = vst.msk [vmem:[#allocation2 + $0x60] sm:$0xf] %vm3051_vm15, %v3004_v26 }
 0x245   : > { %v2978_v38 = vpop.permute.xlu1 %2977 }
 0x246   : > { %3063 = vst.msk [vmem:[#allocation2 + $0x2c] sm:$0xf] %vm3051_vm15, %v2978_v38 }
 0x247   : > { %v2976_v33 = vpop.permute.xlu0 %2975  ;;  %v3968_v6 = vld [vmem:[#allocation2 + $0x20] sm:$0xff]  }
 0x248   : > { %3062 = vst.msk [vmem:[#allocation2 + $0x28] sm:$0xf] %vm3051_vm15, %v2976_v33  ;;  %3860 = vmatprep.mubr.msk.bf16.mxu0 %vm3223_vm0, %v3968_v6 }
 0x249   : > { %v3010_v9 = vpop.permute.xlu1 %3009 }
 0x24a   : > { %3079 = vst.msk [vmem:[#allocation2 + $0x6c] sm:$0xf] %vm3051_vm15, %v3010_v9 }
 0x24b   : > { %v3008_v10 = vpop.permute.xlu0 %3007  ;;  %v3969_v41 = vld [vmem:[#allocation2 + $0x60] sm:$0xff]  }
 0x24c   : > { %3078 = vst.msk [vmem:[#allocation2 + $0x68] sm:$0xf] %vm3051_vm15, %v3008_v10  ;;  %3876 = vmatprep.mubr.msk.bf16.mxu1 %vm3223_vm0, %v3969_v41 }
 0x24d   : > { %v1742_v61 = vpop.permute.xlu1 %1741 }
 0x24e   : > { %1825 = vst.msk [vmem:[#allocation2 + $0x34] sm:$0xf] %vm1811_vm11, %v1742_v61 }
 0x24f   : > { %v1740_v49 = vpop.permute.xlu0 %1739  ;;  %v3970_v62 = vld [vmem:[#allocation2 + $0x28] sm:$0xff]  }
 0x250   : > { %1824 = vst.msk [vmem:[#allocation2 + $0x30] sm:$0xf] %vm1811_vm11, %v1740_v49  ;;  %3861 = vmatmul.mubr.msk.bf16.gmra.mxu0 %vm3223_vm0, %v3970_v62 }
 0x251   : > { %v1774_v27 = vpop.permute.xlu1 %1773 }
 0x252   : > { %1841 = vst.msk [vmem:[#allocation2 + $0x74] sm:$0xf] %vm1811_vm11, %v1774_v27 }
 0x253   : > { %v1772_v58 = vpop.permute.xlu0 %1771  ;;  %v3971_v29 = vld [vmem:[#allocation2 + $0x68] sm:$0xff]  }
 0x254   : > { %1840 = vst.msk [vmem:[#allocation2 + $0x70] sm:$0xf] %vm1811_vm11, %v1772_v58  ;;  %3877 = vmatmul.mubr.msk.bf16.gmra.mxu1 %vm3223_vm0, %v3971_v29 }
 0x255   : > { %v1746_v12 = vpop.permute.xlu1 %1745 }
 0x256   : > { %1827 = vst.msk [vmem:[#allocation2 + $0x3c] sm:$0xf] %vm1811_vm11, %v1746_v12 }
 0x257   : > { %v1744_v2 = vpop.permute.xlu0 %1743 }
 0x258   : > { %1826 = vst.msk [vmem:[#allocation2 + $0x38] sm:$0xf] %vm1811_vm11, %v1744_v2 }
 0x259   : > { %v1778_v44 = vpop.permute.xlu1 %1777 }
 0x25a   : > { %1843 = vst.msk [vmem:[#allocation2 + $0x7c] sm:$0xf] %vm1811_vm11, %v1778_v44 }
 0x25b   : > { %v1776_v36 = vpop.permute.xlu0 %1775 }
 0x25c   : > { %1842 = vst.msk [vmem:[#allocation2 + $0x78] sm:$0xf] %vm1811_vm11, %v1776_v36 }
 0x25d   : > { %v1999_v51 = vpop.permute.xlu1 %1998 }
 0x25e   : > { %2082 = vst.msk [vmem:[#allocation2 + $0x34] sm:$0xf] %vm2068_vm12, %v1999_v51 }
 0x25f   : > { %v1997_v24 = vpop.permute.xlu0 %1996 }
 0x260   : > { %2081 = vst.msk [vmem:[#allocation2 + $0x30] sm:$0xf] %vm2068_vm12, %v1997_v24 }
 0x261   : > { %v2031_v23 = vpop.permute.xlu1 %2030 }
 0x262   : > { %2098 = vst.msk [vmem:[#allocation2 + $0x74] sm:$0xf] %vm2068_vm12, %v2031_v23 }
 0x263   : > { %v2029_v14 = vpop.permute.xlu0 %2028 }
 0x264   : > { %2097 = vst.msk [vmem:[#allocation2 + $0x70] sm:$0xf] %vm2068_vm12, %v2029_v14 }
 0x265   : > { %v2003_v16 = vpop.permute.xlu1 %2002 }
 0x266   : > { %2084 = vst.msk [vmem:[#allocation2 + $0x3c] sm:$0xf] %vm2068_vm12, %v2003_v16 }
 0x267   : > { %v2001_v22 = vpop.permute.xlu0 %2000 }
 0x268   : > { %2083 = vst.msk [vmem:[#allocation2 + $0x38] sm:$0xf] %vm2068_vm12, %v2001_v22 }
 0x269   : > { %v2035_v57 = vpop.permute.xlu1 %2034 }
 0x26a   : > { %2100 = vst.msk [vmem:[#allocation2 + $0x7c] sm:$0xf] %vm2068_vm12, %v2035_v57 }
 0x26b   : > { %v2033_v0 = vpop.permute.xlu0 %2032 }
 0x26c   : > { %2099 = vst.msk [vmem:[#allocation2 + $0x78] sm:$0xf] %vm2068_vm12, %v2033_v0 }
 0x26d   : > { %v2212_v39 = vpop.permute.xlu1 %2211 }
 0x26e   : > { %2295 = vst.msk [vmem:[#allocation2 + $0x34] sm:$0xf] %vm2281_vm13, %v2212_v39 }
 0x26f   : > { %v2210_v25 = vpop.permute.xlu0 %2209 }
 0x270   : > { %2294 = vst.msk [vmem:[#allocation2 + $0x30] sm:$0xf] %vm2281_vm13, %v2210_v25 }
 0x271   : > { %v2244_v17 = vpop.permute.xlu1 %2243 }
 0x272   : > { %2311 = vst.msk [vmem:[#allocation2 + $0x74] sm:$0xf] %vm2281_vm13, %v2244_v17 }
 0x273   : > { %v2242_v28 = vpop.permute.xlu0 %2241 }
 0x274   : > { %2310 = vst.msk [vmem:[#allocation2 + $0x70] sm:$0xf] %vm2281_vm13, %v2242_v28 }
 0x275   : > { %v2216_v37 = vpop.permute.xlu1 %2215 }
 0x276   : > { %2297 = vst.msk [vmem:[#allocation2 + $0x3c] sm:$0xf] %vm2281_vm13, %v2216_v37 }
 0x277   : > { %v2214_v54 = vpop.permute.xlu0 %2213 }
 0x278   : > { %2296 = vst.msk [vmem:[#allocation2 + $0x38] sm:$0xf] %vm2281_vm13, %v2214_v54 }
 0x279   : > { %v2248_v52 = vpop.permute.xlu1 %2247 }
 0x27a   : > { %2313 = vst.msk [vmem:[#allocation2 + $0x7c] sm:$0xf] %vm2281_vm13, %v2248_v52 }
 0x27b   : > { %v2246_v47 = vpop.permute.xlu0 %2245 }
 0x27c   : > { %2312 = vst.msk [vmem:[#allocation2 + $0x78] sm:$0xf] %vm2281_vm13, %v2246_v47  ;;  %v3854_v30 = vpop.f32.mrf.mxu0 }
 0x27d   : > { %v3319_v48 = vadd.f32 %v3854_v30, %v6241_v34  ;;  %v2725_v3 = vpop.permute.xlu1 %2724 }
 0x27e   : > { %2808 = vst.msk [vmem:[#allocation2 + $0x34] sm:$0xf] %vm2794_vm14, %v2725_v3  ;;  %v3310_v60 = vpop.f32.mrf.mxu0 }
 0x27f   : > { %v2723_v32 = vpop.permute.xlu0 %2722  ;;  %v3439_v7 = vmax.f32 %v3319_v48, 0.0  ;;  %v3311_v59 = vadd.f32 %v6241_v34, %v3310_v60 }
 0x280   : > { %2807 = vst.msk [vmem:[#allocation2 + $0x30] sm:$0xf] %vm2794_vm14, %v2723_v32  ;;  %v3855_v5 = vpop.f32.mrf.mxu0  ;;  %v3870_v4 = vpop.f32.mrf.mxu1 }
 0x281   : > { %3471 = vst [vmem:[%s6250_s6 + $0x10] sm:$0xff] %v3439_v7  ;;  %v3437_v15 = vmax.f32 %v3311_v59, 0.0  ;;  %v3322_v20 = vadd.f32 %v3855_v5, %v6241_v34  ;;  %v3383_v8 = vadd.f32 %v3870_v4, %v6241_v34  ;;  %v2757_v21 = vpop.permute.xlu1 %2756 }
 0x282   : > { %2824 = vst.msk [vmem:[#allocation2 + $0x74] sm:$0xf] %vm2794_vm14, %v2757_v21  ;;  %v3313_v19 = vpop.f32.mrf.mxu0  ;;  %v3374_v40 = vpop.f32.mrf.mxu1 }
 0x283   : > { %v2755_v18 = vpop.permute.xlu0 %2754  ;;  %3469 = vst [vmem:[%s6250_s6] sm:$0xff] %v3437_v15  ;;  %v3440_v50 = vmax.f32 %v3322_v20, 0.0  ;;  %v3455_v46 = vmax.f32 %v3383_v8, 0.0  ;;  %v3314_v35 = vadd.f32 %v6241_v34, %v3313_v19  ;;  %v3375_v45 = vadd.f32 %v6241_v34, %v3374_v40 }
 0x284   : > { %2823 = vst.msk [vmem:[#allocation2 + $0x70] sm:$0xf] %vm2794_vm14, %v2755_v18  ;;  %v3871_v42 = vpop.f32.mrf.mxu1 }
 0x285   : > { %3472 = vst [vmem:[%s6250_s6 + $0x18] sm:$0xff] %v3440_v50  ;;  %3487 = vst [vmem:[%s6250_s6 + $0x90] sm:$0xff] %v3455_v46  ;;  %v3438_v63 = vmax.f32 %v3314_v35, 0.0  ;;  %v2729_v43 = vpop.permute.xlu1 %2728  ;;  %v3453_v11 = vmax.f32 %v3375_v45, 0.0  ;;  %v3386_v53 = vadd.f32 %v3871_v42, %v6241_v34 }
 0x286   : > { %2810 = vst.msk [vmem:[#allocation2 + $0x3c] sm:$0xf] %vm2794_vm14, %v2729_v43  ;;  %v3377_v56 = vpop.f32.mrf.mxu1 }
 0x287   : > { %v2727_v31 = vpop.permute.xlu0 %2726  ;;  %3470 = vst [vmem:[%s6250_s6 + $0x8] sm:$0xff] %v3438_v63  ;;  %3485 = vst [vmem:[%s6250_s6 + $0x80] sm:$0xff] %v3453_v11  ;;  %v3456_v1 = vmax.f32 %v3386_v53, 0.0  ;;  %v3378_v55 = vadd.f32 %v6241_v34, %v3377_v56 }
 0x288   : > { %2809 = vst.msk [vmem:[#allocation2 + $0x38] sm:$0xf] %vm2794_vm14, %v2727_v31 }
 0x289   : > { %v2761_v13 = vpop.permute.xlu1 %2760  ;;  %3488 = vst [vmem:[%s6250_s6 + $0x98] sm:$0xff] %v3456_v1  ;;  %v3454_v26 = vmax.f32 %v3378_v55, 0.0 }
 0x28a   : > { %2826 = vst.msk [vmem:[#allocation2 + $0x7c] sm:$0xf] %vm2794_vm14, %v2761_v13 }
 0x28b   : > { %v2759_v38 = vpop.permute.xlu0 %2758  ;;  %3486 = vst [vmem:[%s6250_s6 + $0x88] sm:$0xff] %v3454_v26 }
 0x28c   : > { %2825 = vst.msk [vmem:[#allocation2 + $0x78] sm:$0xf] %vm2794_vm14, %v2759_v38 }
 0x28d   : > { %v2982_v33 = vpop.permute.xlu1 %2981 }
 0x28e   : > { %3065 = vst.msk [vmem:[#allocation2 + $0x34] sm:$0xf] %vm3051_vm15, %v2982_v33 }
 0x28f   : > { %v2980_v6 = vpop.permute.xlu0 %2979 }
 0x290   : > { %3064 = vst.msk [vmem:[#allocation2 + $0x30] sm:$0xf] %vm3051_vm15, %v2980_v6 }
 0x291   : > { %v3014_v9 = vpop.permute.xlu1 %3013 }
 0x292   : > { %3081 = vst.msk [vmem:[#allocation2 + $0x74] sm:$0xf] %vm3051_vm15, %v3014_v9 }
 0x293   : > { %v3012_v10 = vpop.permute.xlu0 %3011 }
 0x294   : > { %3080 = vst.msk [vmem:[#allocation2 + $0x70] sm:$0xf] %vm3051_vm15, %v3012_v10 }
 0x295   : > { %v2986_v41 = vpop.permute.xlu1 %2985 }
 0x296   : > { %3067 = vst.msk [vmem:[#allocation2 + $0x3c] sm:$0xf] %vm3051_vm15, %v2986_v41 }
 0x297   : > { %v2984_v61 = vpop.permute.xlu0 %2983  ;;  %v3972_v49 = vld [vmem:[#allocation2 + $0x30] sm:$0xff]  }
 0x298   : > { %3066 = vst.msk [vmem:[#allocation2 + $0x38] sm:$0xf] %vm3051_vm15, %v2984_v61  ;;  %3864 = vmatprep.mubr.msk.bf16.mxu0 %vm3223_vm0, %v3972_v49 }
 0x299   : > { %v3018_v62 = vpop.permute.xlu1 %3017 }
 0x29a   : > { %3083 = vst.msk [vmem:[#allocation2 + $0x7c] sm:$0xf] %vm3051_vm15, %v3018_v62 }
 0x29b   : > { %v3016_v27 = vpop.permute.xlu0 %3015  ;;  %v3973_v58 = vld [vmem:[#allocation2 + $0x70] sm:$0xff]  }
 0x29c   : > { %3082 = vst.msk [vmem:[#allocation2 + $0x78] sm:$0xf] %vm3051_vm15, %v3016_v27  ;;  %3880 = vmatprep.mubr.msk.bf16.mxu1 %vm3223_vm0, %v3973_v58 }
 0x29f   : > { %v3974_v29 = vld [vmem:[#allocation2 + $0x38] sm:$0xff]  }
 0x2a0   : > { %3865 = vmatmul.mubr.msk.bf16.gmra.mxu0 %vm3223_vm0, %v3974_v29 }
 0x2a3   : > { %v3975_v12 = vld [vmem:[#allocation2 + $0x78] sm:$0xff]  }
 0x2a4   : > { %3881 = vmatmul.mubr.msk.bf16.gmra.mxu1 %vm3223_vm0, %v3975_v12 }
 0x2c4   : > { %v3858_v2 = vpop.f32.mrf.mxu0 }
 0x2c5   : > { %v3335_v44 = vadd.f32 %v3858_v2, %v6241_v34 }
 0x2c6   : > { %v3326_v36 = vpop.f32.mrf.mxu0 }
 0x2c7   : > { %v3443_v51 = vmax.f32 %v3335_v44, 0.0  ;;  %v3327_v24 = vadd.f32 %v6241_v34, %v3326_v36 }
 0x2c8   : > { %v3859_v23 = vpop.f32.mrf.mxu0  ;;  %v3874_v14 = vpop.f32.mrf.mxu1 }
 0x2c9   : > { %3475 = vst [vmem:[%s6250_s6 + $0x30] sm:$0xff] %v3443_v51  ;;  %v3441_v16 = vmax.f32 %v3327_v24, 0.0  ;;  %v3338_v22 = vadd.f32 %v3859_v23, %v6241_v34  ;;  %v3399_v57 = vadd.f32 %v3874_v14, %v6241_v34 }
 0x2ca   : > { %v3329_v0 = vpop.f32.mrf.mxu0  ;;  %v3390_v39 = vpop.f32.mrf.mxu1 }
 0x2cb   : > { %3473 = vst [vmem:[%s6250_s6 + $0x20] sm:$0xff] %v3441_v16  ;;  %v3444_v25 = vmax.f32 %v3338_v22, 0.0  ;;  %v3459_v17 = vmax.f32 %v3399_v57, 0.0  ;;  %v3330_v28 = vadd.f32 %v6241_v34, %v3329_v0  ;;  %v3391_v37 = vadd.f32 %v6241_v34, %v3390_v39 }
 0x2cc   : > { %v3875_v54 = vpop.f32.mrf.mxu1 }
 0x2cd   : > { %3476 = vst [vmem:[%s6250_s6 + $0x38] sm:$0xff] %v3444_v25  ;;  %3491 = vst [vmem:[%s6250_s6 + $0xb0] sm:$0xff] %v3459_v17  ;;  %v3442_v52 = vmax.f32 %v3330_v28, 0.0  ;;  %v3457_v47 = vmax.f32 %v3391_v37, 0.0  ;;  %v3402_v30 = vadd.f32 %v3875_v54, %v6241_v34 }
 0x2ce   : > { %v3393_v48 = vpop.f32.mrf.mxu1 }
 0x2cf   : > { %3474 = vst [vmem:[%s6250_s6 + $0x28] sm:$0xff] %v3442_v52  ;;  %3489 = vst [vmem:[%s6250_s6 + $0xa0] sm:$0xff] %v3457_v47  ;;  %v3460_v3 = vmax.f32 %v3402_v30, 0.0  ;;  %v3394_v32 = vadd.f32 %v6241_v34, %v3393_v48 }
 0x2d1   : > { %3492 = vst [vmem:[%s6250_s6 + $0xb8] sm:$0xff] %v3460_v3  ;;  %v3458_v60 = vmax.f32 %v3394_v32, 0.0 }
 0x2d3   : > { %3490 = vst [vmem:[%s6250_s6 + $0xa8] sm:$0xff] %v3458_v60 }
 0x310   : > { %v3862_v7 = vpop.f32.mrf.mxu0 }
 0x311   : > { %v3351_v59 = vadd.f32 %v3862_v7, %v6241_v34 }
 0x312   : > { %v3342_v5 = vpop.f32.mrf.mxu0 }
 0x313   : > { %v3447_v4 = vmax.f32 %v3351_v59, 0.0  ;;  %v3343_v15 = vadd.f32 %v6241_v34, %v3342_v5 }
 0x314   : > { %v3863_v20 = vpop.f32.mrf.mxu0  ;;  %v3878_v8 = vpop.f32.mrf.mxu1 }
 0x315   : > { %3479 = vst [vmem:[%s6250_s6 + $0x50] sm:$0xff] %v3447_v4  ;;  %v3445_v21 = vmax.f32 %v3343_v15, 0.0  ;;  %v3354_v18 = vadd.f32 %v3863_v20, %v6241_v34  ;;  %v3415_v19 = vadd.f32 %v3878_v8, %v6241_v34 }
 0x316   : > { %v3345_v50 = vpop.f32.mrf.mxu0  ;;  %v3406_v46 = vpop.f32.mrf.mxu1 }
 0x317   : > { %3477 = vst [vmem:[%s6250_s6 + $0x40] sm:$0xff] %v3445_v21  ;;  %v3448_v35 = vmax.f32 %v3354_v18, 0.0  ;;  %v3463_v40 = vmax.f32 %v3415_v19, 0.0  ;;  %v3346_v45 = vadd.f32 %v6241_v34, %v3345_v50  ;;  %v3407_v63 = vadd.f32 %v6241_v34, %v3406_v46 }
 0x318   : > { %v3879_v42 = vpop.f32.mrf.mxu1 }
 0x319   : > { %3480 = vst [vmem:[%s6250_s6 + $0x58] sm:$0xff] %v3448_v35  ;;  %3495 = vst [vmem:[%s6250_s6 + $0xd0] sm:$0xff] %v3463_v40  ;;  %v3446_v43 = vmax.f32 %v3346_v45, 0.0  ;;  %v3461_v11 = vmax.f32 %v3407_v63, 0.0  ;;  %v3418_v53 = vadd.f32 %v3879_v42, %v6241_v34 }
 0x31a   : > { %v3409_v31 = vpop.f32.mrf.mxu1 }
 0x31b   : > { %3478 = vst [vmem:[%s6250_s6 + $0x48] sm:$0xff] %v3446_v43  ;;  %3493 = vst [vmem:[%s6250_s6 + $0xc0] sm:$0xff] %v3461_v11  ;;  %v3464_v56 = vmax.f32 %v3418_v53, 0.0  ;;  %v3410_v1 = vadd.f32 %v6241_v34, %v3409_v31 }
 0x31d   : > { %3496 = vst [vmem:[%s6250_s6 + $0xd8] sm:$0xff] %v3464_v56  ;;  %v3462_v55 = vmax.f32 %v3410_v1, 0.0 }
 0x31f   : > { %3494 = vst [vmem:[%s6250_s6 + $0xc8] sm:$0xff] %v3462_v55 }
 0x360   : > { %v3866_v13 = vpop.f32.mrf.mxu0 }
 0x361   : > { %v3367_v26 = vadd.f32 %v3866_v13, %v6241_v34 }
 0x362   : > { %v3358_v38 = vpop.f32.mrf.mxu0 }
 0x363   : > { %v3451_v33 = vmax.f32 %v3367_v26, 0.0  ;;  %v3359_v6 = vadd.f32 %v6241_v34, %v3358_v38 }
 0x364   : > { %v3867_v9 = vpop.f32.mrf.mxu0  ;;  %v3882_v10 = vpop.f32.mrf.mxu1 }
 0x365   : > { %3483 = vst [vmem:[%s6250_s6 + $0x70] sm:$0xff] %v3451_v33  ;;  %v3449_v41 = vmax.f32 %v3359_v6, 0.0  ;;  %v3370_v61 = vadd.f32 %v3867_v9, %v6241_v34  ;;  %v3431_v49 = vadd.f32 %v3882_v10, %v6241_v34 }
 0x366   : > { %v3361_v62 = vpop.f32.mrf.mxu0  ;;  %v3422_v27 = vpop.f32.mrf.mxu1 }
 0x367   : > { %3481 = vst [vmem:[%s6250_s6 + $0x60] sm:$0xff] %v3449_v41  ;;  %v3452_v58 = vmax.f32 %v3370_v61, 0.0  ;;  %v3467_v29 = vmax.f32 %v3431_v49, 0.0  ;;  %v3362_v12 = vadd.f32 %v6241_v34, %v3361_v62  ;;  %v3423_v2 = vadd.f32 %v6241_v34, %v3422_v27 }
 0x368   : > { %v3883_v44 = vpop.f32.mrf.mxu1 }
 0x369   : > { %3484 = vst [vmem:[%s6250_s6 + $0x78] sm:$0xff] %v3452_v58  ;;  %3499 = vst [vmem:[%s6250_s6 + $0xf0] sm:$0xff] %v3467_v29  ;;  %v3450_v36 = vmax.f32 %v3362_v12, 0.0  ;;  %v3465_v51 = vmax.f32 %v3423_v2, 0.0  ;;  %v3434_v24 = vadd.f32 %v3883_v44, %v6241_v34 }
 0x36a   : > { %v3425_v23 = vpop.f32.mrf.mxu1 }
 0x36b   : > { %3482 = vst [vmem:[%s6250_s6 + $0x68] sm:$0xff] %v3450_v36  ;;  %3497 = vst [vmem:[%s6250_s6 + $0xe0] sm:$0xff] %v3465_v51  ;;  %v3468_v14 = vmax.f32 %v3434_v24, 0.0  ;;  %v3426_v16 = vadd.f32 %v6241_v34, %v3425_v23 }
 0x36d   : > { %3500 = vst [vmem:[%s6250_s6 + $0xf8] sm:$0xff] %v3468_v14  ;;  %v3466_v22 = vmax.f32 %v3426_v16, 0.0 }
 0x36f   : > { %3498 = vst [vmem:[%s6250_s6 + $0xe8] sm:$0xff] %v3466_v22 }
 0x370   : > { %4006 = shalt.err (!%p4003_p5)
}
 0x371   : > { %s4007_s26 = scalar_lea.hbm %s6335_s11, 4096  ;;  %s4011_s29 = scalar_lea.hbm %s6392_s3, 8192 }
 0x372   : > { %p4008_p6 = scmp.ne.s32.totalorder %s6335_s11, %s4007_s26  ;;  %p4012_p10 = scmp.lt.s32.totalorder %s6335_s11, %s6392_s3 }
 0x373   : > { %p4013_p11 = scmp.lt.s32.totalorder %s4011_s29, %s4007_s26 }
 0x374   : > { %p4009_p7 = pnand %p4008_p6, %p4141_p4 }
 0x375   : > { %p4014_p12 = por %p4013_p11, %p4012_p10 }
 0x376   : > { %p4010_p9 = pneg %p4009_p7 }
 0x378   : > { %p4015_p13 = pnand %p4014_p12, %p4010_p9 }
 0x37a   : > { %4018 = shalt.err (!%p4015_p13)
}
 0x37b   : > { %s4080_s6 = smov 128  }
 0x37c   : > { %3893 = dma.vmem_to_hbm [thread:$0]  (%p4141_p4), %s6338_s8, 4096, %s6335_s11, %s6343_s15, %s4080_s6, %s4080_s6, %s4072_s5  }
 0x37d PF: > { %p3899_p0 = scmp.ge.s32.totalorder %s4069_s17, 2  ;;  %s3533_s7 = sand.u32 1, %s4049_s12  }
 0x37e   : > { %s3534_s9 = scalar_lea.sflag [#allocation4], %s3533_s7 }
 0x37f   : > { %p3896_p1 = pnand %p3899_p0, %p4148_p8 }
 0x381   : > { %p3897_p2 = pneg %p3896_p1 }
 0x383   : > { %4044 = dma.done.wait (%p3897_p2), %s3534_s9, 4096  }
 0x384   : > { %4046 = vsyncadd (%p3897_p2), %s3534_s9, 4294963200  ;;  %s16_s17 = sadd.s32 1, %s4069_s17   ;;  %s6426_s12 = smov %s4053_s13 }
 0x385   : > { %p13_p3 = scmp.ge.s32.totalorder %s16_s17, 4   ;;  %s6427_s13 = smov %s4057_s14 }
 0x386   : > { %s6428_s14 = smov %s4154_s25  ;;  %s6429_s15 = smov %s4065_s16 }
 0x387   : > { %s6430_s16 = smov %s6432_s20  ;;  %15 = sbr.rel (!%p13_p3) target bundleno = 4 (0x4), region = 76 }
 0x38c   :  { %3539 = vsyncpa [#allocation4], 1 }
 0x38d   :  { %3541 = vsyncpa [#allocation4 + $0x1], 1 }

</bundles_post_ra>
